<compile_context>
chip_gen: v6e
topology: v6e:2x2x1
jax: 0.10.0
libtpu: 0.0.40
codegen_flags: <defaults>
</compile_context>

<pallas_src>
import functools

import jax
import jax.numpy as jnp
from jax.experimental import pallas as pl
from jax.experimental.pallas import tpu as pltpu

NEG_SLOPE = 0.01   # nn.LeakyReLU default
LN_EPS = 1e-5      # nn.LayerNorm default


def _leaky_relu(v):
    return jnp.where(v > 0, v, NEG_SLOPE * v)


def _layer_norm(v, gamma, beta):
    # Two-pass (subtract-mean-then-square) variance: matches PyTorch's LN and
    # avoids the catastrophic cancellation of E[x^2] - mean^2 when the
    # activation mean is large relative to its std.  Data is already resident,
    # so the extra cost is one VPU pass + one XLU reduction per tile.
    mu = jnp.mean(v, axis=-1, keepdims=True)
    c = v - mu
    var = jnp.mean(c * c, axis=-1, keepdims=True)
    return c * jax.lax.rsqrt(var + LN_EPS) * gamma + beta


def _fc_resblock_kernel(
    x_ref, w1_ref, b1_ref, w2_ref, b2_ref,
    wud_ref, bud_ref, g1_ref, be1_ref, g2_ref, be2_ref,
    o_ref,
    *, has_updownsample, norm_layers, last_activation,
):
    if has_updownsample:
        # x already arrives in the matmul dtype (bf16): the f32 copy of x is
        # dead because the residual comes from the up/down-sample Linear.
        x_mm = x_ref[...]
    else:
        # Identity residual: keep x in f32 for an exact residual add.
        x_f32 = x_ref[...].astype(jnp.float32)
        x_mm = x_f32.astype(w1_ref.dtype)

    # fc1 (bf16 x bf16 -> f32 accumulation on the MXU)
    h = jnp.dot(x_mm, w1_ref[...], preferred_element_type=jnp.float32) + b1_ref[...]
    if norm_layers:
        h = _layer_norm(h, g1_ref[...], be1_ref[...])
    h = _leaky_relu(h)

    # residual branch (identity or up/down-sample Linear)
    if has_updownsample:
        res = jnp.dot(x_mm, wud_ref[...], preferred_element_type=jnp.float32) + bud_ref[...]
    else:
        res = x_f32

    # fc2 + residual
    y = (jnp.dot(h.astype(w2_ref.dtype), w2_ref[...],
                 preferred_element_type=jnp.float32)
         + b2_ref[...] + res)
    if norm_layers:
        y = _layer_norm(y, g2_ref[...], be2_ref[...])
    if last_activation:
        y = _leaky_relu(y)

    o_ref[...] = y.astype(o_ref.dtype)


def _vmem_capacity_bytes():
    # Generation-aware VMEM capacity; fall back to the smallest per-core VMEM
    # of supported generations (v7x: 64 MiB / TensorCore) if the query fails.
    try:
        return int(pltpu.get_tpu_info().vmem_capacity_bytes)
    except Exception:
        return 64 * 2**20


def _const_spec(shape, single_buffer):
    """BlockSpec for a block whose index never changes across the grid."""
    idx = lambda i: (0, 0)
    if single_buffer and hasattr(pl, "Buffered"):
        try:
            # Single-buffered: constant index_map => the default double buffer
            # would just duplicate the block in VMEM for zero benefit.
            return pl.BlockSpec(shape, idx, pipeline_mode=pl.Buffered(1))
        except TypeError:
            pass
    return pl.BlockSpec(shape, idx)


def _pick_batch_tile(B, per_row_bytes, fixed_bytes, vmem_budget):
    """Largest batch tile (multiple of 8 rows, dividing B) whose working set
    fits the VMEM budget, preferring >= 2 grid steps (v7x megacore)."""
    cands = [t for t in (4096, 2048, 1024, 512, 256, 128, 64, 32, 16, 8)
             if t <= B and B % t == 0]
    if not cands:
        return B   # tiny / odd batch: single full-array block
    for require_multi_step in (True, False):
        for t in cands:                       # largest first
            if require_multi_step and B // t < 2:
                continue
            if fixed_bytes + t * per_row_bytes <= vmem_budget:
                return t
    return cands[-1]


def fc_residual_block(
    x, params, *, last_activation=True, norm_layers=False,
    batch_tile=None, matmul_dtype=jnp.bfloat16, out_dtype=None,
    single_buffer_weights=True,
):
    """x: [B, D_in] float32. params: dict of f32 weights (see init_params).

    matmul_dtype=bf16 (default) halves weight/x DMA with f32 MXU accumulation;
    pass jnp.float32 for bit-closer parity with the f32 PyTorch module.
    out_dtype (e.g. jnp.bfloat16) halves writeback traffic when tolerated."""
    B, d_in = x.shape
    d_mid = params["w1"].shape[1]
    d_out = params["w2"].shape[1]
    has_ud = "w_ud" in params
    if not has_ud:
        assert d_in == d_out, "identity residual requires input_units == output_units"
    out_dtype = x.dtype if out_dtype is None else out_dtype

    f32 = jnp.float32
    # Matmul weights -> matmul_dtype in HBM (bf16 halves DMA + resident VMEM).
    w1 = params["w1"].astype(matmul_dtype)
    w2 = params["w2"].astype(matmul_dtype)
    # 1-D params -> lane-major (1, D) rows (free VPU broadcast, no relayout).
    row = lambda a: a.reshape(1, -1).astype(f32)
    b1, b2 = row(params["b1"]), row(params["b2"])

    # Dummy (1,1) buffers for branches compiled out (fixed kernel arity).
    dummy_w = jnp.zeros((1, 1), matmul_dtype)
    dummy_v = jnp.zeros((1, 1), f32)
    w_ud = params["w_ud"].astype(matmul_dtype) if has_ud else dummy_w
    b_ud = row(params["b_ud"]) if has_ud else dummy_v
    g1 = row(params["ln1_g"]) if norm_layers else dummy_v
    be1 = row(params["ln1_b"]) if norm_layers else dummy_v
    g2 = row(params["ln2_g"]) if norm_layers else dummy_v
    be2 = row(params["ln2_b"]) if norm_layers else dummy_v

    # With an up/down-sample residual the f32 copy of x is never needed, so
    # stream x in the matmul dtype (halves the dominant HBM read + x buffer).
    x_in = x.astype(matmul_dtype) if has_ud else x

    weightlike = (w1, b1, w2, b2, w_ud, b_ud, g1, be1, g2, be2)
    weight_bytes = sum(int(a.size) * a.dtype.itemsize for a in weightlike)

    vmem_cap = _vmem_capacity_bytes()
    x_bytes = jnp.dtype(x_in.dtype).itemsize
    o_bytes = jnp.dtype(out_dtype).itemsize
    per_row = (2 * d_in * x_bytes                 # double-buffered x tile
               + 2 * d_out * o_bytes              # double-buffered out tile
               + (d_in + d_mid + 2 * d_out) * 4)  # f32 intermediates
    weight_buf = 1 if single_buffer_weights else 2
    fixed = weight_buf * weight_bytes + (2 << 20)

    if batch_tile is None:
        batch_tile = _pick_batch_tile(B, per_row, fixed, vmem_cap - (16 << 20))
    assert B % batch_tile == 0, "batch must be divisible by batch_tile"
    assert batch_tile % 8 == 0 or batch_tile == B, (
        "batch_tile must be a multiple of 8 (f32 sublanes) or equal to the batch")

    # Generation-aware VMEM request: never above physical capacity - 8 MiB.
    vmem_limit = int(min(vmem_cap - (8 << 20),
                         max(16 << 20, fixed + batch_tile * per_row + (4 << 20))))

    flops = 2 * B * d_in * d_mid + 2 * B * d_mid * d_out
    if has_ud:
        flops += 2 * B * d_in * d_out
    inputs = (x_in, w1, b1, w2, b2, w_ud, b_ud, g1, be1, g2, be2)
    cost = pl.CostEstimate(
        flops=flops,
        transcendentals=2 * B if norm_layers else 0,
        bytes_accessed=sum(int(a.size) * a.dtype.itemsize for a in inputs)
        + B * d_out * o_bytes,
    )

    kernel = functools.partial(
        _fc_resblock_kernel,
        has_updownsample=has_ud,
        norm_layers=norm_layers,
        last_activation=last_activation,
    )
    grid = (B // batch_tile,)

    # TODO(synk): add a K-tiled ("arbitrary") reduction axis over d_in for W1 /
    # W_ud when resident weights exceed ~40-48 MiB (v7x 64 MiB/TC headroom).

    def call(single_buf):
        in_specs = ([pl.BlockSpec((batch_tile, d_in), lambda i: (i, 0))]   # x tile
                    + [_const_spec(a.shape, single_buf) for a in weightlike])
        return pl.pallas_call(
            kernel,
            out_shape=jax.ShapeDtypeStruct((B, d_out), out_dtype),
            grid_spec=pltpu.PrefetchScalarGridSpec(
                num_scalar_prefetch=0,
                grid=grid,
                in_specs=in_specs,
                out_specs=pl.BlockSpec((batch_tile, d_out), lambda i: (i, 0)),
            ),
            compiler_params=pltpu.CompilerParams(
                dimension_semantics=("parallel",),
                vmem_limit_bytes=vmem_limit,
            ),
            cost_estimate=cost,
        )(*inputs)

    if single_buffer_weights:
        try:
            return call(True)
        except Exception:
            # pipeline_mode=pl.Buffered(1) not honored on this jax/libtpu:
            # fall back to default (double-buffered) weight blocks.
            pass
    return call(False)


def init_params(key, input_units, output_units=None, norm_layers=False):
    """Deterministic synthetic init matching the module's parameter shapes.

    Weights are stored as [in, out] (transposed vs torch's [out, in])."""
    if not output_units:
        output_units = input_units
    middle_units = min(input_units, output_units) // 2

    keys = jax.random.split(key, 6)
    params = {
        "w1": jax.random.normal(keys[0], (input_units, middle_units), jnp.float32) * 0.1,
        "b1": jax.random.normal(keys[1], (middle_units,), jnp.float32) * 0.1,
        "w2": jax.random.normal(keys[2], (middle_units, output_units), jnp.float32) * 0.1,
        "b2": jax.random.normal(keys[3], (output_units,), jnp.float32) * 0.1,
    }
    if input_units != output_units:
        params["w_ud"] = jax.random.normal(keys[4], (input_units, output_units), jnp.float32) * 0.1
        params["b_ud"] = jax.random.normal(keys[5], (output_units,), jnp.float32) * 0.1
    if norm_layers:
        params["ln1_g"] = jnp.ones((middle_units,), jnp.float32)
        params["ln1_b"] = jnp.zeros((middle_units,), jnp.float32)
        params["ln2_g"] = jnp.ones((output_units,), jnp.float32)
        params["ln2_b"] = jnp.zeros((output_units,), jnp.float32)
    return params


def _reference(x, params, *, last_activation, norm_layers, matmul_dtype=jnp.bfloat16):
    """Pure-JAX reference using the same matmul dtype / f32 accumulation."""
    def ln(v, g, b):
        mu = v.mean(-1, keepdims=True)
        var = ((v - mu) ** 2).mean(-1, keepdims=True)
        return (v - mu) / jnp.sqrt(var + LN_EPS) * g + b

    mm = lambda a, w: jnp.dot(a.astype(matmul_dtype), w.astype(matmul_dtype),
                              preferred_element_type=jnp.float32)

    h = mm(x, params["w1"]) + params["b1"]
    if norm_layers:
        h = ln(h, params["ln1_g"], params["ln1_b"])
    h = jnp.where(h > 0, h, NEG_SLOPE * h)
    res = (mm(x, params["w_ud"]) + params["b_ud"]) if "w_ud" in params else x
    y = mm(h, params["w2"]) + params["b2"] + res
    if norm_layers:
        y = ln(y, params["ln2_g"], params["ln2_b"])
    if last_activation:
        y = jnp.where(y > 0, y, NEG_SLOPE * y)
    return y


if __name__ == "__main__":
    key = jax.random.PRNGKey(0)
    k1, k2, k3, k4 = jax.random.split(key, 4)

    # Tolerance: bf16 matmul operands (intentional precision deviation from the
    # f32 PyTorch module; pass matmul_dtype=jnp.float32 for bit-closer parity).
    ATOL = RTOL = 2e-3

    # Case A: up/down-sample residual + LayerNorms + final activation.
    #   d_in=512 -> d_out=256 gives middle_units=128: lane-dense h (no masked
    #   LN reduction) and full-depth K for fc2 on the MXU.  B=256 tiles into
    #   2 grid steps of 128 (both v7x TensorCores get work).
    B, din, dout = 256, 512, 256
    x = jax.random.normal(k1, (B, din), jnp.float32)
    params = init_params(k2, din, dout, norm_layers=True)
    out = jax.block_until_ready(
        fc_residual_block(x, params, last_activation=True, norm_layers=True))
    ref = _reference(x, params, last_activation=True, norm_layers=True)
    assert out.shape == (B, dout)
    assert jnp.allclose(out, ref, atol=ATOL, rtol=RTOL), "case A mismatch vs reference"

    # Case B: identity residual, no LayerNorm, no final activation.
    B2, d2 = 256, 256
    x2 = jax.random.normal(k3, (B2, d2), jnp.float32)
    params2 = init_params(k4, d2, None, norm_layers=False)
    out2 = jax.block_until_ready(
        fc_residual_block(x2, params2, last_activation=False, norm_layers=False))
    ref2 = _reference(x2, params2, last_activation=False, norm_layers=False)
    assert out2.shape == (B2, d2)
    assert jnp.allclose(out2, ref2, atol=ATOL, rtol=RTOL), "case B mismatch vs reference"

    print("KERNEL_OK")
</pallas_src>

<mosaic_0001>
module attributes {stable_mosaic.version = 11 : i64} {
  func.func @_fc_resblock_kernel(%arg0: i32, %arg1: memref<128x512xbf16, #tpu.memory_space<vmem>>, %arg2: memref<512x128xbf16, #tpu.memory_space<vmem>>, %arg3: memref<1x128xf32, #tpu.memory_space<vmem>>, %arg4: memref<128x256xbf16, #tpu.memory_space<vmem>>, %arg5: memref<1x256xf32, #tpu.memory_space<vmem>>, %arg6: memref<512x256xbf16, #tpu.memory_space<vmem>>, %arg7: memref<1x256xf32, #tpu.memory_space<vmem>>, %arg8: memref<1x128xf32, #tpu.memory_space<vmem>>, %arg9: memref<1x128xf32, #tpu.memory_space<vmem>>, %arg10: memref<1x256xf32, #tpu.memory_space<vmem>>, %arg11: memref<1x256xf32, #tpu.memory_space<vmem>>, %arg12: memref<128x256xf32, #tpu.memory_space<vmem>>) attributes {dimension_semantics = [#tpu.dimension_semantics<parallel>], iteration_bounds = array<i64: 2>, scalar_prefetch = 0 : i64, scratch_operands = 0 : i64, tpu.core_type = #tpu.core_type<tc>, window_params = [{transform_indices = @transform_0, window_bounds = array<i64: 128, 512>}, {pipeline_mode = #tpu.pipeline_mode<synchronous>, transform_indices = @transform_1, window_bounds = array<i64: 512, 128>}, {pipeline_mode = #tpu.pipeline_mode<synchronous>, transform_indices = @transform_2, window_bounds = array<i64: 1, 128>}, {pipeline_mode = #tpu.pipeline_mode<synchronous>, transform_indices = @transform_3, window_bounds = array<i64: 128, 256>}, {pipeline_mode = #tpu.pipeline_mode<synchronous>, transform_indices = @transform_4, window_bounds = array<i64: 1, 256>}, {pipeline_mode = #tpu.pipeline_mode<synchronous>, transform_indices = @transform_5, window_bounds = array<i64: 512, 256>}, {pipeline_mode = #tpu.pipeline_mode<synchronous>, transform_indices = @transform_6, window_bounds = array<i64: 1, 256>}, {pipeline_mode = #tpu.pipeline_mode<synchronous>, transform_indices = @transform_7, window_bounds = array<i64: 1, 128>}, {pipeline_mode = #tpu.pipeline_mode<synchronous>, transform_indices = @transform_8, window_bounds = array<i64: 1, 128>}, {pipeline_mode = #tpu.pipeline_mode<synchronous>, transform_indices = @transform_9, window_bounds = array<i64: 1, 256>}, {pipeline_mode = #tpu.pipeline_mode<synchronous>, transform_indices = @transform_10, window_bounds = array<i64: 1, 256>}, {transform_indices = @transform_11, window_bounds = array<i64: 128, 256>}]} {
    %c0 = arith.constant 0 : index
    %c0_0 = arith.constant 0 : index
    %0 = vector.load %arg1[%c0, %c0_0] : memref<128x512xbf16, #tpu.memory_space<vmem>>, vector<128x512xbf16>
    %c0_1 = arith.constant 0 : index
    %c0_2 = arith.constant 0 : index
    %1 = vector.load %arg2[%c0_1, %c0_2] : memref<512x128xbf16, #tpu.memory_space<vmem>>, vector<512x128xbf16>
    %cst = arith.constant dense<0.000000e+00> : vector<128x128xf32>
    %2 = tpu.matmul %0, %1, %cst {dimension_numbers = #tpu.dot_dimension_numbers<[1], [0], [0], [1], [0, 0, 1, 1], [], []>} : vector<128x512xbf16>, vector<512x128xbf16>, vector<128x128xf32> -> vector<128x128xf32>
    %c0_3 = arith.constant 0 : index
    %c0_4 = arith.constant 0 : index
    %3 = vector.load %arg3[%c0_3, %c0_4] : memref<1x128xf32, #tpu.memory_space<vmem>>, vector<1x128xf32>
    %4 = vector.broadcast %3 : vector<1x128xf32> to vector<128x128xf32>
    %5 = arith.addf %2, %4 : vector<128x128xf32>
    %c0_5 = arith.constant 0 : index
    %c0_6 = arith.constant 0 : index
    %6 = vector.load %arg8[%c0_5, %c0_6] : memref<1x128xf32, #tpu.memory_space<vmem>>, vector<1x128xf32>
    %c0_7 = arith.constant 0 : index
    %c0_8 = arith.constant 0 : index
    %7 = vector.load %arg9[%c0_7, %c0_8] : memref<1x128xf32, #tpu.memory_space<vmem>>, vector<1x128xf32>
    %cst_9 = arith.constant dense<0.000000e+00> : vector<128xf32>
    %8 = vector.multi_reduction <add>, %5, %cst_9 [1] : vector<128x128xf32> to vector<128xf32>
    %9 = vector.shape_cast %8 : vector<128xf32> to vector<128x1xf32>
    %cst_10 = arith.constant 1.280000e+02 : f32
    %10 = vector.broadcast %cst_10 : f32 to vector<128x1xf32>
    %11 = arith.divf %9, %10 : vector<128x1xf32>
    %12 = vector.broadcast %11 : vector<128x1xf32> to vector<128x128xf32>
    %13 = arith.subf %5, %12 : vector<128x128xf32>
    %14 = arith.mulf %13, %13 : vector<128x128xf32>
    %cst_11 = arith.constant dense<0.000000e+00> : vector<128xf32>
    %15 = vector.multi_reduction <add>, %14, %cst_11 [1] : vector<128x128xf32> to vector<128xf32>
    %16 = vector.shape_cast %15 : vector<128xf32> to vector<128x1xf32>
    %cst_12 = arith.constant 1.280000e+02 : f32
    %17 = vector.broadcast %cst_12 : f32 to vector<128x1xf32>
    %18 = arith.divf %16, %17 : vector<128x1xf32>
    %cst_13 = arith.constant 9.99999974E-6 : f32
    %19 = vector.broadcast %cst_13 : f32 to vector<128x1xf32>
    %20 = arith.addf %18, %19 : vector<128x1xf32>
    %21 = math.rsqrt %20 : vector<128x1xf32>
    %22 = vector.broadcast %21 : vector<128x1xf32> to vector<128x128xf32>
    %23 = arith.mulf %13, %22 : vector<128x128xf32>
    %24 = vector.broadcast %6 : vector<1x128xf32> to vector<128x128xf32>
    %25 = arith.mulf %23, %24 : vector<128x128xf32>
    %26 = vector.broadcast %7 : vector<1x128xf32> to vector<128x128xf32>
    %27 = arith.addf %25, %26 : vector<128x128xf32>
    %cst_14 = arith.constant 0.000000e+00 : f32
    %28 = vector.broadcast %cst_14 : f32 to vector<128x128xf32>
    %29 = arith.cmpf ogt, %27, %28 : vector<128x128xf32>
    %cst_15 = arith.constant 0.00999999977 : f32
    %30 = vector.broadcast %cst_15 : f32 to vector<128x128xf32>
    %31 = arith.mulf %30, %27 : vector<128x128xf32>
    %32 = arith.select %29, %27, %31 : vector<128x128xi1>, vector<128x128xf32>
    %c0_16 = arith.constant 0 : index
    %c0_17 = arith.constant 0 : index
    %33 = vector.load %arg6[%c0_16, %c0_17] : memref<512x256xbf16, #tpu.memory_space<vmem>>, vector<512x256xbf16>
    %cst_18 = arith.constant dense<0.000000e+00> : vector<128x256xf32>
    %34 = tpu.matmul %0, %33, %cst_18 {dimension_numbers = #tpu.dot_dimension_numbers<[1], [0], [0], [1], [0, 0, 1, 1], [], []>} : vector<128x512xbf16>, vector<512x256xbf16>, vector<128x256xf32> -> vector<128x256xf32>
    %c0_19 = arith.constant 0 : index
    %c0_20 = arith.constant 0 : index
    %35 = vector.load %arg7[%c0_19, %c0_20] : memref<1x256xf32, #tpu.memory_space<vmem>>, vector<1x256xf32>
    %36 = vector.broadcast %35 : vector<1x256xf32> to vector<128x256xf32>
    %37 = arith.addf %34, %36 : vector<128x256xf32>
    %38 = arith.truncf %32 : vector<128x128xf32> to vector<128x128xbf16>
    %c0_21 = arith.constant 0 : index
    %c0_22 = arith.constant 0 : index
    %39 = vector.load %arg4[%c0_21, %c0_22] : memref<128x256xbf16, #tpu.memory_space<vmem>>, vector<128x256xbf16>
    %cst_23 = arith.constant dense<0.000000e+00> : vector<128x256xf32>
    %40 = tpu.matmul %38, %39, %cst_23 {dimension_numbers = #tpu.dot_dimension_numbers<[1], [0], [0], [1], [0, 0, 1, 1], [], []>} : vector<128x128xbf16>, vector<128x256xbf16>, vector<128x256xf32> -> vector<128x256xf32>
    %c0_24 = arith.constant 0 : index
    %c0_25 = arith.constant 0 : index
    %41 = vector.load %arg5[%c0_24, %c0_25] : memref<1x256xf32, #tpu.memory_space<vmem>>, vector<1x256xf32>
    %42 = vector.broadcast %41 : vector<1x256xf32> to vector<128x256xf32>
    %43 = arith.addf %40, %42 : vector<128x256xf32>
    %44 = arith.addf %43, %37 : vector<128x256xf32>
    %c0_26 = arith.constant 0 : index
    %c0_27 = arith.constant 0 : index
    %45 = vector.load %arg10[%c0_26, %c0_27] : memref<1x256xf32, #tpu.memory_space<vmem>>, vector<1x256xf32>
    %c0_28 = arith.constant 0 : index
    %c0_29 = arith.constant 0 : index
    %46 = vector.load %arg11[%c0_28, %c0_29] : memref<1x256xf32, #tpu.memory_space<vmem>>, vector<1x256xf32>
    %cst_30 = arith.constant dense<0.000000e+00> : vector<128xf32>
    %47 = vector.multi_reduction <add>, %44, %cst_30 [1] : vector<128x256xf32> to vector<128xf32>
    %48 = vector.shape_cast %47 : vector<128xf32> to vector<128x1xf32>
    %cst_31 = arith.constant 2.560000e+02 : f32
    %49 = vector.broadcast %cst_31 : f32 to vector<128x1xf32>
    %50 = arith.divf %48, %49 : vector<128x1xf32>
    %51 = vector.broadcast %50 : vector<128x1xf32> to vector<128x256xf32>
    %52 = arith.subf %44, %51 : vector<128x256xf32>
    %53 = arith.mulf %52, %52 : vector<128x256xf32>
    %cst_32 = arith.constant dense<0.000000e+00> : vector<128xf32>
    %54 = vector.multi_reduction <add>, %53, %cst_32 [1] : vector<128x256xf32> to vector<128xf32>
    %55 = vector.shape_cast %54 : vector<128xf32> to vector<128x1xf32>
    %cst_33 = arith.constant 2.560000e+02 : f32
    %56 = vector.broadcast %cst_33 : f32 to vector<128x1xf32>
    %57 = arith.divf %55, %56 : vector<128x1xf32>
    %cst_34 = arith.constant 9.99999974E-6 : f32
    %58 = vector.broadcast %cst_34 : f32 to vector<128x1xf32>
    %59 = arith.addf %57, %58 : vector<128x1xf32>
    %60 = math.rsqrt %59 : vector<128x1xf32>
    %61 = vector.broadcast %60 : vector<128x1xf32> to vector<128x256xf32>
    %62 = arith.mulf %52, %61 : vector<128x256xf32>
    %63 = vector.broadcast %45 : vector<1x256xf32> to vector<128x256xf32>
    %64 = arith.mulf %62, %63 : vector<128x256xf32>
    %65 = vector.broadcast %46 : vector<1x256xf32> to vector<128x256xf32>
    %66 = arith.addf %64, %65 : vector<128x256xf32>
    %cst_35 = arith.constant 0.000000e+00 : f32
    %67 = vector.broadcast %cst_35 : f32 to vector<128x256xf32>
    %68 = arith.cmpf ogt, %66, %67 : vector<128x256xf32>
    %cst_36 = arith.constant 0.00999999977 : f32
    %69 = vector.broadcast %cst_36 : f32 to vector<128x256xf32>
    %70 = arith.mulf %69, %66 : vector<128x256xf32>
    %71 = arith.select %68, %66, %70 : vector<128x256xi1>, vector<128x256xf32>
    %c0_37 = arith.constant 0 : index
    %c0_38 = arith.constant 0 : index
    %72 = vector.load %arg12[%c0_37, %c0_38] : memref<128x256xf32, #tpu.memory_space<vmem>>, vector<128x256xf32>
    tpu.vector_store %arg12[%c0_37, %c0_38], %71 {strides = array<i32>} : memref<128x256xf32, #tpu.memory_space<vmem>>, vector<128x256xf32>,
    return
  }
  func.func @transform_0(%arg0: i32) -> (i32, i32) {
    %c0_i32 = arith.constant 0 : i32
    %c0_i32_0 = arith.constant 0 : i32
    return %arg0, %c0_i32 : i32, i32
  }
  func.func @transform_1(%arg0: i32) -> (i32, i32) {
    %c0_i32 = arith.constant 0 : i32
    %c0_i32_0 = arith.constant 0 : i32
    %c0_i32_1 = arith.constant 0 : i32
    return %c0_i32, %c0_i32_0 : i32, i32
  }
  func.func @transform_2(%arg0: i32) -> (i32, i32) {
    %c0_i32 = arith.constant 0 : i32
    %c0_i32_0 = arith.constant 0 : i32
    %c0_i32_1 = arith.constant 0 : i32
    return %c0_i32, %c0_i32_0 : i32, i32
  }
  func.func @transform_3(%arg0: i32) -> (i32, i32) {
    %c0_i32 = arith.constant 0 : i32
    %c0_i32_0 = arith.constant 0 : i32
    %c0_i32_1 = arith.constant 0 : i32
    return %c0_i32, %c0_i32_0 : i32, i32
  }
  func.func @transform_4(%arg0: i32) -> (i32, i32) {
    %c0_i32 = arith.constant 0 : i32
    %c0_i32_0 = arith.constant 0 : i32
    %c0_i32_1 = arith.constant 0 : i32
    return %c0_i32, %c0_i32_0 : i32, i32
  }
  func.func @transform_5(%arg0: i32) -> (i32, i32) {
    %c0_i32 = arith.constant 0 : i32
    %c0_i32_0 = arith.constant 0 : i32
    %c0_i32_1 = arith.constant 0 : i32
    return %c0_i32, %c0_i32_0 : i32, i32
  }
  func.func @transform_6(%arg0: i32) -> (i32, i32) {
    %c0_i32 = arith.constant 0 : i32
    %c0_i32_0 = arith.constant 0 : i32
    %c0_i32_1 = arith.constant 0 : i32
    return %c0_i32, %c0_i32_0 : i32, i32
  }
  func.func @transform_7(%arg0: i32) -> (i32, i32) {
    %c0_i32 = arith.constant 0 : i32
    %c0_i32_0 = arith.constant 0 : i32
    %c0_i32_1 = arith.constant 0 : i32
    return %c0_i32, %c0_i32_0 : i32, i32
  }
  func.func @transform_8(%arg0: i32) -> (i32, i32) {
    %c0_i32 = arith.constant 0 : i32
    %c0_i32_0 = arith.constant 0 : i32
    %c0_i32_1 = arith.constant 0 : i32
    return %c0_i32, %c0_i32_0 : i32, i32
  }
  func.func @transform_9(%arg0: i32) -> (i32, i32) {
    %c0_i32 = arith.constant 0 : i32
    %c0_i32_0 = arith.constant 0 : i32
    %c0_i32_1 = arith.constant 0 : i32
    return %c0_i32, %c0_i32_0 : i32, i32
  }
  func.func @transform_10(%arg0: i32) -> (i32, i32) {
    %c0_i32 = arith.constant 0 : i32
    %c0_i32_0 = arith.constant 0 : i32
    %c0_i32_1 = arith.constant 0 : i32
    return %c0_i32, %c0_i32_0 : i32, i32
  }
  func.func @transform_11(%arg0: i32) -> (i32, i32) {
    %c0_i32 = arith.constant 0 : i32
    %c0_i32_0 = arith.constant 0 : i32
    return %arg0, %c0_i32 : i32, i32
  }
}

module attributes {stable_mosaic.version = 11 : i64} {
  func.func @_fc_resblock_kernel(%arg0: i32, %arg1: memref<128x512xbf16, #tpu.memory_space<vmem>>, %arg2: memref<512x128xbf16, #tpu.memory_space<vmem>>, %arg3: memref<1x128xf32, #tpu.memory_space<vmem>>, %arg4: memref<128x256xbf16, #tpu.memory_space<vmem>>, %arg5: memref<1x256xf32, #tpu.memory_space<vmem>>, %arg6: memref<512x256xbf16, #tpu.memory_space<vmem>>, %arg7: memref<1x256xf32, #tpu.memory_space<vmem>>, %arg8: memref<1x128xf32, #tpu.memory_space<vmem>>, %arg9: memref<1x128xf32, #tpu.memory_space<vmem>>, %arg10: memref<1x256xf32, #tpu.memory_space<vmem>>, %arg11: memref<1x256xf32, #tpu.memory_space<vmem>>, %arg12: memref<128x256xf32, #tpu.memory_space<vmem>>) attributes {dimension_semantics = [#tpu.dimension_semantics<parallel>], iteration_bounds = array<i64: 2>, scalar_prefetch = 0 : i64, scratch_operands = 0 : i64, tpu.core_type = #tpu.core_type<tc>, window_params = [{transform_indices = @transform_0, window_bounds = array<i64: 128, 512>}, {pipeline_mode = #tpu.pipeline_mode<synchronous>, transform_indices = @transform_1, window_bounds = array<i64: 512, 128>}, {pipeline_mode = #tpu.pipeline_mode<synchronous>, transform_indices = @transform_2, window_bounds = array<i64: 1, 128>}, {pipeline_mode = #tpu.pipeline_mode<synchronous>, transform_indices = @transform_3, window_bounds = array<i64: 128, 256>}, {pipeline_mode = #tpu.pipeline_mode<synchronous>, transform_indices = @transform_4, window_bounds = array<i64: 1, 256>}, {pipeline_mode = #tpu.pipeline_mode<synchronous>, transform_indices = @transform_5, window_bounds = array<i64: 512, 256>}, {pipeline_mode = #tpu.pipeline_mode<synchronous>, transform_indices = @transform_6, window_bounds = array<i64: 1, 256>}, {pipeline_mode = #tpu.pipeline_mode<synchronous>, transform_indices = @transform_7, window_bounds = array<i64: 1, 128>}, {pipeline_mode = #tpu.pipeline_mode<synchronous>, transform_indices = @transform_8, window_bounds = array<i64: 1, 128>}, {pipeline_mode = #tpu.pipeline_mode<synchronous>, transform_indices = @transform_9, window_bounds = array<i64: 1, 256>}, {pipeline_mode = #tpu.pipeline_mode<synchronous>, transform_indices = @transform_10, window_bounds = array<i64: 1, 256>}, {transform_indices = @transform_11, window_bounds = array<i64: 128, 256>}]} {
    %c0 = arith.constant 0 : index
    %c0_0 = arith.constant 0 : index
    %0 = vector.load %arg1[%c0, %c0_0] : memref<128x512xbf16, #tpu.memory_space<vmem>>, vector<128x512xbf16>
    %c0_1 = arith.constant 0 : index
    %c0_2 = arith.constant 0 : index
    %1 = vector.load %arg2[%c0_1, %c0_2] : memref<512x128xbf16, #tpu.memory_space<vmem>>, vector<512x128xbf16>
    %cst = arith.constant dense<0.000000e+00> : vector<128x128xf32>
    %2 = tpu.matmul %0, %1, %cst {dimension_numbers = #tpu.dot_dimension_numbers<[1], [0], [0], [1], [0, 0, 1, 1], [], []>} : vector<128x512xbf16>, vector<512x128xbf16>, vector<128x128xf32> -> vector<128x128xf32>
    %c0_3 = arith.constant 0 : index
    %c0_4 = arith.constant 0 : index
    %3 = vector.load %arg3[%c0_3, %c0_4] : memref<1x128xf32, #tpu.memory_space<vmem>>, vector<1x128xf32>
    %4 = vector.broadcast %3 : vector<1x128xf32> to vector<128x128xf32>
    %5 = arith.addf %2, %4 : vector<128x128xf32>
    %c0_5 = arith.constant 0 : index
    %c0_6 = arith.constant 0 : index
    %6 = vector.load %arg8[%c0_5, %c0_6] : memref<1x128xf32, #tpu.memory_space<vmem>>, vector<1x128xf32>
    %c0_7 = arith.constant 0 : index
    %c0_8 = arith.constant 0 : index
    %7 = vector.load %arg9[%c0_7, %c0_8] : memref<1x128xf32, #tpu.memory_space<vmem>>, vector<1x128xf32>
    %cst_9 = arith.constant dense<0.000000e+00> : vector<128xf32>
    %8 = vector.multi_reduction <add>, %5, %cst_9 [1] : vector<128x128xf32> to vector<128xf32>
    %9 = vector.shape_cast %8 : vector<128xf32> to vector<128x1xf32>
    %cst_10 = arith.constant 1.280000e+02 : f32
    %10 = vector.broadcast %cst_10 : f32 to vector<128x1xf32>
    %11 = arith.divf %9, %10 : vector<128x1xf32>
    %12 = vector.broadcast %11 : vector<128x1xf32> to vector<128x128xf32>
    %13 = arith.subf %5, %12 : vector<128x128xf32>
    %14 = arith.mulf %13, %13 : vector<128x128xf32>
    %cst_11 = arith.constant dense<0.000000e+00> : vector<128xf32>
    %15 = vector.multi_reduction <add>, %14, %cst_11 [1] : vector<128x128xf32> to vector<128xf32>
    %16 = vector.shape_cast %15 : vector<128xf32> to vector<128x1xf32>
    %cst_12 = arith.constant 1.280000e+02 : f32
    %17 = vector.broadcast %cst_12 : f32 to vector<128x1xf32>
    %18 = arith.divf %16, %17 : vector<128x1xf32>
    %cst_13 = arith.constant 9.99999974E-6 : f32
    %19 = vector.broadcast %cst_13 : f32 to vector<128x1xf32>
    %20 = arith.addf %18, %19 : vector<128x1xf32>
    %21 = math.rsqrt %20 : vector<128x1xf32>
    %22 = vector.broadcast %21 : vector<128x1xf32> to vector<128x128xf32>
    %23 = arith.mulf %13, %22 : vector<128x128xf32>
    %24 = vector.broadcast %6 : vector<1x128xf32> to vector<128x128xf32>
    %25 = arith.mulf %23, %24 : vector<128x128xf32>
    %26 = vector.broadcast %7 : vector<1x128xf32> to vector<128x128xf32>
    %27 = arith.addf %25, %26 : vector<128x128xf32>
    %cst_14 = arith.constant 0.000000e+00 : f32
    %28 = vector.broadcast %cst_14 : f32 to vector<128x128xf32>
    %29 = arith.cmpf ogt, %27, %28 : vector<128x128xf32>
    %cst_15 = arith.constant 0.00999999977 : f32
    %30 = vector.broadcast %cst_15 : f32 to vector<128x128xf32>
    %31 = arith.mulf %30, %27 : vector<128x128xf32>
    %32 = arith.select %29, %27, %31 : vector<128x128xi1>, vector<128x128xf32>
    %c0_16 = arith.constant 0 : index
    %c0_17 = arith.constant 0 : index
    %33 = vector.load %arg6[%c0_16, %c0_17] : memref<512x256xbf16, #tpu.memory_space<vmem>>, vector<512x256xbf16>
    %cst_18 = arith.constant dense<0.000000e+00> : vector<128x256xf32>
    %34 = tpu.matmul %0, %33, %cst_18 {dimension_numbers = #tpu.dot_dimension_numbers<[1], [0], [0], [1], [0, 0, 1, 1], [], []>} : vector<128x512xbf16>, vector<512x256xbf16>, vector<128x256xf32> -> vector<128x256xf32>
    %c0_19 = arith.constant 0 : index
    %c0_20 = arith.constant 0 : index
    %35 = vector.load %arg7[%c0_19, %c0_20] : memref<1x256xf32, #tpu.memory_space<vmem>>, vector<1x256xf32>
    %36 = vector.broadcast %35 : vector<1x256xf32> to vector<128x256xf32>
    %37 = arith.addf %34, %36 : vector<128x256xf32>
    %38 = arith.truncf %32 : vector<128x128xf32> to vector<128x128xbf16>
    %c0_21 = arith.constant 0 : index
    %c0_22 = arith.constant 0 : index
    %39 = vector.load %arg4[%c0_21, %c0_22] : memref<128x256xbf16, #tpu.memory_space<vmem>>, vector<128x256xbf16>
    %cst_23 = arith.constant dense<0.000000e+00> : vector<128x256xf32>
    %40 = tpu.matmul %38, %39, %cst_23 {dimension_numbers = #tpu.dot_dimension_numbers<[1], [0], [0], [1], [0, 0, 1, 1], [], []>} : vector<128x128xbf16>, vector<128x256xbf16>, vector<128x256xf32> -> vector<128x256xf32>
    %c0_24 = arith.constant 0 : index
    %c0_25 = arith.constant 0 : index
    %41 = vector.load %arg5[%c0_24, %c0_25] : memref<1x256xf32, #tpu.memory_space<vmem>>, vector<1x256xf32>
    %42 = vector.broadcast %41 : vector<1x256xf32> to vector<128x256xf32>
    %43 = arith.addf %40, %42 : vector<128x256xf32>
    %44 = arith.addf %43, %37 : vector<128x256xf32>
    %c0_26 = arith.constant 0 : index
    %c0_27 = arith.constant 0 : index
    %45 = vector.load %arg10[%c0_26, %c0_27] : memref<1x256xf32, #tpu.memory_space<vmem>>, vector<1x256xf32>
    %c0_28 = arith.constant 0 : index
    %c0_29 = arith.constant 0 : index
    %46 = vector.load %arg11[%c0_28, %c0_29] : memref<1x256xf32, #tpu.memory_space<vmem>>, vector<1x256xf32>
    %cst_30 = arith.constant dense<0.000000e+00> : vector<128xf32>
    %47 = vector.multi_reduction <add>, %44, %cst_30 [1] : vector<128x256xf32> to vector<128xf32>
    %48 = vector.shape_cast %47 : vector<128xf32> to vector<128x1xf32>
    %cst_31 = arith.constant 2.560000e+02 : f32
    %49 = vector.broadcast %cst_31 : f32 to vector<128x1xf32>
    %50 = arith.divf %48, %49 : vector<128x1xf32>
    %51 = vector.broadcast %50 : vector<128x1xf32> to vector<128x256xf32>
    %52 = arith.subf %44, %51 : vector<128x256xf32>
    %53 = arith.mulf %52, %52 : vector<128x256xf32>
    %cst_32 = arith.constant dense<0.000000e+00> : vector<128xf32>
    %54 = vector.multi_reduction <add>, %53, %cst_32 [1] : vector<128x256xf32> to vector<128xf32>
    %55 = vector.shape_cast %54 : vector<128xf32> to vector<128x1xf32>
    %cst_33 = arith.constant 2.560000e+02 : f32
    %56 = vector.broadcast %cst_33 : f32 to vector<128x1xf32>
    %57 = arith.divf %55, %56 : vector<128x1xf32>
    %cst_34 = arith.constant 9.99999974E-6 : f32
    %58 = vector.broadcast %cst_34 : f32 to vector<128x1xf32>
    %59 = arith.addf %57, %58 : vector<128x1xf32>
    %60 = math.rsqrt %59 : vector<128x1xf32>
    %61 = vector.broadcast %60 : vector<128x1xf32> to vector<128x256xf32>
    %62 = arith.mulf %52, %61 : vector<128x256xf32>
    %63 = vector.broadcast %45 : vector<1x256xf32> to vector<128x256xf32>
    %64 = arith.mulf %62, %63 : vector<128x256xf32>
    %65 = vector.broadcast %46 : vector<1x256xf32> to vector<128x256xf32>
    %66 = arith.addf %64, %65 : vector<128x256xf32>
    %cst_35 = arith.constant 0.000000e+00 : f32
    %67 = vector.broadcast %cst_35 : f32 to vector<128x256xf32>
    %68 = arith.cmpf ogt, %66, %67 : vector<128x256xf32>
    %cst_36 = arith.constant 0.00999999977 : f32
    %69 = vector.broadcast %cst_36 : f32 to vector<128x256xf32>
    %70 = arith.mulf %69, %66 : vector<128x256xf32>
    %71 = arith.select %68, %66, %70 : vector<128x256xi1>, vector<128x256xf32>
    %c0_37 = arith.constant 0 : index
    %c0_38 = arith.constant 0 : index
    %72 = vector.load %arg12[%c0_37, %c0_38] : memref<128x256xf32, #tpu.memory_space<vmem>>, vector<128x256xf32>
    tpu.vector_store %arg12[%c0_37, %c0_38], %71 {strides = array<i32>} : memref<128x256xf32, #tpu.memory_space<vmem>>, vector<128x256xf32>,
    return
  }
  func.func @transform_0(%arg0: i32) -> (i32, i32) {
    %c0_i32 = arith.constant 0 : i32
    %c0_i32_0 = arith.constant 0 : i32
    return %arg0, %c0_i32 : i32, i32
  }
  func.func @transform_1(%arg0: i32) -> (i32, i32) {
    %c0_i32 = arith.constant 0 : i32
    %c0_i32_0 = arith.constant 0 : i32
    %c0_i32_1 = arith.constant 0 : i32
    return %c0_i32, %c0_i32_0 : i32, i32
  }
  func.func @transform_2(%arg0: i32) -> (i32, i32) {
    %c0_i32 = arith.constant 0 : i32
    %c0_i32_0 = arith.constant 0 : i32
    %c0_i32_1 = arith.constant 0 : i32
    return %c0_i32, %c0_i32_0 : i32, i32
  }
  func.func @transform_3(%arg0: i32) -> (i32, i32) {
    %c0_i32 = arith.constant 0 : i32
    %c0_i32_0 = arith.constant 0 : i32
    %c0_i32_1 = arith.constant 0 : i32
    return %c0_i32, %c0_i32_0 : i32, i32
  }
  func.func @transform_4(%arg0: i32) -> (i32, i32) {
    %c0_i32 = arith.constant 0 : i32
    %c0_i32_0 = arith.constant 0 : i32
    %c0_i32_1 = arith.constant 0 : i32
    return %c0_i32, %c0_i32_0 : i32, i32
  }
  func.func @transform_5(%arg0: i32) -> (i32, i32) {
    %c0_i32 = arith.constant 0 : i32
    %c0_i32_0 = arith.constant 0 : i32
    %c0_i32_1 = arith.constant 0 : i32
    return %c0_i32, %c0_i32_0 : i32, i32
  }
  func.func @transform_6(%arg0: i32) -> (i32, i32) {
    %c0_i32 = arith.constant 0 : i32
    %c0_i32_0 = arith.constant 0 : i32
    %c0_i32_1 = arith.constant 0 : i32
    return %c0_i32, %c0_i32_0 : i32, i32
  }
  func.func @transform_7(%arg0: i32) -> (i32, i32) {
    %c0_i32 = arith.constant 0 : i32
    %c0_i32_0 = arith.constant 0 : i32
    %c0_i32_1 = arith.constant 0 : i32
    return %c0_i32, %c0_i32_0 : i32, i32
  }
  func.func @transform_8(%arg0: i32) -> (i32, i32) {
    %c0_i32 = arith.constant 0 : i32
    %c0_i32_0 = arith.constant 0 : i32
    %c0_i32_1 = arith.constant 0 : i32
    return %c0_i32, %c0_i32_0 : i32, i32
  }
  func.func @transform_9(%arg0: i32) -> (i32, i32) {
    %c0_i32 = arith.constant 0 : i32
    %c0_i32_0 = arith.constant 0 : i32
    %c0_i32_1 = arith.constant 0 : i32
    return %c0_i32, %c0_i32_0 : i32, i32
  }
  func.func @transform_10(%arg0: i32) -> (i32, i32) {
    %c0_i32 = arith.constant 0 : i32
    %c0_i32_0 = arith.constant 0 : i32
    %c0_i32_1 = arith.constant 0 : i32
    return %c0_i32, %c0_i32_0 : i32, i32
  }
  func.func @transform_11(%arg0: i32) -> (i32, i32) {
    %c0_i32 = arith.constant 0 : i32
    %c0_i32_0 = arith.constant 0 : i32
    return %arg0, %c0_i32 : i32, i32
  }
}

</mosaic_0001>

<bundles_post_ra>
// kernel: tpu_custom_call.1
= control target key start
LH: loop header
LB: loop body
LE: loop exit
PB: predicated region body
PF: predicated region fallthrough
CT: control target
= control target key end

     0   :  { %s5061_s0 = inlined_call_operand.hbm [shape: bf16[256,512], index: 0, kind: input, shape index: {}]   ;;  %s5062_s1 = inlined_call_operand.hbm [shape: bf16[512,128], index: 1, kind: input, shape index: {}]   ;;  %s5063_s2 = inlined_call_operand.vmem [shape: f32[1,128], index: 2, kind: input, shape index: {}]   ;;  %s5064_s3 = inlined_call_operand.hbm [shape: bf16[128,256], index: 3, kind: input, shape index: {}]   ;;  %s5065_s4 = inlined_call_operand.vmem [shape: f32[1,256], index: 4, kind: input, shape index: {}]   ;;  %s5066_s5 = inlined_call_operand.hbm [shape: bf16[512,256], index: 5, kind: input, shape index: {}]   ;;  %s5067_s6 = inlined_call_operand.vmem [shape: f32[1,256], index: 6, kind: input, shape index: {}]   ;;  %s5068_s7 = inlined_call_operand.vmem [shape: f32[1,128], index: 7, kind: input, shape index: {}]   ;;  %s5069_s8 = inlined_call_operand.vmem [shape: f32[1,128], index: 8, kind: input, shape index: {}]   ;;  %s5070_s9 = inlined_call_operand.vmem [shape: f32[1,256], index: 9, kind: input, shape index: {}]   ;;  %s5071_s10 = inlined_call_operand.vmem [shape: f32[1,256], index: 10, kind: input, shape index: {}]   ;;  %s5072_s11 = inlined_call_operand.hbm [shape: f32[256,256], index: 11, kind: output, shape index: {}]  }
   0x1   :  { %5095 = sst [smem:[#allocation34_spill]] %s5062_s1 }
   0x2   :  { %5096 = sst [smem:[#allocation35_spill]] %s5064_s3 }
   0x3   :  { %5097 = sst [smem:[#allocation36_spill]] %s5066_s5 }
   0x4   :  { %16 = vsyncpa [#allocation3], 0 }
   0x5   :  { %18 = vsyncpa [#allocation3 + $0x1], 0 }
   0x6   :  { %19 = vsyncpa [#allocation6], 0 }
   0x7   :  { %20 = vsyncpa [#allocation9], 0 }
   0x8   :  { %21 = vsyncpa [#allocation4], 0 }
   0x9   :  { %23 = vsyncpa [#allocation4 + $0x1], 0  ;;  %s3767_s17 = smov 0   ;;  %s3769_s18 = smov 0  }
   0xa   :  { %s3771_s19 = smov 0   ;;  %s3773_s20 = smov 0  }
   0xb LB: > { %5098 = sst [smem:[#allocation15_spill]] %s3687_s19  ;;  %s3788_s21 = sadd.s32 4294967295, %s3691_s20   ;;  %s3691_s20 = sphi %s3773_s20, %s5177_s20   ;;  %s3687_s19 = sphi %s3771_s19, %s5174_s19   ;;  %s3683_s18 = sphi %s3769_s18, %s5176_s18   ;;  %s3679_s17 = sphi %s3767_s17, %s5175_s17  }
   0xc   : > { %s2846_s22 = sadd.s32 4294967294, %s3691_s20   ;;  %p49_p0 = scmp.ne.s32.totalorder %s3683_s18, %s3679_s17 }
   0xd   : > { %p5073_p1 = scmp.eq.s32.totalorder %s3788_s21, 0  ;;  %p289_p3 = scmp.eq.s32.totalorder %s2846_s22, 1 }
   0xe   : > { %p2847_p5 = scmp.ge.s32.totalorder %s3691_s20, 1  ;;  %p296_p7 = scmp.lt.s32.totalorder %s3691_s20, 3 }
   0xf   : > { %p3797_p4 = por %p5073_p1, %p49_p0  ;;  %p3802_p6 = por %p289_p3, %p49_p0 }
  0x10   : > { %p3807_p8 = pnand %p2847_p5, %p296_p7  ;;  %s3693_s26 = smov [#allocation5]  }
  0x11   : > { %s5099_s23 = scalar_select %p3797_p4, 1, 0 }
  0x12   : > { %s5100_s24 = scalar_select %p3802_p6, 1, 0 }
  0x13   : > { %s5101_s25 = scalar_select %p3807_p8, 1, 0 }
  0x14   : > { %s308_s27 = sshll.u32 %s3693_s26, 4  ;;  %p3179_p9 = pneg %p3807_p8  ;;  %s309_s27 = int_to_ptr.vmem [resolvable:$true] %s308_s27 }
  0x15   : > { %s3694_s29 = smov [#allocation7]   ;;  %s3524_s12 = scalar_lea.vmem %s309_s27, 4096 }
  0x16   : > { %p3816_p11 = pnand %p3179_p9, %p5073_p1  ;;  %s324_s30 = sshll.u32 %s3694_s29, 4  ;;  %s325_s30 = int_to_ptr.vmem [resolvable:$true] %s324_s30 }
  0x17   : > { %p3525_p13 = scmp.ne.s32.totalorder %s309_s27, %s3524_s12  ;;  %p3532_p5 = scmp.lt.s32.totalorder %s309_s27, %s309_s27 }
  0x18   : > { %p3515_p12 = pneg %p3816_p11  ;;  %p3533_p7 = scmp.lt.s32.totalorder %s3524_s12, %s3524_s12 }
  0x1a   : > { %p3527_p0 = pnand %p3525_p13, %p3515_p12  ;;  %p3534_p10 = por %p3533_p7, %p3532_p5 }
  0x1c   : > { %p3528_p3 = pneg %p3527_p0 }
  0x1e   : > { %p3535_p9 = pnand %p3534_p10, %p3528_p3 }
  0x20   : > { %3538 = shalt.err (!%p3535_p9)
}
  0x21   : > { %s3695_s13 = smov 64   ;;  %s3696_s14 = smov 4  }
  0x22   : > { %s5103_s1 = sld [smem:[#allocation34_spill]]  ;;  %s3550_s22 = scalar_lea.vmem %s325_s30, 2048 }
  0x23   : > { %p3551_p1 = scmp.ne.s32.totalorder %s325_s30, %s3550_s22  ;;  %p3558_p2 = scmp.lt.s32.totalorder %s325_s30, %s325_s30 }
  0x24   : > { %p3559_p6 = scmp.lt.s32.totalorder %s3550_s22, %s3550_s22 }
  0x25   : > { %p3553_p13 = pnand %p3551_p1, %p3515_p12 }
  0x26   : > { %p3560_p5 = por %p3559_p6, %p3558_p2 }
  0x27   : > { %p3554_p0 = pneg %p3553_p13 }
  0x28   : > { %3182 = dma.hbm_to_vmem [thread:$0]  (!%p3816_p11), %s5103_s1, 4096, %s309_s27, [#allocation6], %s3695_s13, %s3695_s13, %s3696_s14  }
  0x29   : > { %p3561_p10 = pnand %p3560_p5, %p3554_p0 }
  0x2b   : > { %3564 = shalt.err (!%p3561_p10)
}
  0x2c   : > { %s3697_s26 = smov 128   ;;  %s3698_s29 = smov 8  }
  0x2d   : > { %s5104_s3 = sld [smem:[#allocation35_spill]]  ;;  %s3699_s27 = smov [#allocation8]  }
  0x2e   : > { %s340_s13 = sshll.u32 %s3699_s27, 4  ;;  %s3839_s14 = sadd.s32 1, %s3691_s20   ;;  %s341_s13 = int_to_ptr.vmem [resolvable:$true] %s340_s13 }
  0x2f   : > { %s3576_s16 = scalar_lea.vmem %s341_s13, 8192  ;;  %p3584_p3 = scmp.lt.s32.totalorder %s341_s13, %s341_s13 }
  0x30   : > { %p3577_p1 = scmp.ne.s32.totalorder %s341_s13, %s3576_s16  ;;  %p3585_p7 = scmp.lt.s32.totalorder %s3576_s16, %s3576_s16 }
  0x32   : > { %p3579_p2 = pnand %p3577_p1, %p3515_p12  ;;  %p3586_p9 = por %p3585_p7, %p3584_p3 }
  0x33   : > { %3185 = dma.hbm_to_vmem [thread:$0]  (!%p3816_p11), %s5104_s3, 2048, %s325_s30, [#allocation6], %s3697_s26, %s3697_s26, %s3698_s29  }
  0x34   : > { %p3580_p6 = pneg %p3579_p2 }
  0x36   : > { %p3587_p13 = pnand %p3586_p9, %p3580_p6 }
  0x38   : > { %3590 = shalt.err (!%p3587_p13)
}
  0x39   : > { %s5105_s5 = sld [smem:[#allocation36_spill]]  ;;  %s33_s12 = ssub.s32 %s3691_s20, %s3839_s14 }
  0x3a   : > { %s36_s15 = sadd.s32 1, %s3687_s19  ;;  %p34_p12 = scmp.eq.s32.totalorder %s33_s12, 0 }
  0x3b   : > { %p43_p0 = scmp.ne.s32.totalorder %s3687_s19, %s3683_s18  ;;  %p44_p5 = scmp.eq.s32.totalorder %s3691_s20, 0 }
  0x3c   : > { %p3200_p10 = scmp.lt.s32.totalorder %s3691_s20, 2  ;;  %p5107_p2 = scmp.eq.s32.totalorder %s3788_s21, 1 }
  0x3d   : > { %s3857_s28 = scalar_select %p34_p12, %s3687_s19, %s36_s15  }
  0x3e   : > { %p45_p1 = por %p44_p5, %p43_p0  ;;  %p3861_p6 = por %p5107_p2, %p43_p0 }
  0x3f   : > { %3188 = dma.hbm_to_vmem [thread:$0]  (!%p3816_p11), %s5105_s5, 8192, %s341_s13, [#allocation9], %s3697_s26, %s3697_s26, %s3698_s29  }
  0x40   : > { %5106 = sst [smem:[#allocation16_spill]] %s3857_s28  ;;  %s369_s16 = sand.u32 1, %s3687_s19  }
  0x41   : > { %s5108_s27 = scalar_select %p3861_p6, 1, 0 }
  0x42   : > { %s3016_s22 = sshll.u32 %s3691_s20, 12  ;;  %s2852_s30 = sshll.u32 %s369_s16, 8 }
  0x43   : > { %s3870_s26 = scalar_lea.hbm %s5061_s0, %s3016_s22  ;;  %s373_s29 = scalar_lea.vmem [#allocation2], %s2852_s30 }
  0x44   : > { %s381_s13 = sshll.u32 %s373_s29, 4  ;;  %p3872_p11 = pnand %p3200_p10, %p45_p1  ;;  %s3876_s13 = int_to_ptr.vmem [resolvable:$true] %s381_s13 }
  0x45   : > { %s3878_s15 = scalar_lea.sflag [#allocation3], %s369_s16  ;;  %s3591_s5 = scalar_lea.hbm %s3870_s26, 4096 }
  0x46   : > { %p3592_p3 = scmp.ne.s32.totalorder %s3870_s26, %s3591_s5  ;;  %p3593_p7 = pneg %p3872_p11 }
  0x47   : > { %s3596_s22 = scalar_lea.hbm %s5061_s0, 8192  ;;  %p3597_p12 = scmp.lt.s32.totalorder %s3870_s26, %s5061_s0 }
  0x48   : > { %p3594_p9 = pnand %p3593_p7, %p3592_p3  ;;  %p3598_p0 = scmp.lt.s32.totalorder %s3596_s22, %s3591_s5 }
  0x4a   : > { %p3595_p13 = pneg %p3594_p9  ;;  %p3599_p5 = por %p3598_p0, %p3597_p12 }
  0x4c   : > { %p3600_p10 = pnand %p3599_p5, %p3595_p13 }
  0x4e   : > { %3603 = shalt.err (!%p3600_p10)
}
  0x4f   : > { %s3604_s16 = scalar_lea.vmem %s3876_s13, 4096  ;;  %s3700_s28 = smov [#allocation2]  }
  0x50   : > { %p3605_p1 = scmp.ne.s32.totalorder %s3876_s13, %s3604_s16  ;;  %s3609_s19 = sshll.u32 %s3700_s28, 4  ;;  %s3610_s19 = int_to_ptr.vmem [resolvable:$false] %s3609_s19 }
  0x51   : > { %s3611_s1 = scalar_lea.vmem %s3610_s19, 8192  ;;  %p3612_p9 = scmp.lt.s32.totalorder %s3876_s13, %s3610_s19 }
  0x52   : > { %p3607_p2 = pnand %p3605_p1, %p3593_p7  ;;  %p3613_p6 = scmp.lt.s32.totalorder %s3611_s1, %s3604_s16 }
  0x54   : > { %p3608_p3 = pneg %p3607_p2  ;;  %p3614_p4 = por %p3613_p6, %p3612_p9 }
  0x56   : > { %p3615_p8 = pnand %p3614_p4, %p3608_p3 }
  0x58   : > { %3618 = shalt.err (!%p3615_p8)
}
  0x59   : > { %s3701_s5 = smov 256   ;;  %s3702_s3 = smov 16  }
  0x5a   : > { %3192 = dma.hbm_to_vmem [thread:$0]  (!%p3872_p11), %s3870_s26, 4096, %s3876_s13, %s3878_s15, %s3701_s5, %s3701_s5, %s3702_s3  }
  0x5b   : > { %p5110_p7 = scmp.ne.s32.totalorder %s5101_s25, 0 }
  0x5d   : > { %393 = sbr.rel (%p5110_p7) target bundleno = 1272 (0x4f8), region = 64 }
  0x62   : > { %s3902_s28 = sand.u32 1, %s3683_s18   ;;  %p5111_p4 = scmp.ne.s32.totalorder %s5099_s23, 0 }
  0x63   : > { %s2857_s19 = sshll.u32 %s3902_s28, 8  ;;  %s396_s22 = scalar_lea.sflag [#allocation3], %s3902_s28 }
  0x64   : > { %s3908_s30 = scalar_lea.vmem [#allocation2], %s2857_s19 }
  0x65   : > { %3662 = dma.done.wait (%p5111_p4), %s396_s22, 4096  }
  0x66   : > { %3664 = vsyncadd (%p5111_p4), %s396_s22, 4294963200  ;;  %p5112_p8 = scmp.eq.s32.totalorder %s3788_s21, 0 }
  0x68   : > { %3666 = dma.done.wait (%p5112_p8), [#allocation6], 6144   ;;  %p5113_p6 = pmov %p5112_p8 }
  0x6a   : > { %3668 = vsyncadd (%p5113_p6), [#allocation6], 4294961152  ;;  %p5114_p11 = pmov %p5113_p6 }
  0x6b   : > { %p5115_p13 = pmov %p5113_p6 }
  0x6c   : > { %3670 = dma.done.wait (%p5114_p11), [#allocation9], 8192  }
  0x6d   : > { %3672 = vsyncadd (%p5115_p13), [#allocation9], 4294959104  ;;  %v3249_v0 = vld [vmem:[#allocation5 + $0x78] sm:$0xff]   ;;  %v3253_v4 = vld [vmem:[#allocation5 + $0x70] sm:$0xff]   ;;  %s4891_s25 = scalar_lea.vmem [#allocation10], %s2857_s19  ;;  %s3018_s19 = sshll.u32 %s3788_s21, 12 }
  0x6e   : > { %v3250_v1 = vld [vmem:[#allocation5 + $0xf8] sm:$0xff]   ;;  %3019 = vmatprep.subr.bf16.mxu0 %v3249_v0  ;;  %v3254_v5 = vld [vmem:[#allocation5 + $0xf0] sm:$0xff]   ;;  %v3257_v8 = vld [vmem:[#allocation5 + $0x68] sm:$0xff]   ;;  %s2744_s26 = sshll.u32 %s4891_s25, 4  ;;  %s5014_s12 = scalar_lea.hbm %s5072_s11, %s3018_s19  ;;  %s5016_s26 = int_to_ptr.vmem [resolvable:$true] %s2744_s26 }
  0x6f   : > { %v3251_v2 = vld [vmem:[#allocation5 + $0x38] sm:$0xff]   ;;  %3083 = vmatprep.subr.bf16.mxu1 %v3250_v1  ;;  %v3255_v6 = vld [vmem:[#allocation5 + $0x30] sm:$0xff]   ;;  %v3258_v9 = vld [vmem:[#allocation5 + $0xe8] sm:$0xff]   ;;  %s2730_s15 = scalar_lea.sflag [#allocation4], %s3902_s28  ;;  %s3619_s29 = scalar_lea.vmem %s5016_s26, 4096 }
  0x70   : > { %v3252_v3 = vld [vmem:[#allocation5 + $0xb8] sm:$0xff]   ;;  %3020 = vmatpush3.bf16.msra.mxu0 %v3251_v2  ;;  %v3256_v7 = vld [vmem:[#allocation5 + $0xb0] sm:$0xff]   ;;  %v3259_v10 = vld [vmem:[#allocation5 + $0x28] sm:$0xff]   ;;  %p3620_p12 = scmp.ne.s32.totalorder %s5016_s26, %s3619_s29  ;;  %p5170_p0 = scmp.ne.s32.totalorder %s5108_s27, 0 }
  0x71   : > { %3084 = vmatpush3.bf16.msra.mxu1 %v3252_v3  ;;  %3021 = vmatprep.subr.bf16.mxu0 %v3253_v4  ;;  %v3260_v11 = vld [vmem:[#allocation5 + $0xa8] sm:$0xff]   ;;  %v3261_v12 = vld [vmem:[#allocation5 + $0x60] sm:$0xff]   ;;  %v3265_v16 = vld [vmem:[#allocation5 + $0x58] sm:$0xff]   ;;  %s3704_s16 = smov [#allocation10]  }
  0x72   : > { %3085 = vmatprep.subr.bf16.mxu1 %v3254_v5  ;;  %v3262_v13 = vld [vmem:[#allocation5 + $0xe0] sm:$0xff]   ;;  %v3266_v17 = vld [vmem:[#allocation5 + $0xd8] sm:$0xff]   ;;  %v3269_v20 = vld [vmem:[#allocation5 + $0x50] sm:$0xff]   ;;  %p3621_p5 = pnand %p3620_p12, %p5170_p0  ;;  %s3623_s1 = sshll.u32 %s3704_s16, 4  ;;  %s3624_s1 = int_to_ptr.vmem [resolvable:$false] %s3623_s1 }
  0x73   : > { %v3263_v14 = vld [vmem:[#allocation5 + $0x20] sm:$0xff]   ;;  %v3267_v18 = vld [vmem:[#allocation5 + $0x18] sm:$0xff]   ;;  %v3270_v21 = vld [vmem:[#allocation5 + $0xd0] sm:$0xff]   ;;  %s3625_s5 = scalar_lea.vmem %s3624_s1, 8192  ;;  %p3626_p1 = scmp.lt.s32.totalorder %s5016_s26, %s3624_s1 }
  0x74   : > { %3022 = vmatpush3.bf16.msra.mxu0 %v3255_v6  ;;  %v3264_v15 = vld [vmem:[#allocation5 + $0xa0] sm:$0xff]   ;;  %v3268_v19 = vld [vmem:[#allocation5 + $0x98] sm:$0xff]   ;;  %v3271_v22 = vld [vmem:[#allocation5 + $0x10] sm:$0xff]   ;;  %p3622_p10 = pneg %p3621_p5  ;;  %p3627_p2 = scmp.lt.s32.totalorder %s3625_s5, %s3619_s29 }
  0x75   : > { %3086 = vmatpush3.bf16.msra.mxu1 %v3256_v7  ;;  %3023 = vmatprep.subr.bf16.mxu0 %v3257_v8  ;;  %v3272_v23 = vld [vmem:[#allocation5 + $0x90] sm:$0xff]   ;;  %v3273_v24 = vld [vmem:[#allocation5 + $0x48] sm:$0xff]   ;;  %v3277_v28 = vld [vmem:[#allocation5 + $0x40] sm:$0xff]  }
  0x76   : > { %3087 = vmatprep.subr.bf16.mxu1 %v3258_v9  ;;  %v3274_v25 = vld [vmem:[#allocation5 + $0xc8] sm:$0xff]   ;;  %v3278_v29 = vld [vmem:[#allocation5 + $0xc0] sm:$0xff]   ;;  %p3628_p3 = por %p3627_p2, %p3626_p1 }
  0x77   : > { %v3275_v26 = vld [vmem:[#allocation5 + $0x8] sm:$0xff]   ;;  %v3279_v30 = vld [vmem:[#allocation5] sm:$0xff]  }
  0x78   : > { %3024 = vmatpush3.bf16.msra.mxu0 %v3259_v10  ;;  %v3276_v27 = vld [vmem:[#allocation5 + $0x88] sm:$0xff]   ;;  %v3280_v31 = vld [vmem:[#allocation5 + $0x80] sm:$0xff]   ;;  %p3629_p9 = pnand %p3628_p3, %p3622_p10 }
  0x79   : > { %3088 = vmatpush3.bf16.msra.mxu1 %v3260_v11  ;;  %3025 = vmatprep.subr.bf16.mxu0 %v3261_v12  ;;  %v3923_v32 = vld [vmem:[%s3908_s30] ss:$16 sps:$4 sm:$0xff]   ;;  %v3283_v33 = vld [vmem:[%s3908_s30 + $0x4] ss:$16 sps:$4 sm:$0xff]   ;;  %v3927_v34 = vld [vmem:[%s3908_s30 + $0x8] ss:$16 sps:$4 sm:$0xff]  }
  0x7a   : > { %3089 = vmatprep.subr.bf16.mxu1 %v3262_v13  ;;  %v3286_v35 = vld [vmem:[%s3908_s30 + $0xc] ss:$16 sps:$4 sm:$0xff]   ;;  %940 = vmatprep.mubr.bf16.mxu0 %v3283_v33  ;;  %v3931_v36 = vld [vmem:[%s3908_s30 + $0x24] ss:$16 sps:$4 sm:$0xff]   ;;  %v3941_v38 = vld [vmem:[%s3908_s30 + $0x20] ss:$16 sps:$4 sm:$0xff]  }
  0x7b   : > { %1037 = vmatprep.mubr.bf16.mxu1 %v3286_v35  ;;  %v3935_v37 = vld [vmem:[%s3908_s30 + $0x2c] ss:$16 sps:$4 sm:$0xff]   ;;  %v3944_v39 = vld [vmem:[%s3908_s30 + $0x28] ss:$16 sps:$4 sm:$0xff]   ;;  %v3947_v40 = vld [vmem:[%s3908_s30 + $0x44] ss:$16 sps:$4 sm:$0xff]  }
  0x7c   : > { %3026 = vmatpush3.bf16.msra.mxu0 %v3263_v14  ;;  %v3950_v41 = vld [vmem:[%s3908_s30 + $0x4c] ss:$16 sps:$4 sm:$0xff]   ;;  %v3957_v42 = vld [vmem:[%s3908_s30 + $0x40] ss:$16 sps:$4 sm:$0xff]   ;;  %v3960_v43 = vld [vmem:[%s3908_s30 + $0x48] ss:$16 sps:$4 sm:$0xff]  }
  0x7d   : > { %3090 = vmatpush3.bf16.msra.mxu1 %v3264_v15  ;;  %3027 = vmatprep.subr.bf16.mxu0 %v3265_v16  ;;  %v3963_v44 = vld [vmem:[%s3908_s30 + $0x64] ss:$16 sps:$4 sm:$0xff]   ;;  %v3966_v45 = vld [vmem:[%s3908_s30 + $0x6c] ss:$16 sps:$4 sm:$0xff]   ;;  %v3973_v46 = vld [vmem:[%s3908_s30 + $0x60] ss:$16 sps:$4 sm:$0xff]  }
  0x7e   : > { %3091 = vmatprep.subr.bf16.mxu1 %v3266_v17  ;;  %v3976_v47 = vld [vmem:[%s3908_s30 + $0x68] ss:$16 sps:$4 sm:$0xff]   ;;  %v3979_v48 = vld [vmem:[%s3908_s30 + $0x84] ss:$16 sps:$4 sm:$0xff]   ;;  %v3982_v49 = vld [vmem:[%s3908_s30 + $0x8c] ss:$16 sps:$4 sm:$0xff]  }
  0x7f   : > { %v3989_v50 = vld [vmem:[%s3908_s30 + $0x80] ss:$16 sps:$4 sm:$0xff]   ;;  %v3992_v51 = vld [vmem:[%s3908_s30 + $0x88] ss:$16 sps:$4 sm:$0xff]   ;;  %v3995_v52 = vld [vmem:[%s3908_s30 + $0xa4] ss:$16 sps:$4 sm:$0xff]  }
  0x80   : > { %3028 = vmatpush3.bf16.msra.mxu0 %v3267_v18  ;;  %5116 = vst [vmem:[#allocation17_spill] sm:$0xff] %v3992_v51  ;;  %v3998_v53 = vld [vmem:[%s3908_s30 + $0xac] ss:$16 sps:$4 sm:$0xff]   ;;  %v4005_v54 = vld [vmem:[%s3908_s30 + $0xa0] ss:$16 sps:$4 sm:$0xff]  }
  0x81   : > { %3092 = vmatpush3.bf16.msra.mxu1 %v3268_v19  ;;  %3029 = vmatprep.subr.bf16.mxu0 %v3269_v20  ;;  %5117 = vst [vmem:[#allocation18_spill] sm:$0xff] %v3998_v53  ;;  %v4008_v55 = vld [vmem:[%s3908_s30 + $0xa8] ss:$16 sps:$4 sm:$0xff]   ;;  %v4011_v56 = vld [vmem:[%s3908_s30 + $0xc4] ss:$16 sps:$4 sm:$0xff]  }
  0x82   : > { %3093 = vmatprep.subr.bf16.mxu1 %v3270_v21  ;;  %5118 = vst [vmem:[#allocation19_spill] sm:$0xff] %v4008_v55  ;;  %v4014_v57 = vld [vmem:[%s3908_s30 + $0xcc] ss:$16 sps:$4 sm:$0xff]   ;;  %v4021_v58 = vld [vmem:[%s3908_s30 + $0xc0] ss:$16 sps:$4 sm:$0xff]  }
  0x83   : > { %5119 = vst [vmem:[#allocation20_spill] sm:$0xff] %v4014_v57  ;;  %v4024_v59 = vld [vmem:[%s3908_s30 + $0xc8] ss:$16 sps:$4 sm:$0xff]   ;;  %v4027_v60 = vld [vmem:[%s3908_s30 + $0xe4] ss:$16 sps:$4 sm:$0xff]  }
  0x84   : > { %3030 = vmatpush3.bf16.msra.mxu0 %v3271_v22  ;;  %5120 = vst [vmem:[#allocation21_spill] sm:$0xff] %v4024_v59  ;;  %5121 = vst [vmem:[#allocation22_spill] sm:$0xff] %v4027_v60  ;;  %v4030_v61 = vld [vmem:[%s3908_s30 + $0xec] ss:$16 sps:$4 sm:$0xff]   ;;  %v4037_v62 = vld [vmem:[%s3908_s30 + $0xe0] ss:$16 sps:$4 sm:$0xff]  }
  0x85   : > { %3094 = vmatpush3.bf16.msra.mxu1 %v3272_v23  ;;  %3031 = vmatprep.subr.bf16.mxu0 %v3273_v24  ;;  %5122 = vst [vmem:[#allocation23_spill] sm:$0xff] %v4030_v61  ;;  %5123 = vst [vmem:[#allocation24_spill] sm:$0xff] %v4037_v62  ;;  %v4040_v63 = vld [vmem:[%s3908_s30 + $0xe8] ss:$16 sps:$4 sm:$0xff]   ;;  %v4047_v2 = vld [vmem:[%s5063_s2] ss:$0 sm:$0xff] }
  0x86   : > { %3095 = vmatprep.subr.bf16.mxu1 %v3274_v25  ;;  %5124 = vst [vmem:[#allocation25_spill] sm:$0xff] %v4040_v63 }
  0x88   : > { %3032 = vmatpush3.bf16.msra.mxu0 %v3275_v26 }
  0x89   : > { %3096 = vmatpush3.bf16.msra.mxu1 %v3276_v27  ;;  %3033 = vmatprep.subr.bf16.mxu0 %v3277_v28 }
  0x8a   : > { %3097 = vmatprep.subr.bf16.mxu1 %v3278_v29 }
  0x8c   : > { %3034 = vmatpush3.bf16.msra.mxu0 %v3279_v30 }
  0x8d   : > { %3098 = vmatpush3.bf16.msra.mxu1 %v3280_v31 }
  0x8f   : > { %941 = vmatmul.mubr.bf16.vlgmr.msra.gmra.mxu0 %v3923_v32 }
  0x90   : > { %1038 = vmatmul.mubr.bf16.vlgmr.msra.gmra.mxu1 %v3927_v34  ;;  %948 = vmatprep.mubr.bf16.mxu0 %v3931_v36 }
  0x91   : > { %1045 = vmatprep.mubr.bf16.mxu1 %v3935_v37 }
  0x97   : > { %949 = vmatmul.mubr.bf16.gmra.mxu0 %v3941_v38 }
  0x98   : > { %1046 = vmatmul.mubr.bf16.gmra.mxu1 %v3944_v39  ;;  %956 = vmatprep.mubr.bf16.mxu0 %v3947_v40 }
  0x99   : > { %1053 = vmatprep.mubr.bf16.mxu1 %v3950_v41 }
  0x9f   : > { %957 = vmatmul.mubr.bf16.gmra.mxu0 %v3957_v42 }
  0xa0   : > { %1054 = vmatmul.mubr.bf16.gmra.mxu1 %v3960_v43  ;;  %964 = vmatprep.mubr.bf16.mxu0 %v3963_v44 }
  0xa1   : > { %1061 = vmatprep.mubr.bf16.mxu1 %v3966_v45 }
  0xa7   : > { %965 = vmatmul.mubr.bf16.gmra.mxu0 %v3973_v46 }
  0xa8   : > { %1062 = vmatmul.mubr.bf16.gmra.mxu1 %v3976_v47  ;;  %972 = vmatprep.mubr.bf16.mxu0 %v3979_v48 }
  0xa9   : > { %1069 = vmatprep.mubr.bf16.mxu1 %v3982_v49 }
  0xaf   : > { %973 = vmatmul.mubr.bf16.gmra.mxu0 %v3989_v50 }
  0xb0   : > { %1070 = vmatmul.mubr.bf16.gmra.mxu1 %v3992_v51  ;;  %980 = vmatprep.mubr.bf16.mxu0 %v3995_v52 }
  0xb1   : > { %1077 = vmatprep.mubr.bf16.mxu1 %v3998_v53 }
  0xb7   : > { %981 = vmatmul.mubr.bf16.gmra.mxu0 %v4005_v54 }
  0xb8   : > { %1078 = vmatmul.mubr.bf16.gmra.mxu1 %v4008_v55  ;;  %988 = vmatprep.mubr.bf16.mxu0 %v4011_v56 }
  0xb9   : > { %1085 = vmatprep.mubr.bf16.mxu1 %v4014_v57 }
  0xbf   : > { %989 = vmatmul.mubr.bf16.gmra.mxu0 %v4021_v58 }
  0xc0   : > { %1086 = vmatmul.mubr.bf16.gmra.mxu1 %v4024_v59  ;;  %996 = vmatprep.mubr.bf16.mxu0 %v4027_v60 }
  0xc1   : > { %1093 = vmatprep.mubr.bf16.mxu1 %v4030_v61 }
  0xc7   : > { %997 = vmatmul.mubr.bf16.gmra.mxu0 %v4037_v62 }
  0xc8   : > { %1094 = vmatmul.mubr.bf16.gmra.mxu1 %v4040_v63  ;;  %1801 = vmatprep.mubr.bf16.mxu0 %v3283_v33 }
  0xc9   : > { %1914 = vmatprep.mubr.bf16.mxu1 %v3286_v35 }
 0x14f   : > { %v3035_v0 = vpop.f32.mrf.mxu0 }
 0x150   : > { %v3099_v1 = vpop.f32.mrf.mxu1 }
 0x151   : > { %v3036_v3 = vpop.f32.mrf.mxu0 }
 0x152   : > { %v3037_v4 = vadd.f32 %v3036_v3, %v3035_v0  ;;  %v3100_v5 = vpop.f32.mrf.mxu1 }
 0x153   : > { %v3038_v6 = vpop.f32.mrf.mxu0  ;;  %v3101_v8 = vadd.f32 %v3100_v5, %v3099_v1 }
 0x154   : > { %v943_v7 = vadd.f32 %v3037_v4, %v4047_v2  ;;  %v3102_v9 = vpop.f32.mrf.mxu1 }
 0x155   : > { %v3039_v10 = vpop.f32.mrf.mxu0 }
 0x156   : > { %v3040_v11 = vadd.f32 %v3039_v10, %v3038_v6  ;;  %v3103_v12 = vpop.f32.mrf.mxu1  ;;  %v4050_v13 = vadd.f32 %v3101_v8, %v943_v7 }
 0x157   : > { %v3041_v14 = vpop.f32.mrf.mxu0  ;;  %v3104_v16 = vadd.f32 %v3103_v12, %v3102_v9 }
 0x158   : > { %v946_v15 = vadd.f32 %v3040_v11, %v4047_v2  ;;  %v3105_v17 = vpop.f32.mrf.mxu1  ;;  %1104 = vadd.xlane.f32.xlu0 %v4050_v13 }
 0x159   : > { %v3042_v18 = vpop.f32.mrf.mxu0 }
 0x15a   : > { %v3043_v19 = vadd.f32 %v3042_v18, %v3041_v14  ;;  %v3106_v20 = vpop.f32.mrf.mxu1  ;;  %v4054_v21 = vadd.f32 %v3104_v16, %v946_v15 }
 0x15b   : > { %v3044_v22 = vpop.f32.mrf.mxu0  ;;  %v3107_v24 = vadd.f32 %v3106_v20, %v3105_v17 }
 0x15c   : > { %v951_v23 = vadd.f32 %v3043_v19, %v4047_v2  ;;  %v3108_v25 = vpop.f32.mrf.mxu1  ;;  %1106 = vadd.xlane.f32.xlu0 %v4054_v21 }
 0x15d   : > { %v3045_v26 = vpop.f32.mrf.mxu0 }
 0x15e   : > { %v3109_v27 = vpop.f32.mrf.mxu1  ;;  %v4058_v28 = vadd.f32 %v3107_v24, %v951_v23  ;;  %v3046_v63 = vadd.f32 %v3045_v26, %v3044_v22 }
 0x15f   : > { %v3047_v29 = vpop.f32.mrf.mxu0  ;;  %v3110_v26 = vadd.f32 %v3109_v27, %v3108_v25 }
 0x160   : > { %5125 = vst [vmem:[#allocation26_spill] sm:$0xff] %v4058_v28  ;;  %v3111_v30 = vpop.f32.mrf.mxu1  ;;  %1108 = vadd.xlane.f32.xlu0 %v4058_v28 }
 0x161   : > { %v3048_v31 = vpop.f32.mrf.mxu0 }
 0x162   : > { %v3112_v33 = vpop.f32.mrf.mxu1  ;;  %v3049_v28 = vadd.f32 %v3048_v31, %v3047_v29 }
 0x163   : > { %v3050_v35 = vpop.f32.mrf.mxu0 }
 0x164   : > { %v4061_v0 = vpop.f32.mrf.mxu1 }
 0x165   : > { %v3051_v1 = vpop.f32.mrf.mxu0 }
 0x166   : > { %v3115_v3 = vpop.f32.mrf.mxu1 }
 0x167   : > { %v3053_v4 = vpop.f32.mrf.mxu0 }
 0x168   : > { %v4063_v5 = vpop.f32.mrf.mxu1 }
 0x169   : > { %v3054_v6 = vpop.f32.mrf.mxu0 }
 0x16a   : > { %v4065_v7 = vpop.f32.mrf.mxu1 }
 0x16b   : > { %v4067_v8 = vpop.f32.mrf.mxu0 }
 0x16c   : > { %v4069_v9 = vpop.f32.mrf.mxu1 }
 0x16d   : > { %v4071_v10 = vpop.f32.mrf.mxu0 }
 0x16e   : > { %v4073_v11 = vpop.f32.mrf.mxu1 }
 0x16f   : > { %v3059_v12 = vpop.f32.mrf.mxu0 }
 0x170   : > { %v3123_v14 = vpop.f32.mrf.mxu1 }
 0x171   : > { %v3060_v15 = vpop.f32.mrf.mxu0 }
 0x172   : > { %v3061_v16 = vadd.f32 %v3060_v15, %v3059_v12  ;;  %v3124_v17 = vpop.f32.mrf.mxu1  ;;  %v954_v15 = vadd.f32 %v3046_v63, %v4047_v2 }
 0x173   : > { %v3062_v18 = vpop.f32.mrf.mxu0  ;;  %v3125_v20 = vadd.f32 %v3124_v17, %v3123_v14 }
 0x174   : > { %v975_v19 = vadd.f32 %v3061_v16, %v4047_v2  ;;  %v3126_v23 = vpop.f32.mrf.mxu1  ;;  %v4086_v63 = vadd.f32 %v3110_v26, %v954_v15 }
 0x175   : > { %v3063_v24 = vpop.f32.mrf.mxu0 }
 0x176   : > { %v3064_v61 = vadd.f32 %v3063_v24, %v3062_v18  ;;  %v3127_v59 = vpop.f32.mrf.mxu1  ;;  %v4076_v57 = vadd.f32 %v3125_v20, %v975_v19 }
 0x177   : > { %v3065_v55 = vpop.f32.mrf.mxu0  ;;  %v3128_v53 = vadd.f32 %v3127_v59, %v3126_v23  ;;  %v3052_v59 = vadd.f32 %v3051_v1, %v3050_v35  ;;  %v959_v23 = vadd.f32 %v3049_v28, %v4047_v2  ;;  %v3055_v28 = vadd.f32 %v3054_v6, %v3053_v4 }
 0x178   : > { %v978_v62 = vadd.f32 %v3064_v61, %v4047_v2  ;;  %v3129_v51 = vpop.f32.mrf.mxu1  ;;  %1120 = vadd.xlane.f32.xlu1 %v4076_v57  ;;  %v3058_v6 = vadd.f32 %v4071_v10, %v4067_v8 }
 0x179   : > { %v3066_v12 = vpop.f32.mrf.mxu0  ;;  %v967_v4 = vadd.f32 %v3055_v28, %v4047_v2 }
 0x17a   : > { %v3067_v16 = vadd.f32 %v3066_v12, %v3065_v55  ;;  %v3130_v14 = vpop.f32.mrf.mxu1  ;;  %v4081_v17 = vadd.f32 %v3128_v53, %v978_v62  ;;  %v3113_v62 = vadd.f32 %v3112_v33, %v3111_v30  ;;  %v3116_v30 = vadd.f32 %v3115_v3, %v4061_v0 }
 0x17b   : > { %v3068_v22 = vpop.f32.mrf.mxu0  ;;  %v3131_v19 = vadd.f32 %v3130_v14, %v3129_v51  ;;  %v962_v51 = vadd.f32 %v3052_v59, %v4047_v2 }
 0x17c   : > { %v983_v18 = vadd.f32 %v3067_v16, %v4047_v2  ;;  %v3132_v20 = vpop.f32.mrf.mxu1  ;;  %1122 = vadd.xlane.f32.xlu1 %v4081_v17  ;;  %v4096_v15 = vadd.f32 %v3113_v62, %v959_v23 }
 0x17d   : > { %v3069_v61 = vpop.f32.mrf.mxu0  ;;  %v4102_v26 = vadd.f32 %v3116_v30, %v962_v51 }
 0x17e   : > { %v3070_v24 = vadd.f32 %v3069_v61, %v3068_v22  ;;  %v3133_v60 = vpop.f32.mrf.mxu1  ;;  %v4088_v55 = vadd.f32 %v3131_v19, %v983_v18 }
 0x17f   : > { %v3071_v53 = vpop.f32.mrf.mxu0  ;;  %v3134_v27 = vadd.f32 %v3133_v60, %v3132_v20  ;;  %v3119_v20 = vadd.f32 %v4065_v7, %v4063_v5  ;;  %v3122_v5 = vadd.f32 %v4073_v11, %v4069_v9  ;;  %v3331_v11 = vld [vmem:[#allocation8 + $0x74] ss:$8 sps:$4 sm:$0xff]  }
 0x180   : > { %v986_v25 = vadd.f32 %v3070_v24, %v4047_v2  ;;  %v3135_v29 = vpop.f32.mrf.mxu1  ;;  %1110 = vadd.xlane.f32.xlu1 %v4086_v63  ;;  %1124 = vadd.xlane.f32.xlu0 %v4088_v55 }
 0x181   : > { %v3072_v31 = vpop.f32.mrf.mxu0  ;;  %1769 = vmatprep.subr.bf16.mxu0 %v3331_v11  ;;  %v3374_v11 = vld [vmem:[#allocation8 + $0x130] ss:$8 sps:$4 sm:$0xff]  }
 0x182   : > { %v3073_v35 = vadd.f32 %v3072_v31, %v3071_v53  ;;  %v3136_v1 = vpop.f32.mrf.mxu1  ;;  %v4094_v12 = vadd.f32 %v3134_v27, %v986_v25  ;;  %v970_v53 = vadd.f32 %v3058_v6, %v4047_v2  ;;  %v4117_v25 = vadd.f32 %v3119_v20, %v967_v4  ;;  %v3337_v4 = vld [vmem:[#allocation8 + $0x54] ss:$8 sps:$4 sm:$0xff]   ;;  %v3335_v6 = vld [vmem:[#allocation8 + $0x50] ss:$8 sps:$4 sm:$0xff]   ;;  %v3346_v20 = vld [vmem:[#allocation8 + $0x24] ss:$8 sps:$4 sm:$0xff]  }
 0x183   : > { %v3074_v33 = vpop.f32.mrf.mxu0  ;;  %v3137_v16 = vadd.f32 %v3136_v1, %v3135_v29 }
 0x184   : > { %v991_v60 = vadd.f32 %v3073_v35, %v4047_v2  ;;  %v3138_v14 = vpop.f32.mrf.mxu1  ;;  %1126 = vadd.xlane.f32.xlu1 %v4094_v12  ;;  %1112 = vadd.xlane.f32.xlu0 %v4096_v15  ;;  %v4124_v1 = vadd.f32 %v3122_v5, %v970_v53  ;;  %v3358_v53 = vld [vmem:[#allocation8 + $0x164] ss:$8 sps:$4 sm:$0xff]   ;;  %v3362_v5 = vld [vmem:[#allocation8 + $0x150] ss:$8 sps:$4 sm:$0xff]  }
 0x185   : > { %v3075_v22 = vpop.f32.mrf.mxu0 }
 0x186   : > { %v3076_v18 = vadd.f32 %v3075_v22, %v3074_v33  ;;  %v3139_v19 = vpop.f32.mrf.mxu1  ;;  %v4107_v0 = vadd.f32 %v3137_v16, %v991_v60  ;;  %v3329_v16 = vld [vmem:[#allocation8 + $0x70] ss:$8 sps:$4 sm:$0xff]   ;;  %v3332_v22 = vld [vmem:[#allocation8 + $0x60] ss:$8 sps:$4 sm:$0xff]  }
 0x187   : > { %v3077_v3 = vpop.f32.mrf.mxu0  ;;  %v3140_v61 = vadd.f32 %v3139_v19, %v3138_v14  ;;  %1770 = vmatpush1.bf16.msra.mxu0 %v3329_v16  ;;  %v3334_v14 = vld [vmem:[#allocation8 + $0x64] ss:$8 sps:$4 sm:$0xff]   ;;  %v3343_v19 = vld [vmem:[#allocation8 + $0x34] ss:$8 sps:$4 sm:$0xff]   ;;  %v3365_v16 = vld [vmem:[#allocation8 + $0xe0] ss:$8 sps:$4 sm:$0xff]  }
 0x188   : > { %v994_v59 = vadd.f32 %v3076_v18, %v4047_v2  ;;  %1114 = vadd.xlane.f32.xlu1 %v4102_v26  ;;  %1128 = vadd.xlane.f32.xlu0 %v4107_v0  ;;  %v3141_v23 = vpop.f32.mrf.mxu1  ;;  %v3338_v18 = vld [vmem:[#allocation8 + $0x40] ss:$8 sps:$4 sm:$0xff]  }
 0x189   : > { %v3078_v24 = vpop.f32.mrf.mxu0  ;;  %1771 = vmatprep.subr.bf16.mxu0 %v3334_v14  ;;  %v3382_v14 = vld [vmem:[#allocation8 + $0x124] ss:$8 sps:$4 sm:$0xff]  }
 0x18a   : > { %v3079_v8 = vadd.f32 %v3078_v24, %v3077_v3  ;;  %v3142_v10 = vpop.f32.mrf.mxu1  ;;  %v4115_v62 = vadd.f32 %v3140_v61, %v994_v59  ;;  %v3341_v3 = vld [vmem:[#allocation8 + $0x30] ss:$8 sps:$4 sm:$0xff]   ;;  %v3344_v59 = vld [vmem:[#allocation8 + $0x20] ss:$8 sps:$4 sm:$0xff]   ;;  %v3349_v24 = vld [vmem:[#allocation8 + $0x14] ss:$8 sps:$4 sm:$0xff]  }
 0x18b   : > { %v3080_v27 = vpop.f32.mrf.mxu0  ;;  %v3143_v29 = vadd.f32 %v3142_v10, %v3141_v23  ;;  %1772 = vmatpush1.bf16.msra.mxu0 %v3332_v22  ;;  %v3350_v61 = vld [vmem:[#allocation8 + $0x170] ss:$8 sps:$4 sm:$0xff]   ;;  %v3352_v23 = vld [vmem:[#allocation8 + $0x174] ss:$8 sps:$4 sm:$0xff]  }
 0x18c   : > { %v999_v7 = vadd.f32 %v3079_v8, %v4047_v2  ;;  %1130 = vadd.xlane.f32.xlu1 %v4115_v62  ;;  %1116 = vadd.xlane.f32.xlu0 %v4117_v25  ;;  %v3144_v51 = vpop.f32.mrf.mxu1  ;;  %v3356_v8 = vld [vmem:[#allocation8 + $0x160] ss:$8 sps:$4 sm:$0xff]   ;;  %v3347_v10 = vld [vmem:[#allocation8 + $0x10] ss:$8 sps:$4 sm:$0xff]   ;;  %v3373_v22 = vld [vmem:[#allocation8 + $0xd4] ss:$8 sps:$4 sm:$0xff]  }
 0x18d   : > { %v3081_v31 = vpop.f32.mrf.mxu0  ;;  %1773 = vmatprep.subr.bf16.mxu0 %v3337_v4  ;;  %1882 = vmatprep.subr.bf16.mxu1 %v3352_v23  ;;  %v3380_v4 = vld [vmem:[#allocation8 + $0x120] ss:$8 sps:$4 sm:$0xff]   ;;  %v3383_v23 = vld [vmem:[#allocation8 + $0xb0] ss:$8 sps:$4 sm:$0xff]  }
 0x18e   : > { %v3082_v28 = vadd.f32 %v3081_v31, %v3080_v27  ;;  %v3145_v35 = vpop.f32.mrf.mxu1  ;;  %v4126_v30 = vadd.f32 %v3143_v29, %v999_v7  ;;  %1883 = vmatpush1.bf16.msra.mxu1 %v3350_v61  ;;  %v3364_v27 = vld [vmem:[#allocation8 + $0x154] ss:$8 sps:$4 sm:$0xff]   ;;  %v3355_v29 = vld [vmem:[#allocation8 + $0x4] ss:$8 sps:$4 sm:$0xff]   ;;  %v3353_v7 = vld [vmem:[#allocation8] ss:$8 sps:$4 sm:$0xff]  }
 0x18f   : > { %v3146_v33 = vadd.f32 %v3145_v35, %v3144_v51  ;;  %1774 = vmatpush1.bf16.msra.mxu0 %v3335_v6  ;;  %1884 = vmatprep.subr.bf16.mxu1 %v3358_v53  ;;  %v3370_v51 = vld [vmem:[#allocation8 + $0x144] ss:$8 sps:$4 sm:$0xff]   ;;  %v3361_v31 = vld [vmem:[#allocation8 + $0xf4] ss:$8 sps:$4 sm:$0xff]   ;;  %v3359_v35 = vld [vmem:[#allocation8 + $0xf0] ss:$8 sps:$4 sm:$0xff]  }
 0x190   : > { %v1002_v60 = vadd.f32 %v3082_v28, %v4047_v2  ;;  %1118 = vadd.xlane.f32.xlu1 %v4124_v1  ;;  %1132 = vadd.xlane.f32.xlu0 %v4126_v30  ;;  %v3340_v2 = vld [vmem:[#allocation8 + $0x44] ss:$8 sps:$4 sm:$0xff]   ;;  %v3368_v28 = vld [vmem:[#allocation8 + $0x140] ss:$8 sps:$4 sm:$0xff]   ;;  %v3371_v6 = vld [vmem:[#allocation8 + $0xd0] ss:$8 sps:$4 sm:$0xff]  }
 0x191   : > { %1775 = vmatprep.subr.bf16.mxu0 %v3340_v2  ;;  %v3388_v2 = vld [vmem:[#allocation8 + $0x114] ss:$8 sps:$4 sm:$0xff]   ;;  %v3392_v61 = vld [vmem:[#allocation8 + $0x100] ss:$8 sps:$4 sm:$0xff]   ;;  %v3391_v53 = vld [vmem:[#allocation8 + $0xa4] ss:$8 sps:$4 sm:$0xff]  }
 0x192   : > { %v4131_v9 = vadd.f32 %v3146_v33, %v1002_v60  ;;  %1885 = vmatpush1.bf16.msra.mxu1 %v3356_v8  ;;  %v3376_v33 = vld [vmem:[#allocation8 + $0x134] ss:$8 sps:$4 sm:$0xff]   ;;  %v3367_v60 = vld [vmem:[#allocation8 + $0xe4] ss:$8 sps:$4 sm:$0xff]   ;;  %v3398_v8 = vld [vmem:[#allocation8 + $0x1f0] ss:$8 sps:$4 sm:$0xff]  }
 0x193   : > { %1776 = vmatpush1.bf16.msra.mxu0 %v3338_v18  ;;  %1886 = vmatprep.subr.bf16.mxu1 %v3364_v27  ;;  %v3379_v18 = vld [vmem:[#allocation8 + $0xc4] ss:$8 sps:$4 sm:$0xff]  }
 0x194   : > { %1134 = vadd.xlane.f32.xlu1 %v4131_v9  ;;  %1777 = vmatprep.subr.bf16.mxu0 %v3343_v19  ;;  %v3386_v19 = vld [vmem:[#allocation8 + $0x110] ss:$8 sps:$4 sm:$0xff]   ;;  %v3406_v27 = vld [vmem:[#allocation8 + $0x1e4] ss:$8 sps:$4 sm:$0xff]  }
 0x196   : > { %1887 = vmatpush1.bf16.msra.mxu1 %v3362_v5  ;;  %v3404_v5 = vld [vmem:[#allocation8 + $0x1e0] ss:$8 sps:$4 sm:$0xff]  }
 0x197   : > { %1778 = vmatpush1.bf16.msra.mxu0 %v3341_v3  ;;  %1888 = vmatprep.subr.bf16.mxu1 %v3370_v51  ;;  %v3377_v3 = vld [vmem:[#allocation8 + $0xc0] ss:$8 sps:$4 sm:$0xff]   ;;  %v3409_v51 = vld [vmem:[#allocation8 + $0x1d4] ss:$8 sps:$4 sm:$0xff]  }
 0x198   : > { %1779 = vmatprep.subr.bf16.mxu0 %v3346_v20  ;;  %v3394_v20 = vld [vmem:[#allocation8 + $0x104] ss:$8 sps:$4 sm:$0xff]  }
 0x19a   : > { %1889 = vmatpush1.bf16.msra.mxu1 %v3368_v28  ;;  %v3407_v28 = vld [vmem:[#allocation8 + $0x1d0] ss:$8 sps:$4 sm:$0xff]  }
 0x19b   : > { %1780 = vmatpush1.bf16.msra.mxu0 %v3344_v59  ;;  %1890 = vmatprep.subr.bf16.mxu1 %v3376_v33  ;;  %v3385_v59 = vld [vmem:[#allocation8 + $0xb4] ss:$8 sps:$4 sm:$0xff]   ;;  %v3412_v33 = vld [vmem:[#allocation8 + $0x1c4] ss:$8 sps:$4 sm:$0xff]  }
 0x19c   : > { %1781 = vmatprep.subr.bf16.mxu0 %v3349_v24  ;;  %v3400_v24 = vld [vmem:[#allocation8 + $0x1f4] ss:$8 sps:$4 sm:$0xff]  }
 0x19e   : > { %1891 = vmatpush1.bf16.msra.mxu1 %v3374_v11  ;;  %v3410_v11 = vld [vmem:[#allocation8 + $0x1c0] ss:$8 sps:$4 sm:$0xff]  }
 0x19f   : > { %1782 = vmatpush1.bf16.msra.mxu0 %v3347_v10  ;;  %1892 = vmatprep.subr.bf16.mxu1 %v3382_v14  ;;  %v3389_v10 = vld [vmem:[#allocation8 + $0xa0] ss:$8 sps:$4 sm:$0xff]   ;;  %v3425_v14 = vld [vmem:[#allocation7 + $0x70] ss:$8 sps:$4 sm:$0xff]  }
 0x1a0   : > { %1783 = vmatprep.subr.bf16.mxu0 %v3355_v29  ;;  %v3397_v29 = vld [vmem:[#allocation8 + $0x94] ss:$8 sps:$4 sm:$0xff]  }
 0x1a2   : > { %1893 = vmatpush1.bf16.msra.mxu1 %v3380_v4  ;;  %v3418_v4 = vld [vmem:[#allocation8 + $0x1a4] ss:$8 sps:$4 sm:$0xff]  }
 0x1a3   : > { %1784 = vmatpush1.bf16.msra.mxu0 %v3353_v7  ;;  %1894 = vmatprep.subr.bf16.mxu1 %v3388_v2  ;;  %v3395_v7 = vld [vmem:[#allocation8 + $0x90] ss:$8 sps:$4 sm:$0xff]   ;;  %v3421_v2 = vld [vmem:[#allocation8 + $0x194] ss:$8 sps:$4 sm:$0xff]  }
 0x1a4   : > { %1785 = vmatprep.subr.bf16.mxu0 %v3361_v31  ;;  %v3403_v31 = vld [vmem:[#allocation8 + $0x84] ss:$8 sps:$4 sm:$0xff]  }
 0x1a6   : > { %1895 = vmatpush1.bf16.msra.mxu1 %v3386_v19  ;;  %v3424_v19 = vld [vmem:[#allocation8 + $0x184] ss:$8 sps:$4 sm:$0xff]  }
 0x1a7   : > { %1786 = vmatpush2.bf16.msra.mxu0 %v3359_v35  ;;  %1896 = vmatprep.subr.bf16.mxu1 %v3394_v20  ;;  %v3401_v35 = vld [vmem:[#allocation8 + $0x80] ss:$8 sps:$4 sm:$0xff]  }
 0x1a8   : > { %1787 = vmatprep.subr.bf16.mxu0 %v3367_v60  ;;  %v3427_v60 = vld [vmem:[#allocation7 + $0x74] ss:$8 sps:$4 sm:$0xff]  }
 0x1aa   : > { %1897 = vmatpush1.bf16.msra.mxu1 %v3392_v61 }
 0x1ab   : > { %1788 = vmatpush2.bf16.msra.mxu0 %v3365_v16  ;;  %1898 = vmatprep.subr.bf16.mxu1 %v3400_v24  ;;  %v3415_v16 = vld [vmem:[#allocation8 + $0x1b4] ss:$8 sps:$4 sm:$0xff]  }
 0x1ac   : > { %1789 = vmatprep.subr.bf16.mxu0 %v3373_v22  ;;  %v3413_v22 = vld [vmem:[#allocation8 + $0x1b0] ss:$8 sps:$4 sm:$0xff]  }
 0x1ae   : > { %1899 = vmatpush2.bf16.msra.mxu1 %v3398_v8  ;;  %v3440_v8 = vld [vmem:[#allocation7 + $0x20] ss:$8 sps:$4 sm:$0xff]  }
 0x1af   : > { %1790 = vmatpush2.bf16.msra.mxu0 %v3371_v6  ;;  %1900 = vmatprep.subr.bf16.mxu1 %v3406_v27  ;;  %v3416_v6 = vld [vmem:[#allocation8 + $0x1a0] ss:$8 sps:$4 sm:$0xff]  }
 0x1b0   : > { %1791 = vmatprep.subr.bf16.mxu0 %v3379_v18  ;;  %v3419_v18 = vld [vmem:[#allocation8 + $0x190] ss:$8 sps:$4 sm:$0xff]  }
 0x1b2   : > { %1901 = vmatpush2.bf16.msra.mxu1 %v3404_v5 }
 0x1b3   : > { %1792 = vmatpush2.bf16.msra.mxu0 %v3377_v3  ;;  %1902 = vmatprep.subr.bf16.mxu1 %v3409_v51 }
 0x1b4   : > { %1793 = vmatprep.subr.bf16.mxu0 %v3385_v59 }
 0x1b6   : > { %1903 = vmatpush2.bf16.msra.mxu1 %v3407_v28  ;;  %v3443_v28 = vld [vmem:[#allocation7 + $0x10] ss:$8 sps:$4 sm:$0xff]  }
 0x1b7   : > { %1794 = vmatpush2.bf16.msra.mxu0 %v3383_v23  ;;  %1904 = vmatprep.subr.bf16.mxu1 %v3412_v33 }
 0x1b8   : > { %1795 = vmatprep.subr.bf16.mxu0 %v3391_v53  ;;  %v3442_v53 = vld [vmem:[#allocation7 + $0x24] ss:$8 sps:$4 sm:$0xff]  }
 0x1ba   : > { %1905 = vmatpush2.bf16.msra.mxu1 %v3410_v11 }
 0x1bb   : > { %1796 = vmatpush2.bf16.msra.mxu0 %v3389_v10  ;;  %1906 = vmatprep.subr.bf16.mxu1 %v3415_v16  ;;  %v5128_v10 = vld [vmem:[#allocation17_spill] sm:$0xff] }
 0x1bc   : > { %1797 = vmatprep.subr.bf16.mxu0 %v3397_v29  ;;  %v5129_v29 = vld [vmem:[#allocation18_spill] sm:$0xff] }
 0x1be   : > { %1907 = vmatpush2.bf16.msra.mxu1 %v3413_v22 }
 0x1bf   : > { %1798 = vmatpush2.bf16.msra.mxu0 %v3395_v7  ;;  %1908 = vmatprep.subr.bf16.mxu1 %v3418_v4 }
 0x1c0   : > { %1799 = vmatprep.subr.bf16.mxu0 %v3403_v31 }
 0x1c2   : > { %1909 = vmatpush2.bf16.msra.mxu1 %v3416_v6 }
 0x1c3   : > { %1800 = vmatpush2.bf16.msra.mxu0 %v3401_v35  ;;  %1910 = vmatprep.subr.bf16.mxu1 %v3421_v2  ;;  %v3445_v35 = vld [vmem:[#allocation7 + $0x14] ss:$8 sps:$4 sm:$0xff]  }
 0x1c4   : > { %2111 = vmatprep.subr.bf16.mxu0 %v3427_v60 }
 0x1c6   : > { %1802 = vmatmul.mubr.bf16.vlgmr.msra.gmra.mxu0 %v3923_v32  ;;  %1911 = vmatpush2.bf16.msra.mxu1 %v3419_v18  ;;  %v3422_v32 = vld [vmem:[#allocation8 + $0x180] ss:$8 sps:$4 sm:$0xff]  }
 0x1c7   : > { %1811 = vmatprep.mubr.bf16.mxu0 %v3931_v36  ;;  %2112 = vmatpush1.bf16.msra.mxu0 %v3425_v14 }
 0x1c8   : > { %1912 = vmatprep.subr.bf16.mxu1 %v3424_v19 }
 0x1ca   : > { %1913 = vmatpush2.bf16.msra.mxu1 %v3422_v32 }
 0x1cb   : > { %3147 = vmatprep.subr.bf16.mxu1 %v3427_v60 }
 0x1cd   : > { %1915 = vmatmul.mubr.bf16.vlgmr.msra.gmra.mxu1 %v3927_v34  ;;  %v3430_v34 = vld [vmem:[#allocation7 + $0x64] ss:$8 sps:$4 sm:$0xff]  }
 0x1ce   : > { %1812 = vmatmul.mubr.bf16.gmra.mxu0 %v3941_v38  ;;  %1924 = vmatprep.mubr.bf16.mxu1 %v3935_v37  ;;  %v3433_v37 = vld [vmem:[#allocation7 + $0x54] ss:$8 sps:$4 sm:$0xff]  }
 0x1cf   : > { %1821 = vmatprep.mubr.bf16.mxu0 %v3947_v40  ;;  %3155 = vmatpush1.bf16.msra.mxu1 %v3425_v14  ;;  %v5130_v14 = vld [vmem:[#allocation24_spill] sm:$0xff] }
 0x1d0   : > { %2113 = vmatprep.subr.bf16.mxu0 %v3430_v34  ;;  %3148 = vmatprep.subr.bf16.mxu1 %v3430_v34 }
 0x1d5   : > { %1925 = vmatmul.mubr.bf16.gmra.mxu1 %v3944_v39  ;;  %v3436_v39 = vld [vmem:[#allocation7 + $0x44] ss:$8 sps:$4 sm:$0xff]  }
 0x1d6   : > { %1822 = vmatmul.mubr.bf16.gmra.mxu0 %v3957_v42  ;;  %1934 = vmatprep.mubr.bf16.mxu1 %v3950_v41 }
 0x1d7   : > { %1831 = vmatprep.mubr.bf16.mxu0 %v3963_v44  ;;  %v3428_v44 = vld [vmem:[#allocation7 + $0x60] ss:$8 sps:$4 sm:$0xff]  }
 0x1d8   : > { %2114 = vmatpush1.bf16.msra.mxu0 %v3428_v44  ;;  %3156 = vmatpush1.bf16.msra.mxu1 %v3428_v44 }
 0x1d9   : > { %2115 = vmatprep.subr.bf16.mxu0 %v3433_v37  ;;  %3149 = vmatprep.subr.bf16.mxu1 %v3433_v37  ;;  %v3703_v37 = vmov 0  }
 0x1dd   : > { %1935 = vmatmul.mubr.bf16.gmra.mxu1 %v3960_v43 }
 0x1de   : > { %1832 = vmatmul.mubr.bf16.gmra.mxu0 %v3973_v46  ;;  %1944 = vmatprep.mubr.bf16.mxu1 %v3966_v45  ;;  %v3431_v46 = vld [vmem:[#allocation7 + $0x50] ss:$8 sps:$4 sm:$0xff]  }
 0x1df   : > { %1841 = vmatprep.mubr.bf16.mxu0 %v3979_v48  ;;  %2116 = vmatpush1.bf16.msra.mxu0 %v3431_v46  ;;  %v3434_v48 = vld [vmem:[#allocation7 + $0x40] ss:$8 sps:$4 sm:$0xff]  }
 0x1e0   : > { %2117 = vmatprep.subr.bf16.mxu0 %v3436_v39  ;;  %3157 = vmatpush1.bf16.msra.mxu1 %v3431_v46 }
 0x1e1   : > { %v1105_v3 = vpop.xlane.xlu0 %1104  ;;  %3150 = vmatprep.subr.bf16.mxu1 %v3436_v39 }
 0x1e2   : > { %v1137_v36 = vmul.f32 0.0078125, %v1105_v3 }
 0x1e3   : > { %2118 = vmatpush1.bf16.msra.mxu0 %v3434_v48 }
 0x1e4   : > { %v4139_v20 = vsub.f32 %v4050_v13, %v1137_v36  ;;  %3158 = vmatpush1.bf16.msra.mxu1 %v3434_v48  ;;  %v5132_v36 = vld [vmem:[#allocation20_spill] sm:$0xff] }
 0x1e5   : > { %v1107_v59 = vpop.xlane.xlu0 %1106  ;;  %1945 = vmatmul.mubr.bf16.gmra.mxu1 %v3976_v47  ;;  %v5126_v47 = vld [vmem:[#allocation22_spill] sm:$0xff] }
 0x1e6   : > { %v1138_v38 = vmul.f32 0.0078125, %v1107_v59  ;;  %v1169_v40 = vmul.f32 %v4139_v20, %v4139_v20  ;;  %1842 = vmatmul.mubr.bf16.gmra.mxu0 %v3989_v50  ;;  %1954 = vmatprep.mubr.bf16.mxu1 %v3982_v49 }
 0x1e7   : > { %1851 = vmatprep.mubr.bf16.mxu0 %v3995_v52  ;;  %v3439_v52 = vld [vmem:[#allocation7 + $0x34] ss:$8 sps:$4 sm:$0xff]  }
 0x1e8   : > { %v4147_v61 = vsub.f32 %v4054_v21, %v1138_v38  ;;  %1185 = vadd.xlane.f32.xlu0 %v1169_v40  ;;  %2119 = vmatprep.subr.bf16.mxu0 %v3439_v52  ;;  %v5127_v21 = vld [vmem:[#allocation26_spill] sm:$0xff] }
 0x1e9   : > { %v1109_v41 = vpop.xlane.xlu0 %1108  ;;  %3151 = vmatprep.subr.bf16.mxu1 %v3439_v52  ;;  %v5134_v52 = vld [vmem:[#allocation23_spill] sm:$0xff] }
 0x1ea   : > { %v1170_v42 = vmul.f32 %v4147_v61, %v4147_v61  ;;  %v1139_v45 = vmul.f32 0.0078125, %v1109_v41 }
 0x1ec   : > { %1187 = vadd.xlane.f32.xlu1 %v1170_v42  ;;  %v4170_v49 = vsub.f32 %v5127_v21, %v1139_v45 }
 0x1ed   : > { %1955 = vmatmul.mubr.bf16.gmra.mxu1 %v5128_v10  ;;  %v5135_v10 = vld [vmem:[#allocation25_spill] sm:$0xff] }
 0x1ee   : > { %1852 = vmatmul.mubr.bf16.gmra.mxu0 %v4005_v54  ;;  %v3437_v54 = vld [vmem:[#allocation7 + $0x30] ss:$8 sps:$4 sm:$0xff]   ;;  %1964 = vmatprep.mubr.bf16.mxu1 %v5129_v29  ;;  %v1171_v31 = vmul.f32 %v4170_v49, %v4170_v49 }
 0x1ef   : > { %1861 = vmatprep.mubr.bf16.mxu0 %v4011_v56  ;;  %2120 = vmatpush1.bf16.msra.mxu0 %v3437_v54 }
 0x1f0   : > { %2121 = vmatprep.subr.bf16.mxu0 %v3442_v53  ;;  %3159 = vmatpush1.bf16.msra.mxu1 %v3437_v54 }
 0x1f1   : > { %3152 = vmatprep.subr.bf16.mxu1 %v3442_v53 }
 0x1f3   : > { %2122 = vmatpush1.bf16.msra.mxu0 %v3440_v8 }
 0x1f4   : > { %2123 = vmatprep.subr.bf16.mxu0 %v3445_v35  ;;  %3160 = vmatpush1.bf16.msra.mxu1 %v3440_v8 }
 0x1f5   : > { %3153 = vmatprep.subr.bf16.mxu1 %v3445_v35  ;;  %v4255_v35 = vld [vmem:[%s5069_s8] ss:$0 sm:$0xff] }
 0x1f6   : > { %1862 = vmatmul.mubr.bf16.gmra.mxu0 %v4021_v58 }
 0x1f7   : > { %1871 = vmatprep.mubr.bf16.mxu0 %v5126_v47  ;;  %2124 = vmatpush1.bf16.msra.mxu0 %v3443_v28 }
 0x1f8   : > { %3161 = vmatpush1.bf16.msra.mxu1 %v3443_v28 }
 0x1fe   : > { %1872 = vmatmul.mubr.bf16.gmra.mxu0 %v5130_v14 }
 0x1ff   : > { %2143 = vmatprep.mubr.bf16.mxu0 %v3703_v37 }
 0x201   : > { %v1121_v43 = vpop.xlane.xlu1 %1120 }
 0x202   : > { %v1145_v50 = vmul.f32 0.0078125, %v1121_v43 }
 0x204   : > { %v4165_v13 = vsub.f32 %v4076_v57, %v1145_v50 }
 0x205   : > { %v1123_v56 = vpop.xlane.xlu1 %1122 }
 0x206   : > { %v1146_v23 = vmul.f32 0.0078125, %v1123_v56  ;;  %v1177_v24 = vmul.f32 %v4165_v13, %v4165_v13 }
 0x208   : > { %v4176_v57 = vsub.f32 %v4081_v17, %v1146_v23  ;;  %1201 = vadd.xlane.f32.xlu0 %v1177_v24  ;;  %v3448_v17 = vld [vmem:[#allocation7 + $0x4] ss:$8 sps:$4 sm:$0xff]  }
 0x209   : > { %v1111_v58 = vpop.xlane.xlu1 %1110  ;;  %v1125_v27 = vpop.xlane.xlu0 %1124  ;;  %2125 = vmatprep.subr.bf16.mxu0 %v3448_v17  ;;  %3154 = vmatprep.subr.bf16.mxu1 %v3448_v17 }
 0x20a   : > { %v1140_v5 = vmul.f32 0.0078125, %v1111_v58  ;;  %v1147_v7 = vmul.f32 0.0078125, %v1125_v27  ;;  %v1178_v51 = vmul.f32 %v4176_v57, %v4176_v57 }
 0x20c   : > { %v4184_v33 = vsub.f32 %v4086_v63, %v1140_v5  ;;  %v4187_v60 = vsub.f32 %v4088_v55, %v1147_v7  ;;  %1203 = vadd.xlane.f32.xlu1 %v1178_v51  ;;  %1189 = vadd.xlane.f32.xlu0 %v1171_v31  ;;  %v3446_v63 = vld [vmem:[#allocation7] ss:$8 sps:$4 sm:$0xff]   ;;  %v5131_v55 = vld [vmem:[#allocation19_spill] sm:$0xff] }
 0x20d   : > { %v1127_v11 = vpop.xlane.xlu1 %1126  ;;  %v1113_v16 = vpop.xlane.xlu0 %1112  ;;  %1965 = vmatmul.mubr.bf16.gmra.mxu1 %v5131_v55  ;;  %2126 = vmatpush1.bf16.msra.mxu0 %v3446_v63 }
 0x20e   : > { %v1148_v22 = vmul.f32 0.0078125, %v1127_v11  ;;  %v1141_v4 = vmul.f32 0.0078125, %v1113_v16  ;;  %v1172_v6 = vmul.f32 %v4184_v33, %v4184_v33  ;;  %v1179_v2 = vmul.f32 %v4187_v60, %v4187_v60  ;;  %1974 = vmatprep.mubr.bf16.mxu1 %v5132_v36  ;;  %3162 = vmatpush1.bf16.msra.mxu1 %v3446_v63 }
 0x210   : > { %v4196_v18 = vsub.f32 %v4094_v12, %v1148_v22  ;;  %v4199_v19 = vsub.f32 %v4096_v15, %v1141_v4  ;;  %1191 = vadd.xlane.f32.xlu1 %v1172_v6  ;;  %1205 = vadd.xlane.f32.xlu0 %v1179_v2 }
 0x211   : > { %v1115_v32 = vpop.xlane.xlu1 %1114  ;;  %v1129_v3 = vpop.xlane.xlu0 %1128 }
 0x212   : > { %v1142_v59 = vmul.f32 0.0078125, %v1115_v32  ;;  %v1149_v38 = vmul.f32 0.0078125, %v1129_v3  ;;  %v1180_v40 = vmul.f32 %v4196_v18, %v4196_v18  ;;  %v1173_v42 = vmul.f32 %v4199_v19, %v4199_v19 }
 0x214   : > { %v4207_v12 = vsub.f32 %v4102_v26, %v1142_v59  ;;  %v4210_v15 = vsub.f32 %v4107_v0, %v1149_v38  ;;  %1207 = vadd.xlane.f32.xlu1 %v1180_v40  ;;  %1193 = vadd.xlane.f32.xlu0 %v1173_v42  ;;  %v5133_v26 = vld [vmem:[#allocation21_spill] sm:$0xff] }
 0x215   : > { %v1131_v34 = vpop.xlane.xlu1 %1130  ;;  %v1117_v44 = vpop.xlane.xlu0 %1116  ;;  %1975 = vmatmul.mubr.bf16.gmra.mxu1 %v5133_v26 }
 0x216   : > { %v1150_v46 = vmul.f32 0.0078125, %v1131_v34  ;;  %v1143_v39 = vmul.f32 0.0078125, %v1117_v44  ;;  %v1174_v41 = vmul.f32 %v4207_v12, %v4207_v12  ;;  %v1181_v48 = vmul.f32 %v4210_v15, %v4210_v15  ;;  %1984 = vmatprep.mubr.bf16.mxu1 %v5134_v52 }
 0x218   : > { %v4219_v0 = vsub.f32 %v4115_v62, %v1150_v46  ;;  %v4222_v43 = vsub.f32 %v4117_v25, %v1143_v39  ;;  %1195 = vadd.xlane.f32.xlu1 %v1174_v41  ;;  %1209 = vadd.xlane.f32.xlu0 %v1181_v48 }
 0x219   : > { %v1119_v45 = vpop.xlane.xlu1 %1118  ;;  %v1133_v50 = vpop.xlane.xlu0 %1132 }
 0x21a   : > { %v1144_v54 = vmul.f32 0.0078125, %v1119_v45  ;;  %v1151_v56 = vmul.f32 0.0078125, %v1133_v50  ;;  %v1182_v47 = vmul.f32 %v4219_v0, %v4219_v0  ;;  %v1175_v21 = vmul.f32 %v4222_v43, %v4222_v43 }
 0x21c   : > { %v4230_v62 = vsub.f32 %v4124_v1, %v1144_v54  ;;  %v4233_v25 = vsub.f32 %v4126_v30, %v1151_v56  ;;  %1211 = vadd.xlane.f32.xlu1 %v1182_v47  ;;  %1197 = vadd.xlane.f32.xlu0 %v1175_v21 }
 0x21d   : > { %v1135_v23 = vpop.xlane.xlu1 %1134  ;;  %1985 = vmatmul.mubr.bf16.gmra.mxu1 %v5135_v10 }
 0x21e   : > { %v1152_v24 = vmul.f32 0.0078125, %v1135_v23  ;;  %v1176_v53 = vmul.f32 %v4230_v62, %v4230_v62  ;;  %v1183_v8 = vmul.f32 %v4233_v25, %v4233_v25  ;;  %2183 = vmatprep.mubr.bf16.mxu1 %v3703_v37 }
 0x220   : > { %v4241_v58 = vsub.f32 %v4131_v9, %v1152_v24  ;;  %1199 = vadd.xlane.f32.xlu1 %v1176_v53  ;;  %1213 = vadd.xlane.f32.xlu0 %v1183_v8  ;;  %v4249_v9 = vld [vmem:[%s5068_s7] ss:$0 sm:$0xff] }
 0x222   : > { %v1184_v1 = vmul.f32 %v4241_v58, %v4241_v58 }
 0x224   : > { %1215 = vadd.xlane.f32.xlu1 %v1184_v1 }
 0x271   : > { %v1186_v30 = vpop.xlane.xlu0 %1185 }
 0x272   : > { %v1217_v27 = vmul.f32 0.0078125, %v1186_v30 }
 0x274   : > { %v1233_v29 = vadd.f32 1e-05, %v1217_v27 }
 0x275   : > { %v1188_v5 = vpop.xlane.xlu1 %1187 }
 0x276   : > { %3449 = vrsqrt.f32 %v1233_v29  ;;  %v1218_v7 = vmul.f32 0.0078125, %v1188_v5 }
 0x278   : > { %v1234_v51 = vadd.f32 1e-05, %v1218_v7 }
 0x27a   : > { %3451 = vrsqrt.f32 %v1234_v51 }
 0x283   : > { %v3450_v31 = vpop.eup %3449 }
 0x284   : > { %v1265_v28 = vmul.f32 %v3450_v31, %v4139_v20 }
 0x286   : > { %v1287_v17 = vmul.f32 %v4249_v9, %v1265_v28 }
 0x287   : > { %v3452_v11 = vpop.eup %3451 }
 0x288   : > { %v1266_v16 = vmul.f32 %v3452_v11, %v4147_v61  ;;  %v1309_v14 = vadd.f32 %v4255_v35, %v1287_v17  ;;  %v4263_v61 = vpop.f32.mrf.mxu0 }
 0x28a   : > { %v1288_v22 = vmul.f32 %v4249_v9, %v1266_v16  ;;  %v1341_v6 = vmul.f32 0.01, %v1309_v14  ;;  %vm1325_vm0 = vcmp.gt.f32.partialorder %v1309_v14, 0.0  ;;  %v4265_v34 = vpop.f32.mrf.mxu0 }
 0x28c   : > { %v1310_v4 = vadd.f32 %v4255_v35, %v1288_v22  ;;  %v1357_v2 = vsel %vm1325_vm0, %v1309_v14, %v1341_v6  ;;  %v4267_v39 = vpop.f32.mrf.mxu0 }
 0x28e   : > { %vm1326_vm1 = vcmp.gt.f32.partialorder %v1310_v4, 0.0  ;;  %v1342_v20 = vmul.f32 0.01, %v1310_v4  ;;  %v4269_v50 = vpop.f32.mrf.mxu0 }
 0x290   : > { %v1358_v63 = vsel %vm1326_vm1, %v1310_v4, %v1342_v20  ;;  %v4271_v56 = vpop.f32.mrf.mxu0 }
 0x291   : > { %v1202_v55 = vpop.xlane.xlu0 %1201  ;;  %v1995_v32 = vpack.c.bf16 %v1358_v63, %v1357_v2 }
 0x292   : > { %v1225_v3 = vmul.f32 0.0078125, %v1202_v55  ;;  %v4273_v53 = vpop.f32.mrf.mxu0 }
 0x293   : > { %2144 = vmatmul.mubr.bf16.vlgmr.msra.gmra.mxu0 %v1995_v32 }
 0x294   : > { %v1241_v36 = vadd.f32 1e-05, %v1225_v3  ;;  %2153 = vmatprep.mubr.bf16.mxu0 %v3703_v37  ;;  %v4275_v1 = vpop.f32.mrf.mxu0 }
 0x295   : > { %v1204_v59 = vpop.xlane.xlu1 %1203  ;;  %v1190_v38 = vpop.xlane.xlu0 %1189 }
 0x296   : > { %3453 = vrsqrt.f32 %v1241_v36  ;;  %v1226_v40 = vmul.f32 0.0078125, %v1204_v59  ;;  %v1219_v42 = vmul.f32 0.0078125, %v1190_v38  ;;  %v4277_v7 = vpop.f32.mrf.mxu0 }
 0x298   : > { %v1242_v44 = vadd.f32 1e-05, %v1226_v40  ;;  %v1235_v46 = vadd.f32 1e-05, %v1219_v42  ;;  %v4280_v11 = vpop.f32.mrf.mxu0 }
 0x299   : > { %v1192_v41 = vpop.xlane.xlu1 %1191  ;;  %v1206_v48 = vpop.xlane.xlu0 %1205 }
 0x29a   : > { %3455 = vrsqrt.f32 %v1242_v44  ;;  %v1220_v26 = vmul.f32 0.0078125, %v1192_v41  ;;  %v1227_v45 = vmul.f32 0.0078125, %v1206_v48  ;;  %v4283_v20 = vpop.f32.mrf.mxu0 }
 0x29b   : > { %3457 = vrsqrt.f32 %v1235_v46 }
 0x29c   : > { %v1236_v52 = vadd.f32 1e-05, %v1220_v26  ;;  %v1243_v54 = vadd.f32 1e-05, %v1227_v45  ;;  %v4287_v36 = vpop.f32.mrf.mxu0 }
 0x29d   : > { %v1208_v47 = vpop.xlane.xlu1 %1207  ;;  %v1194_v21 = vpop.xlane.xlu0 %1193 }
 0x29e   : > { %3459 = vrsqrt.f32 %v1236_v52  ;;  %v1228_v23 = vmul.f32 0.0078125, %v1208_v47  ;;  %v1221_v24 = vmul.f32 0.0078125, %v1194_v21  ;;  %v4291_v41 = vpop.f32.mrf.mxu0 }
 0x29f   : > { %3461 = vrsqrt.f32 %v1243_v54 }
 0x2a0   : > { %v1244_v8 = vadd.f32 1e-05, %v1228_v23  ;;  %v1237_v10 = vadd.f32 1e-05, %v1221_v24  ;;  %v4296_v21 = vpop.f32.mrf.mxu0 }
 0x2a1   : > { %v1196_v30 = vpop.xlane.xlu1 %1195  ;;  %v1210_v27 = vpop.xlane.xlu0 %1209 }
 0x2a2   : > { %3463 = vrsqrt.f32 %v1244_v8  ;;  %v1222_v29 = vmul.f32 0.0078125, %v1196_v30  ;;  %v1229_v5 = vmul.f32 0.0078125, %v1210_v27  ;;  %v4300_v27 = vpop.f32.mrf.mxu0 }
 0x2a3   : > { %v3454_v51 = vpop.eup %3453  ;;  %3465 = vrsqrt.f32 %v1237_v10 }
 0x2a4   : > { %v1273_v31 = vmul.f32 %v3454_v51, %v4165_v13  ;;  %v1238_v28 = vadd.f32 1e-05, %v1222_v29  ;;  %v1245_v17 = vadd.f32 1e-05, %v1229_v5 }
 0x2a5   : > { %v1212_v16 = vpop.xlane.xlu1 %1211  ;;  %v1198_v14 = vpop.xlane.xlu0 %1197 }
 0x2a6   : > { %v1295_v22 = vmul.f32 %v4249_v9, %v1273_v31  ;;  %3467 = vrsqrt.f32 %v1238_v28  ;;  %v1230_v4 = vmul.f32 0.0078125, %v1212_v16  ;;  %v1223_v6 = vmul.f32 0.0078125, %v1198_v14  ;;  %v4306_v14 = vpop.f32.mrf.mxu0 }
 0x2a7   : > { %v3456_v2 = vpop.eup %3455  ;;  %3469 = vrsqrt.f32 %v1245_v17 }
 0x2a8   : > { %v3458_v63 = vpop.eup %3457  ;;  %v1274_v55 = vmul.f32 %v3456_v2, %v4176_v57  ;;  %v1246_v32 = vadd.f32 1e-05, %v1230_v4  ;;  %v1239_v13 = vadd.f32 1e-05, %v1223_v6  ;;  %v1317_v3 = vadd.f32 %v4255_v35, %v1295_v22 }
 0x2a9   : > { %v1200_v59 = vpop.xlane.xlu1 %1199  ;;  %v1214_v38 = vpop.xlane.xlu0 %1213  ;;  %v1267_v40 = vmul.f32 %v3458_v63, %v4170_v49 }
 0x2aa   : > { %v1296_v42 = vmul.f32 %v4249_v9, %v1274_v55  ;;  %3471 = vrsqrt.f32 %v1246_v32  ;;  %v1224_v44 = vmul.f32 0.0078125, %v1200_v59  ;;  %v1231_v46 = vmul.f32 0.0078125, %v1214_v38  ;;  %v4312_v55 = vpop.f32.mrf.mxu0 }
 0x2ab   : > { %v3460_v48 = vpop.eup %3459  ;;  %3473 = vrsqrt.f32 %v1239_v13  ;;  %vm1333_vm2 = vcmp.gt.f32.partialorder %v1317_v3, 0.0  ;;  %v1349_v57 = vmul.f32 0.01, %v1317_v3  ;;  %v1289_v26 = vmul.f32 %v4249_v9, %v1267_v40 }
 0x2ac   : > { %v3462_v45 = vpop.eup %3461  ;;  %v1240_v52 = vadd.f32 1e-05, %v1224_v44  ;;  %v1247_v54 = vadd.f32 1e-05, %v1231_v46  ;;  %v1318_v47 = vadd.f32 %v4255_v35, %v1296_v42  ;;  %v1268_v49 = vmul.f32 %v3460_v48, %v4184_v33  ;;  %v4318_v42 = vpop.f32.mrf.mxu0 }
 0x2ad   : > { %v1216_v23 = vpop.xlane.xlu1 %1215  ;;  %v1311_v24 = vadd.f32 %v4255_v35, %v1289_v26  ;;  %v1275_v8 = vmul.f32 %v3462_v45, %v4187_v60  ;;  %v1365_v5 = vsel %vm1333_vm2, %v1317_v3, %v1349_v57 }
 0x2ae   : > { %3475 = vrsqrt.f32 %v1240_v52  ;;  %v1232_v10 = vmul.f32 0.0078125, %v1216_v23  ;;  %vm1334_vm3 = vcmp.gt.f32.partialorder %v1318_v47, 0.0  ;;  %v1350_v30 = vmul.f32 0.01, %v1318_v47  ;;  %v4322_v45 = vpop.f32.mrf.mxu0 }
 0x2af   : > { %v3464_v29 = vpop.eup %3463  ;;  %3477 = vrsqrt.f32 %v1247_v54  ;;  %v1290_v51 = vmul.f32 %v4249_v9, %v1268_v49  ;;  %v1343_v33 = vmul.f32 0.01, %v1311_v24  ;;  %v1297_v60 = vmul.f32 %v4249_v9, %v1275_v8 }
 0x2b0   : > { %v3466_v31 = vpop.eup %3465  ;;  %v1248_v28 = vadd.f32 1e-05, %v1232_v10  ;;  %v1366_v17 = vsel %vm1334_vm3, %v1318_v47, %v1350_v30  ;;  %v1276_v16 = vmul.f32 %v3464_v29, %v4196_v18  ;;  %vm1327_vm4 = vcmp.gt.f32.partialorder %v1311_v24, 0.0  ;;  %v4327_v10 = vpop.f32.mrf.mxu0 }
 0x2b1   : > { %v1999_v22 = vpack.c.bf16 %v1366_v17, %v1365_v5  ;;  %v1312_v4 = vadd.f32 %v4255_v35, %v1290_v51  ;;  %v1269_v6 = vmul.f32 %v3466_v31, %v4199_v19  ;;  %v1319_v63 = vadd.f32 %v4255_v35, %v1297_v60 }
 0x2b2   : > { %3479 = vrsqrt.f32 %v1248_v28  ;;  %v1298_v2 = vmul.f32 %v4249_v9, %v1276_v16  ;;  %v1359_v59 = vsel %vm1327_vm4, %v1311_v24, %v1343_v33  ;;  %v1439_v49 = vlaneseq  ;;  %v4334_v31 = vpop.f32.mrf.mxu0 }
 0x2b3   : > { %v3468_v32 = vpop.eup %3467  ;;  %2184 = vmatmul.mubr.bf16.vlgmr.msra.gmra.mxu1 %v1999_v22  ;;  %vm1328_vm5 = vcmp.gt.f32.partialorder %v1312_v4, 0.0  ;;  %v1344_v18 = vmul.f32 0.01, %v1312_v4  ;;  %v1291_v13 = vmul.f32 %v4249_v9, %v1269_v6  ;;  %v1351_v19 = vmul.f32 0.01, %v1319_v63 }
 0x2b4   : > { %v3470_v3 = vpop.eup %3469  ;;  %2193 = vmatprep.mubr.bf16.mxu1 %v3703_v37  ;;  %v1320_v38 = vadd.f32 %v4255_v35, %v1298_v2  ;;  %v1270_v40 = vmul.f32 %v3468_v32, %v4207_v12  ;;  %vm1335_vm6 = vcmp.gt.f32.partialorder %v1319_v63, 0.0  ;;  %v1440_v17 = vshrl.u32 %v1439_v49, 7  ;;  %v4340_v2 = vpop.f32.mrf.mxu0 }
 0x2b5   : > { %v1360_v44 = vsel %vm1328_vm5, %v1312_v4, %v1344_v18  ;;  %v1313_v46 = vadd.f32 %v4255_v35, %v1291_v13  ;;  %v1277_v48 = vmul.f32 %v3470_v3, %v4210_v15  ;;  %v1367_v23 = vsel %vm1335_vm6, %v1319_v63, %v1351_v19 }
 0x2b6   : > { %v1996_v57 = vpack.c.bf16 %v1360_v44, %v1359_v59  ;;  %vm1336_vm7 = vcmp.gt.f32.partialorder %v1320_v38, 0.0  ;;  %v1352_v26 = vmul.f32 0.01, %v1320_v38  ;;  %v1292_v54 = vmul.f32 %v4249_v9, %v1270_v40  ;;  %v4345_v59 = vpop.f32.mrf.mxu0 }
 0x2b7   : > { %v3472_v52 = vpop.eup %3471  ;;  %v1299_v47 = vmul.f32 %v4249_v9, %v1277_v48  ;;  %v1345_v29 = vmul.f32 0.01, %v1313_v46  ;;  %vm1329_vm8 = vcmp.gt.f32.partialorder %v1313_v46, 0.0  ;;  %v4349_v40 = vsub.s32 0, %v1440_v17 }
 0x2b8   : > { %v3474_v12 = vpop.eup %3473  ;;  %2154 = vmatmul.mubr.bf16.gmra.mxu0 %v1996_v57  ;;  %v1368_v24 = vsel %vm1336_vm7, %v1320_v38, %v1352_v26  ;;  %v1278_v8 = vmul.f32 %v3472_v52, %v4219_v0  ;;  %v1314_v30 = vadd.f32 %v4255_v35, %v1292_v54  ;;  %v4351_v44 = vsub.s32 1, %v1440_v17  ;;  %v1437_v26 = vld [vmem:[%s5067_s6] sm:$0x3]  ;;  %v1857_v52 = vpop.f32.mrf.mxu0 }
 0x2b9   : > { %v2000_v15 = vpack.c.bf16 %v1368_v24, %v1367_v23  ;;  %2163 = vmatprep.mubr.bf16.mxu0 %v3703_v37  ;;  %v1321_v5 = vadd.f32 %v4255_v35, %v1299_v47  ;;  %v1271_v33 = vmul.f32 %v3474_v12, %v4222_v43  ;;  %v1361_v43 = vsel %vm1329_vm8, %v1313_v46, %v1345_v29 }
 0x2ba   : > { %v1300_v51 = vmul.f32 %v4249_v9, %v1278_v8  ;;  %vm1330_vm9 = vcmp.gt.f32.partialorder %v1314_v30, 0.0  ;;  %v1346_v0 = vmul.f32 0.01, %v1314_v30  ;;  %5136 = vst [vmem:[#allocation22_spill] sm:$0xff] %v4349_v40  ;;  %5137 = vst [vmem:[#allocation26_spill] sm:$0xff] %v4351_v44  ;;  %v1859_v24 = vpop.f32.mrf.mxu0 }
 0x2bb   : > { %v3476_v28 = vpop.eup %3475  ;;  %2194 = vmatmul.mubr.bf16.gmra.mxu1 %v2000_v15  ;;  %v1353_v22 = vmul.f32 0.01, %v1321_v5  ;;  %v1293_v6 = vmul.f32 %v4249_v9, %v1271_v33  ;;  %vm1337_vm10 = vcmp.gt.f32.partialorder %v1321_v5, 0.0  ;;  %v4367_v33 = vrot.slane %v1437_v26, %v4351_v44 }
 0x2bc   : > { %v3478_v16 = vpop.eup %3477  ;;  %2203 = vmatprep.mubr.bf16.mxu1 %v3703_v37  ;;  %v1322_v60 = vadd.f32 %v4255_v35, %v1300_v51  ;;  %v1272_v4 = vmul.f32 %v3476_v28, %v4230_v62  ;;  %v1362_v63 = vsel %vm1330_vm9, %v1314_v30, %v1346_v0 }
 0x2bd   : > { %v1279_v32 = vmul.f32 %v3478_v16, %v4233_v25  ;;  %v1997_v18 = vpack.c.bf16 %v1362_v63, %v1361_v43  ;;  %v1315_v62 = vadd.f32 %v4255_v35, %v1293_v6  ;;  %v1369_v46 = vsel %vm1337_vm10, %v1321_v5, %v1353_v22  ;;  %v1863_v5 = vpop.f32.mrf.mxu0 }
 0x2be   : > { %vm1338_vm11 = vcmp.gt.f32.partialorder %v1322_v60, 0.0  ;;  %v1354_v13 = vmul.f32 0.01, %v1322_v60  ;;  %v1294_v3 = vmul.f32 %v4249_v9, %v1272_v4  ;;  %v4373_v17 = vadd.f32 %v1859_v24, %v4367_v33 }
 0x2bf   : > { %v3480_v38 = vpop.eup %3479  ;;  %v1301_v19 = vmul.f32 %v4249_v9, %v1279_v32  ;;  %vm1331_vm12 = vcmp.gt.f32.partialorder %v1315_v62, 0.0  ;;  %v1347_v47 = vmul.f32 0.01, %v1315_v62  ;;  %v1865_v0 = vpop.f32.mrf.mxu0 }
 0x2c0   : > { %2164 = vmatmul.mubr.bf16.gmra.mxu0 %v1997_v18  ;;  %v1370_v48 = vsel %vm1338_vm11, %v1322_v60, %v1354_v13  ;;  %v1316_v25 = vadd.f32 %v4255_v35, %v1294_v3  ;;  %v1280_v57 = vmul.f32 %v3480_v38, %v4241_v58  ;;  %v4362_v58 = vrot.slane %v1437_v26, %v4349_v40 }
 0x2c1   : > { %v2001_v54 = vpack.c.bf16 %v1370_v48, %v1369_v46  ;;  %2173 = vmatprep.mubr.bf16.mxu0 %v3703_v37  ;;  %v1323_v49 = vadd.f32 %v4255_v35, %v1301_v19  ;;  %v1363_v8 = vsel %vm1331_vm12, %v1315_v62, %v1347_v47  ;;  %v4379_v60 = vadd.f32 %v1865_v0, %v4367_v33  ;;  %v1867_v22 = vpop.f32.mrf.mxu0  ;;  %v1916_v19 = vpop.f32.mrf.mxu1 }
 0x2c2   : > { %vm1332_vm13 = vcmp.gt.f32.partialorder %v1316_v25, 0.0  ;;  %v1348_v12 = vmul.f32 0.01, %v1316_v25  ;;  %v1302_v23 = vmul.f32 %v4249_v9, %v1280_v57  ;;  %v4370_v28 = vadd.f32 %v1857_v52, %v4362_v58 }
 0x2c3   : > { %2204 = vmatmul.mubr.bf16.gmra.mxu1 %v2001_v54  ;;  %v1355_v29 = vmul.f32 0.01, %v1323_v49  ;;  %vm1339_vm14 = vcmp.gt.f32.partialorder %v1323_v49, 0.0  ;;  %v4382_v6 = vadd.f32 %v1867_v22, %v4362_v58  ;;  %v1869_v43 = vpop.f32.mrf.mxu0  ;;  %v1918_v46 = vpop.f32.mrf.mxu1 }
 0x2c4   : > { %v1364_v15 = vsel %vm1332_vm13, %v1316_v25, %v1348_v12  ;;  %2213 = vmatprep.mubr.bf16.mxu1 %v3703_v37  ;;  %v1324_v30 = vadd.f32 %v4255_v35, %v1302_v23  ;;  %v4376_v37 = vadd.f32 %v1863_v5, %v4362_v58  ;;  %v4385_v63 = vadd.f32 %v1869_v43, %v4367_v33 }
 0x2c5   : > { %v1998_v51 = vpack.c.bf16 %v1364_v15, %v1363_v8  ;;  %v1371_v35 = vsel %vm1339_vm14, %v1323_v49, %v1355_v29  ;;  %5138 = vst [vmem:[#allocation17_spill] sm:$0xff] %v4382_v6  ;;  %v1873_v32 = vpop.f32.mrf.mxu0  ;;  %v1920_v48 = vpop.f32.mrf.mxu1 }
 0x2c6   : > { %vm1340_vm15 = vcmp.gt.f32.partialorder %v1324_v30, 0.0  ;;  %v1356_v9 = vmul.f32 0.01, %v1324_v30  ;;  %5139 = vst [vmem:[#allocation18_spill] sm:$0xff] %v4385_v63  ;;  %v4388_v18 = vadd.f32 %v1873_v32, %v4362_v58 }
 0x2c7   : > { %v1875_v13 = vpop.f32.mrf.mxu0  ;;  %v1922_v25 = vpop.f32.mrf.mxu1 }
 0x2c8   : > { %2174 = vmatmul.mubr.bf16.gmra.mxu0 %v1998_v51  ;;  %v1372_v16 = vsel %vm1340_vm15, %v1324_v30, %v1356_v9  ;;  %5140 = vst [vmem:[#allocation24_spill] sm:$0xff] %v4388_v18  ;;  %v4391_v3 = vadd.f32 %v1875_v13, %v4367_v33  ;;  %v1804_v13 = vadd.f32 %v4263_v61, %v4362_v58 }
 0x2c9   : > { %v2002_v4 = vpack.c.bf16 %v1372_v16, %v1371_v35  ;;  %v1877_v38 = vpop.f32.mrf.mxu0  ;;  %v4396_v57 = vpop.f32.mrf.mxu1  ;;  %v2019_v16 = vld [vmem:[%s5065_s4] sm:$0x3] }
 0x2ca   : > { %5141 = vst [vmem:[#allocation19_spill] sm:$0xff] %v4391_v3  ;;  %v4394_v62 = vadd.f32 %v1877_v38, %v4362_v58  ;;  %v4440_v43 = vrot.slane %v2019_v16, %v4349_v40  ;;  %v1806_v38 = vadd.f32 %v4265_v34, %v4367_v33 }
 0x2cb   : > { %2214 = vmatmul.mubr.bf16.gmra.mxu1 %v2002_v4  ;;  %v4398_v26 = vpop.f32.mrf.mxu1  ;;  %v4437_v4 = vpop.f32.mrf.mxu0 }
 0x2cc   : > { %5142 = vst [vmem:[#allocation20_spill] sm:$0xff] %v4394_v62  ;;  %5149 = vst [vmem:[#allocation30_spill] sm:$0xff] %v4437_v4  ;;  %v1917_v4 = vadd.f32 %v1916_v19, %v1804_v13  ;;  %v1919_v61 = vadd.f32 %v1918_v46, %v1806_v38 }
 0x2cd   : > { %v4400_v52 = vpop.f32.mrf.mxu1 }
 0x2cf   : > { %v4402_v54 = vpop.f32.mrf.mxu1 }
 0x2d1   : > { %v4404_v47 = vpop.f32.mrf.mxu1 }
 0x2d3   : > { %v4406_v49 = vpop.f32.mrf.mxu1 }
 0x2d5   : > { %v4408_v12 = vpop.f32.mrf.mxu1 }
 0x2d7   : > { %v4410_v23 = vpop.f32.mrf.mxu1 }
 0x2d9   : > { %v4412_v24 = vpop.f32.mrf.mxu1 }
 0x2db   : > { %v4414_v8 = vpop.f32.mrf.mxu1 }
 0x2dd   : > { %v4416_v15 = vpop.f32.mrf.mxu1 }
 0x2df   : > { %v4418_v30 = vpop.f32.mrf.mxu1 }
 0x2e1   : > { %v4420_v29 = vpop.f32.mrf.mxu1 }
 0x2e2   : > { %5143 = vst [vmem:[#allocation21_spill] sm:$0xff] %v4420_v29 }
 0x2e3   : > { %v4422_v5 = vpop.f32.mrf.mxu1 }
 0x2e4   : > { %5144 = vst [vmem:[#allocation23_spill] sm:$0xff] %v4422_v5 }
 0x2e5   : > { %v4424_v51 = vpop.f32.mrf.mxu1 }
 0x2e6   : > { %5145 = vst [vmem:[#allocation25_spill] sm:$0xff] %v4424_v51 }
 0x2e7   : > { %v4426_v9 = vpop.f32.mrf.mxu1 }
 0x2e8   : > { %5146 = vst [vmem:[#allocation27_spill] sm:$0xff] %v4426_v9  ;;  %v1810_v9 = vadd.f32 %v4269_v50, %v4367_v33 }
 0x2e9   : > { %v4428_v0 = vpop.f32.mrf.mxu1 }
 0x2ea   : > { %5147 = vst [vmem:[#allocation28_spill] sm:$0xff] %v4428_v0  ;;  %v4449_v0 = vrot.slane %v2019_v16, %v4351_v44  ;;  %v1923_v5 = vadd.f32 %v1922_v25, %v1810_v9 }
 0x2eb   : > { %v4430_v35 = vpop.f32.mrf.mxu1 }
 0x2ec   : > { %5148 = vst [vmem:[#allocation29_spill] sm:$0xff] %v4430_v35  ;;  %v1808_v35 = vadd.f32 %v4267_v39, %v4362_v58 }
 0x2ed   : > { %v4435_v22 = vpop.f32.mrf.mxu1 }
 0x2ee   : > { %v1921_v39 = vadd.f32 %v1920_v48, %v1808_v35 }
 0x2ef   : > { %v4442_v32 = vpop.f32.mrf.mxu1 }
 0x2f1   : > { %v4454_v40 = vpop.f32.mrf.mxu1 }
 0x2f3   : > { %v4464_v6 = vpop.f32.mrf.mxu1 }
 0x353   : > { %v2145_v62 = vpop.f32.mrf.mxu0 }
 0x354   : > { %v2146_v3 = vadd.f32 %v2145_v62, %v4440_v43 }
 0x355   : > { %v2147_v18 = vpop.f32.mrf.mxu0 }
 0x356   : > { %v2148_v63 = vadd.f32 %v2147_v18, %v4449_v0  ;;  %v4459_v51 = vadd.f32 %v2146_v3, %v1917_v4  ;;  %v4473_v3 = vpop.f32.mrf.mxu1  ;;  %v1816_v4 = vadd.f32 %v4273_v53, %v4367_v33 }
 0x357   : > { %v2149_v34 = vpop.f32.mrf.mxu0 }
 0x358   : > { %v4461_v16 = vadd.f32 %v2148_v63, %v1919_v61  ;;  %v2150_v62 = vadd.f32 %v2149_v34, %v4440_v43  ;;  %v4477_v46 = vpop.f32.mrf.mxu1 }
 0x359   : > { %v2151_v44 = vpop.f32.mrf.mxu0 }
 0x35a   : > { %5150 = vst [vmem:[#allocation31_spill] sm:$0xff] %v4461_v16  ;;  %v2152_v29 = vadd.f32 %v2151_v44, %v4449_v0  ;;  %v2258_v50 = vadd.f32 %v4461_v16, %v4459_v51  ;;  %v4469_v19 = vadd.f32 %v2150_v62, %v1921_v39  ;;  %v4479_v48 = vpop.f32.mrf.mxu1  ;;  %v1818_v62 = vadd.f32 %v4275_v1, %v4362_v58 }
 0x35b   : > { %v1820_v39 = vadd.f32 %v4277_v7, %v4367_v33  ;;  %v1830_v7 = vadd.f32 %v4291_v41, %v4367_v33 }
 0x35c   : > { %5151 = vst [vmem:[#allocation32_spill] sm:$0xff] %v4469_v19  ;;  %v4471_v18 = vadd.f32 %v2152_v29, %v1923_v5  ;;  %2259 = vadd.xlane.f32.xlu0 %v2258_v50  ;;  %v4481_v25 = vpop.f32.mrf.mxu1  ;;  %v1814_v5 = vadd.f32 %v4271_v56, %v4362_v58  ;;  %v1824_v50 = vadd.f32 %v4280_v11, %v4362_v58 }
 0x35d   : > { %v1826_v56 = vadd.f32 %v4283_v20, %v4367_v33  ;;  %v1834_v11 = vadd.f32 %v4296_v21, %v4362_v58  ;;  %v1836_v20 = vadd.f32 %v4300_v27, %v4367_v33  ;;  %v1844_v21 = vadd.f32 %v4318_v42, %v4362_v58 }
 0x35e   : > { %5152 = vst [vmem:[#allocation33_spill] sm:$0xff] %v4471_v18  ;;  %v2261_v63 = vadd.f32 %v4471_v18, %v4469_v19  ;;  %v4483_v44 = vpop.f32.mrf.mxu1  ;;  %v1929_v18 = vadd.f32 %v4398_v26, %v1816_v4  ;;  %v1846_v27 = vadd.f32 %v4322_v45, %v4367_v33  ;;  %v4549_v45 = vadd.f32 %v4340_v2, %v4362_v58 }
 0x360   : > { %2262 = vadd.xlane.f32.xlu1 %v2261_v63  ;;  %v4485_v9 = vpop.f32.mrf.mxu1  ;;  %v1828_v63 = vadd.f32 %v4287_v36, %v4362_v58  ;;  %v1838_v36 = vadd.f32 %v4306_v14, %v4362_v58  ;;  %v1848_v14 = vadd.f32 %v4327_v10, %v4362_v58  ;;  %v1937_v10 = vadd.f32 %v4404_v47, %v1824_v50 }
 0x361   : > { %v1939_v58 = vadd.f32 %v4406_v49, %v1826_v56  ;;  %v1947_v49 = vadd.f32 %v4412_v24, %v1834_v11 }
 0x362   : > { %v1951_v24 = vadd.f32 %v4416_v15, %v1838_v36  ;;  %v5155_v36 = vld [vmem:[#allocation17_spill] sm:$0xff] }
 0x373   : > { %v4487_v35 = vpop.f32.mrf.mxu1 }
 0x375   : > { %v4489_v29 = vpop.f32.mrf.mxu1 }
 0x377   : > { %v4495_v13 = vpop.f32.mrf.mxu1 }
 0x378   : > { %v2155_v38 = vpop.f32.mrf.mxu0 }
 0x379   : > { %v2156_v61 = vadd.f32 %v2155_v38, %v4440_v43  ;;  %v4498_v34 = vpop.f32.mrf.mxu1  ;;  %v1927_v38 = vadd.f32 %v4396_v57, %v1814_v5  ;;  %v1840_v57 = vadd.f32 %v4312_v55, %v4367_v33 }
 0x37a   : > { %v2157_v53 = vpop.f32.mrf.mxu0 }
 0x37b   : > { %v2158_v19 = vadd.f32 %v2157_v53, %v4449_v0  ;;  %v4513_v1 = vpop.f32.mrf.mxu1  ;;  %v4525_v26 = vadd.f32 %v2156_v61, %v1927_v38  ;;  %v1931_v53 = vadd.f32 %v4400_v52, %v1818_v62  ;;  %v1971_v52 = vadd.f32 %v4435_v22, %v4370_v28 }
 0x37c   : > { %v2159_v16 = vpop.f32.mrf.mxu0  ;;  %v1973_v28 = vadd.f32 %v4442_v32, %v4373_v17  ;;  %v1977_v17 = vadd.f32 %v4454_v40, %v4376_v37  ;;  %v1979_v40 = vadd.f32 %v4464_v6, %v4379_v60  ;;  %v1981_v60 = vadd.f32 %v4473_v3, %v5155_v36 }
 0x37d   : > { %v4527_v5 = vadd.f32 %v2158_v19, %v1929_v18  ;;  %v2160_v4 = vadd.f32 %v2159_v16, %v4440_v43  ;;  %v4530_v41 = vpop.f32.mrf.mxu1  ;;  %v4541_v19 = vadd.f32 %v4334_v31, %v4367_v33  ;;  %v1933_v16 = vadd.f32 %v4402_v54, %v1820_v39 }
 0x37e   : > { %v2161_v55 = vpop.f32.mrf.mxu0  ;;  %v4557_v54 = vadd.f32 %v4345_v59, %v4367_v33  ;;  %v1941_v59 = vadd.f32 %v4408_v12, %v1828_v63  ;;  %v1949_v12 = vadd.f32 %v4414_v8, %v1836_v20  ;;  %v1953_v8 = vadd.f32 %v4418_v30, %v1840_v57  ;;  %v5153_v20 = vld [vmem:[#allocation21_spill] sm:$0xff] }
 0x37f   : > { %v2162_v18 = vadd.f32 %v2161_v55, %v4449_v0  ;;  %v2199_v61 = vpop.f32.mrf.mxu1  ;;  %v2264_v42 = vadd.f32 %v4527_v5, %v4525_v26  ;;  %v4559_v39 = vadd.f32 %v2160_v4, %v1931_v53  ;;  %v1943_v4 = vadd.f32 %v4410_v23, %v1830_v7 }
 0x380   : > { %v2165_v62 = vpop.f32.mrf.mxu0  ;;  %v2200_v31 = vadd.f32 %v2199_v61, %v4440_v43  ;;  %v2188_v3 = vadd.f32 %v4489_v29, %v4449_v0 }
 0x381   : > { %v4561_v38 = vadd.f32 %v2162_v18, %v1933_v16  ;;  %v2166_v55 = vadd.f32 %v2165_v62, %v4440_v43  ;;  %2265 = vadd.xlane.f32.xlu0 %v2264_v42  ;;  %v2201_v2 = vpop.f32.mrf.mxu1 }
 0x382   : > { %v4567_v47 = vadd.f32 %v2200_v31, %v1971_v52  ;;  %v2167_v22 = vpop.f32.mrf.mxu0  ;;  %v2202_v50 = vadd.f32 %v2201_v2, %v4449_v0  ;;  %v5154_v2 = vld [vmem:[#allocation23_spill] sm:$0xff] }
 0x383   : > { %v2168_v53 = vadd.f32 %v2167_v22, %v4449_v0  ;;  %v2205_v16 = vpop.f32.mrf.mxu1  ;;  %v2267_v18 = vadd.f32 %v4561_v38, %v4559_v39  ;;  %v4582_v63 = vadd.f32 %v2166_v55, %v1937_v10  ;;  %v1957_v10 = vadd.f32 %v5153_v20, %v1844_v21  ;;  %v5156_v22 = vld [vmem:[#allocation25_spill] sm:$0xff] }
 0x384   : > { %v4578_v32 = vadd.f32 %v2202_v50, %v1973_v28  ;;  %v2169_v56 = vpop.f32.mrf.mxu0  ;;  %v2206_v61 = vadd.f32 %v2205_v16, %v4440_v43  ;;  %v1959_v15 = vadd.f32 %v5154_v2, %v1846_v27  ;;  %v1961_v30 = vadd.f32 %v5156_v22, %v1848_v14  ;;  %v5157_v16 = vld [vmem:[#allocation18_spill] sm:$0xff] }
 0x385   : > { %v4584_v23 = vadd.f32 %v2168_v53, %v1939_v58  ;;  %v2170_v7 = vadd.f32 %v2169_v56, %v4440_v43  ;;  %2268 = vadd.xlane.f32.xlu1 %v2267_v18  ;;  %v2207_v42 = vpop.f32.mrf.mxu1  ;;  %v1983_v27 = vadd.f32 %v4477_v46, %v5157_v16  ;;  %v5158_v14 = vld [vmem:[#allocation30_spill] sm:$0xff] }
 0x386   : > { %v4590_v37 = vadd.f32 %v2206_v61, %v1977_v17  ;;  %v2171_v11 = vpop.f32.mrf.mxu0  ;;  %v2208_v52 = vadd.f32 %v2207_v42, %v4449_v0 }
 0x387   : > { %v2172_v62 = vadd.f32 %v2171_v11, %v4449_v0  ;;  %v2209_v31 = vpop.f32.mrf.mxu1  ;;  %v2270_v55 = vadd.f32 %v4584_v23, %v4582_v63  ;;  %v4605_v57 = vadd.f32 %v2170_v7, %v1941_v59  ;;  %v1880_v59 = vadd.f32 %v5158_v14, %v4367_v33 }
 0x388   : > { %v4601_v6 = vadd.f32 %v2208_v52, %v1979_v40  ;;  %v2175_v58 = vpop.f32.mrf.mxu0  ;;  %v2210_v28 = vadd.f32 %v2209_v31, %v4440_v43  ;;  %v5160_v40 = vld [vmem:[#allocation24_spill] sm:$0xff]  ;;  %v2186_v11 = vadd.f32 %v4487_v35, %v4440_v43  ;;  %v4640_v35 = vadd.f32 %v2188_v3, %v1959_v15 }
 0x389   : > { %v4607_v21 = vadd.f32 %v2172_v62, %v1943_v4  ;;  %v2176_v50 = vadd.f32 %v2175_v58, %v4440_v43  ;;  %2271 = vadd.xlane.f32.xlu0 %v2270_v55  ;;  %v2211_v53 = vpop.f32.mrf.mxu1  ;;  %v5159_v4 = vld [vmem:[#allocation27_spill] sm:$0xff]  ;;  %v1987_v29 = vadd.f32 %v4479_v48, %v5160_v40  ;;  %v5161_v62 = vld [vmem:[#allocation29_spill] sm:$0xff] }
 0x38a   : > { %v4614_v18 = vadd.f32 %v2210_v28, %v1981_v60  ;;  %v2177_v17 = vpop.f32.mrf.mxu0  ;;  %v2212_v56 = vadd.f32 %v2211_v53, %v4449_v0  ;;  %v1963_v61 = vadd.f32 %v5159_v4, %v4541_v19  ;;  %v1969_v19 = vadd.f32 %v5161_v62, %v4557_v54  ;;  %v5162_v48 = vld [vmem:[#allocation19_spill] sm:$0xff] }
 0x38b   : > { %v2178_v7 = vadd.f32 %v2177_v17, %v4449_v0  ;;  %v2215_v42 = vpop.f32.mrf.mxu1  ;;  %v2273_v46 = vadd.f32 %v4607_v21, %v4605_v57  ;;  %v4633_v31 = vadd.f32 %v2176_v50, %v1947_v49  ;;  %v1989_v60 = vadd.f32 %v4481_v25, %v5162_v48  ;;  %v5163_v25 = vld [vmem:[#allocation20_spill] sm:$0xff]  ;;  %v5165_v62 = vld [vmem:[#allocation31_spill] sm:$0xff] }
 0x38c   : > { %v4628_v52 = vadd.f32 %v2212_v56, %v1983_v27  ;;  %v2179_v20 = vpop.f32.mrf.mxu0  ;;  %v2216_v33 = vadd.f32 %v2215_v42, %v4440_v43  ;;  %v2192_v54 = vadd.f32 %v4498_v34, %v4449_v0  ;;  %v2198_v49 = vadd.f32 %v4530_v41, %v4449_v0 }
 0x38d   : > { %v4635_v55 = vadd.f32 %v2178_v7, %v1949_v12  ;;  %v2180_v2 = vadd.f32 %v2179_v20, %v4440_v43  ;;  %2274 = vadd.xlane.f32.xlu1 %v2273_v46  ;;  %v2217_v36 = vpop.f32.mrf.mxu1  ;;  %v1991_v15 = vadd.f32 %v4483_v44, %v5163_v25  ;;  %v4654_v16 = vadd.f32 %v2186_v11, %v1957_v10  ;;  %v5164_v44 = vld [vmem:[#allocation28_spill] sm:$0xff] }
 0x38e   : > { %v4642_v58 = vadd.f32 %v2216_v33, %v1987_v29  ;;  %v2181_v28 = vpop.f32.mrf.mxu0  ;;  %v2218_v22 = vadd.f32 %v2217_v36, %v4449_v0  ;;  %v2190_v34 = vadd.f32 %v4495_v13, %v4440_v43  ;;  %v2196_v41 = vadd.f32 %v4513_v1, %v4440_v43 }
 0x38f   : > { %v2182_v12 = vadd.f32 %v2181_v28, %v4449_v0  ;;  %v2219_v50 = vpop.f32.mrf.mxu1  ;;  %v2276_v53 = vadd.f32 %v4635_v55, %v4633_v31  ;;  %v4663_v17 = vadd.f32 %v2180_v2, %v1951_v24  ;;  %v1967_v10 = vadd.f32 %v5164_v44, %v4549_v45  ;;  %v5166_v28 = vld [vmem:[#allocation32_spill] sm:$0xff] }
 0x390   : > { %v4656_v27 = vadd.f32 %v2218_v22, %v1989_v60  ;;  %v2220_v3 = vadd.f32 %v2219_v50, %v4440_v43  ;;  %v1993_v4 = vadd.f32 %v4485_v9, %v1880_v59  ;;  %v4673_v46 = vadd.f32 %v2192_v54, %v1963_v61  ;;  %v5167_v54 = vld [vmem:[#allocation33_spill] sm:$0xff] }
 0x391   : > { %v4665_v56 = vadd.f32 %v2182_v12, %v1953_v8  ;;  %2277 = vadd.xlane.f32.xlu0 %v2276_v53  ;;  %v2221_v14 = vpop.f32.mrf.mxu1  ;;  %v4675_v13 = vadd.f32 %v2198_v49, %v1969_v19  ;;  %v2282_v1 = vadd.f32 %v4640_v35, %v4654_v16  ;;  %v4683_v8 = vadd.f32 %v2190_v34, %v1961_v30 }
 0x392   : > { %v4670_v7 = vadd.f32 %v2220_v3, %v1991_v15  ;;  %v2222_v42 = vadd.f32 %v2221_v14, %v4449_v0  ;;  %v4685_v45 = vadd.f32 %v2196_v41, %v1967_v10  ;;  %v2291_v59 = vadd.f32 %v4578_v32, %v4567_v47 }
 0x393   : > { %v2279_v43 = vadd.f32 %v4665_v56, %v4663_v17  ;;  %v2285_v0 = vadd.f32 %v4673_v46, %v4683_v8  ;;  %v2294_v61 = vadd.f32 %v4601_v6, %v4590_v37  ;;  %v2297_v30 = vadd.f32 %v4628_v52, %v4614_v18 }
 0x394   : > { %v4681_v24 = vadd.f32 %v2222_v42, %v1993_v4  ;;  %v2288_v9 = vadd.f32 %v4675_v13, %v4685_v45  ;;  %v2300_v40 = vadd.f32 %v4656_v27, %v4642_v58 }
 0x395   : > { %2280 = vadd.xlane.f32.xlu1 %v2279_v43  ;;  %2283 = vadd.xlane.f32.xlu0 %v2282_v1 }
 0x396   : > { %v2303_v29 = vadd.f32 %v4681_v24, %v4670_v7 }
 0x399   : > { %2286 = vadd.xlane.f32.xlu1 %v2285_v0  ;;  %2289 = vadd.xlane.f32.xlu0 %v2288_v9 }
 0x39d   : > { %2292 = vadd.xlane.f32.xlu1 %v2291_v59  ;;  %2295 = vadd.xlane.f32.xlu0 %v2294_v61 }
 0x3a1   : > { %2298 = vadd.xlane.f32.xlu1 %v2297_v30  ;;  %2301 = vadd.xlane.f32.xlu0 %v2300_v40 }
 0x3a5   : > { %2304 = vadd.xlane.f32.xlu1 %v2303_v29 }
 0x3e5   : > { %v2260_v11 = vpop.xlane.xlu0 %2259 }
 0x3e6   : > { %v2307_v20 = vmul.f32 0.00390625, %v2260_v11 }
 0x3e8   : > { %v4702_v33 = vsub.f32 %v4459_v51, %v2307_v20  ;;  %v4705_v19 = vsub.f32 %v5165_v62, %v2307_v20 }
 0x3e9   : > { %v2263_v2 = vpop.xlane.xlu1 %2262 }
 0x3ea   : > { %v2308_v36 = vmul.f32 0.00390625, %v2263_v2  ;;  %v2355_v48 = vmul.f32 %v4702_v33, %v4702_v33  ;;  %v2356_v60 = vmul.f32 %v4705_v19, %v4705_v19 }
 0x3ec   : > { %v4712_v22 = vsub.f32 %v5166_v28, %v2308_v36  ;;  %v4715_v49 = vsub.f32 %v5167_v54, %v2308_v36  ;;  %v2387_v12 = vadd.f32 %v2356_v60, %v2355_v48 }
 0x3ee   : > { %2388 = vadd.xlane.f32.xlu0 %v2387_v12  ;;  %v2357_v51 = vmul.f32 %v4712_v22, %v4712_v22  ;;  %v2358_v50 = vmul.f32 %v4715_v49, %v4715_v49 }
 0x3f0   : > { %v2390_v53 = vadd.f32 %v2358_v50, %v2357_v51 }
 0x3f2   : > { %2391 = vadd.xlane.f32.xlu1 %v2390_v53 }
 0x40a   : > { %v2266_v25 = vpop.xlane.xlu0 %2265 }
 0x40b   : > { %v2309_v15 = vmul.f32 0.00390625, %v2266_v25 }
 0x40d   : > { %v4722_v3 = vsub.f32 %v4525_v26, %v2309_v15  ;;  %v4725_v34 = vsub.f32 %v4527_v5, %v2309_v15 }
 0x40e   : > { %v2269_v41 = vpop.xlane.xlu1 %2268 }
 0x40f   : > { %v2310_v14 = vmul.f32 0.00390625, %v2269_v41  ;;  %v2359_v44 = vmul.f32 %v4722_v3, %v4722_v3  ;;  %v2360_v10 = vmul.f32 %v4725_v34, %v4725_v34 }
 0x411   : > { %v4732_v4 = vsub.f32 %v4559_v39, %v2310_v14  ;;  %v4735_v42 = vsub.f32 %v4561_v38, %v2310_v14  ;;  %v2393_v43 = vadd.f32 %v2360_v10, %v2359_v44 }
 0x412   : > { %v2272_v26 = vpop.xlane.xlu0 %2271 }
 0x413   : > { %v2311_v1 = vmul.f32 0.00390625, %v2272_v26  ;;  %2394 = vadd.xlane.f32.xlu0 %v2393_v43  ;;  %v2361_v5 = vmul.f32 %v4732_v4, %v4732_v4  ;;  %v2362_v0 = vmul.f32 %v4735_v42, %v4735_v42 }
 0x415   : > { %v4742_v9 = vsub.f32 %v4582_v63, %v2311_v1  ;;  %v4745_v59 = vsub.f32 %v4584_v23, %v2311_v1  ;;  %v2396_v39 = vadd.f32 %v2362_v0, %v2361_v5 }
 0x416   : > { %v2275_v61 = vpop.xlane.xlu1 %2274 }
 0x417   : > { %v2312_v38 = vmul.f32 0.00390625, %v2275_v61  ;;  %2397 = vadd.xlane.f32.xlu1 %v2396_v39  ;;  %v2363_v30 = vmul.f32 %v4742_v9, %v4742_v9  ;;  %v2364_v40 = vmul.f32 %v4745_v59, %v4745_v59 }
 0x419   : > { %v4752_v29 = vsub.f32 %v4605_v57, %v2312_v38  ;;  %v4755_v11 = vsub.f32 %v4607_v21, %v2312_v38  ;;  %v2399_v63 = vadd.f32 %v2364_v40, %v2363_v30 }
 0x41a   : > { %v2278_v20 = vpop.xlane.xlu0 %2277 }
 0x41b   : > { %v2313_v23 = vmul.f32 0.00390625, %v2278_v20  ;;  %2400 = vadd.xlane.f32.xlu0 %v2399_v63  ;;  %v2365_v62 = vmul.f32 %v4752_v29, %v4752_v29  ;;  %v2366_v2 = vmul.f32 %v4755_v11, %v4755_v11 }
 0x41d   : > { %v4762_v36 = vsub.f32 %v4633_v31, %v2313_v23  ;;  %v4765_v48 = vsub.f32 %v4635_v55, %v2313_v23  ;;  %v2402_v57 = vadd.f32 %v2366_v2, %v2365_v62 }
 0x41e   : > { %v2281_v60 = vpop.xlane.xlu1 %2280  ;;  %v2284_v21 = vpop.xlane.xlu0 %2283 }
 0x41f   : > { %v2314_v28 = vmul.f32 0.00390625, %v2281_v60  ;;  %v2315_v54 = vmul.f32 0.00390625, %v2284_v21  ;;  %2403 = vadd.xlane.f32.xlu1 %v2402_v57  ;;  %v2367_v12 = vmul.f32 %v4762_v36, %v4762_v36  ;;  %v2368_v51 = vmul.f32 %v4765_v48, %v4765_v48 }
 0x421   : > { %v4772_v50 = vsub.f32 %v4663_v17, %v2314_v28  ;;  %v4775_v31 = vsub.f32 %v4665_v56, %v2314_v28  ;;  %v4778_v55 = vsub.f32 %v4654_v16, %v2315_v54  ;;  %v4781_v53 = vsub.f32 %v4640_v35, %v2315_v54 }
 0x422   : > { %v2287_v25 = vpop.xlane.xlu1 %2286  ;;  %v2290_v15 = vpop.xlane.xlu0 %2289  ;;  %v2405_v41 = vadd.f32 %v2368_v51, %v2367_v12 }
 0x423   : > { %v2316_v14 = vmul.f32 0.00390625, %v2287_v25  ;;  %v2317_v44 = vmul.f32 0.00390625, %v2290_v15  ;;  %v2369_v10 = vmul.f32 %v4772_v50, %v4772_v50  ;;  %v2370_v17 = vmul.f32 %v4775_v31, %v4775_v31 }
 0x424   : > { %2406 = vadd.xlane.f32.xlu0 %v2405_v41  ;;  %v2371_v56 = vmul.f32 %v4778_v55, %v4778_v55  ;;  %v2372_v16 = vmul.f32 %v4781_v53, %v4781_v53 }
 0x425   : > { %v4792_v35 = vsub.f32 %v4683_v8, %v2316_v14  ;;  %v4795_v43 = vsub.f32 %v4673_v46, %v2316_v14  ;;  %v4798_v26 = vsub.f32 %v4685_v45, %v2317_v44  ;;  %v4801_v1 = vsub.f32 %v4675_v13, %v2317_v44 }
 0x426   : > { %v2293_v5 = vpop.xlane.xlu1 %2292  ;;  %v2296_v0 = vpop.xlane.xlu0 %2295  ;;  %v2408_v39 = vadd.f32 %v2370_v17, %v2369_v10  ;;  %v2411_v61 = vadd.f32 %v2372_v16, %v2371_v56 }
 0x427   : > { %v2318_v38 = vmul.f32 0.00390625, %v2293_v5  ;;  %v2319_v30 = vmul.f32 0.00390625, %v2296_v0  ;;  %v2373_v40 = vmul.f32 %v4792_v35, %v4792_v35  ;;  %v2374_v8 = vmul.f32 %v4795_v43, %v4795_v43 }
 0x428   : > { %2409 = vadd.xlane.f32.xlu1 %v2408_v39  ;;  %2412 = vadd.xlane.f32.xlu0 %v2411_v61  ;;  %v2375_v46 = vmul.f32 %v4798_v26, %v4798_v26  ;;  %v2376_v13 = vmul.f32 %v4801_v1, %v4801_v1 }
 0x429   : > { %v4812_v45 = vsub.f32 %v4567_v47, %v2318_v38  ;;  %v4815_v63 = vsub.f32 %v4578_v32, %v2318_v38  ;;  %v4818_v20 = vsub.f32 %v4590_v37, %v2319_v30  ;;  %v4821_v23 = vsub.f32 %v4601_v6, %v2319_v30 }
 0x42a   : > { %v2299_v62 = vpop.xlane.xlu1 %2298  ;;  %v2302_v2 = vpop.xlane.xlu0 %2301  ;;  %v2414_v57 = vadd.f32 %v2374_v8, %v2373_v40  ;;  %v2417_v60 = vadd.f32 %v2376_v13, %v2375_v46  ;;  %v2256_v8 = vld [vmem:[%s5070_s9] sm:$0x3]  ;;  %v5168_v13 = vld [vmem:[#allocation22_spill] sm:$0xff] }
 0x42b   : > { %v2320_v21 = vmul.f32 0.00390625, %v2299_v62  ;;  %v2321_v28 = vmul.f32 0.00390625, %v2302_v2  ;;  %v2377_v54 = vmul.f32 %v4812_v45, %v4812_v45  ;;  %v2378_v47 = vmul.f32 %v4815_v63, %v4815_v63  ;;  %v2257_v46 = vld [vmem:[%s5071_s10] sm:$0x3]  ;;  %v5169_v2 = vld [vmem:[#allocation26_spill] sm:$0xff] }
 0x42c   : > { %2415 = vadd.xlane.f32.xlu1 %v2414_v57  ;;  %2418 = vadd.xlane.f32.xlu0 %v2417_v60  ;;  %v2379_v32 = vmul.f32 %v4818_v20, %v4818_v20  ;;  %v2380_v37 = vmul.f32 %v4821_v23, %v4821_v23  ;;  %v4868_v62 = vrot.slane %v2256_v8, %v5168_v13 }
 0x42d   : > { %v4832_v6 = vsub.f32 %v4614_v18, %v2320_v21  ;;  %v4835_v12 = vsub.f32 %v4628_v52, %v2320_v21  ;;  %v4838_v51 = vsub.f32 %v4642_v58, %v2321_v28  ;;  %v4841_v25 = vsub.f32 %v4656_v27, %v2321_v28 }
 0x42e   : > { %v2305_v15 = vpop.xlane.xlu1 %2304  ;;  %v2420_v41 = vadd.f32 %v2378_v47, %v2377_v54  ;;  %v2423_v14 = vadd.f32 %v2380_v37, %v2379_v32  ;;  %v4871_v57 = vrot.slane %v2256_v8, %v5169_v2  ;;  %v4874_v21 = vrot.slane %v2257_v46, %v5168_v13 }
 0x42f   : > { %v2322_v44 = vmul.f32 0.00390625, %v2305_v15  ;;  %v2381_v10 = vmul.f32 %v4832_v6, %v4832_v6  ;;  %v2382_v18 = vmul.f32 %v4835_v12, %v4835_v12  ;;  %v2383_v52 = vmul.f32 %v4838_v51, %v4838_v51 }
 0x430   : > { %2421 = vadd.xlane.f32.xlu1 %v2420_v41  ;;  %2424 = vadd.xlane.f32.xlu0 %v2423_v14  ;;  %v2384_v58 = vmul.f32 %v4841_v25, %v4841_v25  ;;  %v4877_v28 = vrot.slane %v2257_v46, %v5169_v2 }
 0x431   : > { %v4852_v27 = vsub.f32 %v4670_v7, %v2322_v44  ;;  %v4855_v17 = vsub.f32 %v4681_v24, %v2322_v44  ;;  %v2426_v56 = vadd.f32 %v2382_v18, %v2381_v10 }
 0x432   : > { %v2429_v16 = vadd.f32 %v2384_v58, %v2383_v52 }
 0x433   : > { %v2385_v5 = vmul.f32 %v4852_v27, %v4852_v27  ;;  %v2386_v0 = vmul.f32 %v4855_v17, %v4855_v17 }
 0x434   : > { %2427 = vadd.xlane.f32.xlu1 %v2426_v56  ;;  %2430 = vadd.xlane.f32.xlu0 %v2429_v16 }
 0x435   : > { %v2432_v39 = vadd.f32 %v2386_v0, %v2385_v5 }
 0x438   : > { %2433 = vadd.xlane.f32.xlu1 %v2432_v39 }
 0x477   : > { %v2389_v61 = vpop.xlane.xlu0 %2388 }
 0x478   : > { %v2435_v38 = vmul.f32 0.00390625, %v2389_v61 }
 0x47a   : > { %v2451_v30 = vadd.f32 1e-05, %v2435_v38 }
 0x47b   : > { %v2392_v7 = vpop.xlane.xlu1 %2391 }
 0x47c   : > { %3481 = vrsqrt.f32 %v2451_v30  ;;  %v2436_v40 = vmul.f32 0.00390625, %v2392_v7 }
 0x47e   : > { %v2452_v24 = vadd.f32 1e-05, %v2436_v40 }
 0x480   : > { %3483 = vrsqrt.f32 %v2452_v24 }
 0x489   : > { %v3482_v60 = vpop.eup %3481 }
 0x48a   : > { %v2483_v54 = vmul.f32 %v3482_v60, %v4702_v33  ;;  %v2484_v47 = vmul.f32 %v3482_v60, %v4705_v19 }
 0x48c   : > { %v2526_v32 = vmul.f32 %v4868_v62, %v2483_v54  ;;  %v2527_v37 = vmul.f32 %v4871_v57, %v2484_v47 }
 0x48d   : > { %v3484_v15 = vpop.eup %3483 }
 0x48e   : > { %v2569_v41 = vadd.f32 %v4874_v21, %v2526_v32  ;;  %v2570_v14 = vadd.f32 %v4877_v28, %v2527_v37  ;;  %v2485_v44 = vmul.f32 %v3484_v15, %v4712_v22  ;;  %v2486_v10 = vmul.f32 %v3484_v15, %v4715_v49 }
 0x490   : > { %vm2601_vm0 = vcmp.gt.f32.partialorder %v2569_v41, 0.0  ;;  %vm2602_vm1 = vcmp.gt.f32.partialorder %v2570_v14, 0.0  ;;  %v2633_v18 = vmul.f32 0.01, %v2569_v41  ;;  %v2634_v33 = vmul.f32 0.01, %v2570_v14 }
 0x491   : > { %v2528_v19 = vmul.f32 %v4868_v62, %v2485_v44  ;;  %v2529_v52 = vmul.f32 %v4871_v57, %v2486_v10 }
 0x492   : > { %v2665_v58 = vsel %vm2601_vm0, %v2569_v41, %v2633_v18  ;;  %v2666_v56 = vsel %vm2602_vm1, %v2570_v14, %v2634_v33 }
 0x493   : > { %2697 = vst [vmem:[%s4891_s25] sm:$0xff] %v2665_v58  ;;  %2698 = vst [vmem:[%s4891_s25 + $0x8] sm:$0xff] %v2666_v56  ;;  %v2571_v22 = vadd.f32 %v4874_v21, %v2528_v19  ;;  %v2572_v49 = vadd.f32 %v4877_v28, %v2529_v52 }
 0x495   : > { %vm2603_vm2 = vcmp.gt.f32.partialorder %v2571_v22, 0.0  ;;  %vm2604_vm3 = vcmp.gt.f32.partialorder %v2572_v49, 0.0  ;;  %v2635_v16 = vmul.f32 0.01, %v2571_v22  ;;  %v2636_v5 = vmul.f32 0.01, %v2572_v49 }
 0x497   : > { %v2667_v0 = vsel %vm2603_vm2, %v2571_v22, %v2635_v16  ;;  %v2668_v39 = vsel %vm2604_vm3, %v2572_v49, %v2636_v5 }
 0x498   : > { %2699 = vst [vmem:[%s4891_s25 + $0x10] sm:$0xff] %v2667_v0  ;;  %2700 = vst [vmem:[%s4891_s25 + $0x18] sm:$0xff] %v2668_v39 }
 0x49c   : > { %v2395_v61 = vpop.xlane.xlu0 %2394 }
 0x49d   : > { %v2437_v38 = vmul.f32 0.00390625, %v2395_v61 }
 0x49f   : > { %v2453_v30 = vadd.f32 1e-05, %v2437_v38 }
 0x4a0   : > { %v2398_v7 = vpop.xlane.xlu1 %2397 }
 0x4a1   : > { %3485 = vrsqrt.f32 %v2453_v30  ;;  %v2438_v40 = vmul.f32 0.00390625, %v2398_v7 }
 0x4a3   : > { %v2454_v24 = vadd.f32 1e-05, %v2438_v40 }
 0x4a4   : > { %v2401_v8 = vpop.xlane.xlu0 %2400 }
 0x4a5   : > { %3487 = vrsqrt.f32 %v2454_v24  ;;  %v2439_v46 = vmul.f32 0.00390625, %v2401_v8 }
 0x4a7   : > { %v2455_v13 = vadd.f32 1e-05, %v2439_v46 }
 0x4a8   : > { %v2404_v2 = vpop.xlane.xlu1 %2403 }
 0x4a9   : > { %3489 = vrsqrt.f32 %v2455_v13  ;;  %v2440_v60 = vmul.f32 0.00390625, %v2404_v2 }
 0x4ab   : > { %v2456_v54 = vadd.f32 1e-05, %v2440_v60 }
 0x4ad   : > { %3491 = vrsqrt.f32 %v2456_v54  ;;  %v2407_v47 = vpop.xlane.xlu0 %2406 }
 0x4ae   : > { %v3486_v32 = vpop.eup %3485  ;;  %v2441_v37 = vmul.f32 0.00390625, %v2407_v47 }
 0x4af   : > { %v2487_v15 = vmul.f32 %v3486_v32, %v4722_v3  ;;  %v2488_v41 = vmul.f32 %v3486_v32, %v4725_v34 }
 0x4b0   : > { %v2457_v14 = vadd.f32 1e-05, %v2441_v37 }
 0x4b1   : > { %v2530_v44 = vmul.f32 %v4868_v62, %v2487_v15  ;;  %v2531_v10 = vmul.f32 %v4871_v57, %v2488_v41  ;;  %v2410_v18 = vpop.xlane.xlu1 %2409  ;;  %v2413_v33 = vpop.xlane.xlu0 %2412 }
 0x4b2   : > { %v3488_v19 = vpop.eup %3487  ;;  %3493 = vrsqrt.f32 %v2457_v14  ;;  %v2442_v52 = vmul.f32 0.00390625, %v2410_v18  ;;  %v2443_v58 = vmul.f32 0.00390625, %v2413_v33 }
 0x4b3   : > { %v2573_v56 = vadd.f32 %v4874_v21, %v2530_v44  ;;  %v2574_v22 = vadd.f32 %v4877_v28, %v2531_v10  ;;  %v2489_v49 = vmul.f32 %v3488_v19, %v4732_v4  ;;  %v2490_v3 = vmul.f32 %v3488_v19, %v4735_v42 }
 0x4b4   : > { %v2458_v34 = vadd.f32 1e-05, %v2442_v52  ;;  %v2459_v16 = vadd.f32 1e-05, %v2443_v58 }
 0x4b5   : > { %vm2605_vm4 = vcmp.gt.f32.partialorder %v2573_v56, 0.0  ;;  %vm2606_vm5 = vcmp.gt.f32.partialorder %v2574_v22, 0.0  ;;  %v2637_v5 = vmul.f32 0.01, %v2573_v56  ;;  %v2638_v0 = vmul.f32 0.01, %v2574_v22  ;;  %v2416_v39 = vpop.xlane.xlu1 %2415  ;;  %v2419_v61 = vpop.xlane.xlu0 %2418 }
 0x4b6   : > { %v3490_v38 = vpop.eup %3489  ;;  %v2532_v30 = vmul.f32 %v4868_v62, %v2489_v49  ;;  %v2533_v7 = vmul.f32 %v4871_v57, %v2490_v3  ;;  %3495 = vrsqrt.f32 %v2458_v34  ;;  %v2444_v40 = vmul.f32 0.00390625, %v2416_v39 }
 0x4b7   : > { %v2669_v4 = vsel %vm2605_vm4, %v2573_v56, %v2637_v5  ;;  %v2670_v24 = vsel %vm2606_vm5, %v2574_v22, %v2638_v0  ;;  %v2491_v42 = vmul.f32 %v3490_v38, %v4742_v9  ;;  %v2492_v8 = vmul.f32 %v3490_v38, %v4745_v59 }
 0x4b8   : > { %2701 = vst [vmem:[%s4891_s25 + $0x20] sm:$0xff] %v2669_v4  ;;  %2702 = vst [vmem:[%s4891_s25 + $0x28] sm:$0xff] %v2670_v24  ;;  %v2575_v46 = vadd.f32 %v4874_v21, %v2532_v30  ;;  %v2576_v13 = vadd.f32 %v4877_v28, %v2533_v7  ;;  %3497 = vrsqrt.f32 %v2459_v16  ;;  %v2460_v2 = vadd.f32 1e-05, %v2444_v40 }
 0x4b9   : > { %v2534_v60 = vmul.f32 %v4868_v62, %v2491_v42  ;;  %v2535_v54 = vmul.f32 %v4871_v57, %v2492_v8  ;;  %v2445_v47 = vmul.f32 0.00390625, %v2419_v61  ;;  %v2422_v32 = vpop.xlane.xlu1 %2421  ;;  %v2425_v15 = vpop.xlane.xlu0 %2424 }
 0x4ba   : > { %v3492_v37 = vpop.eup %3491  ;;  %vm2607_vm6 = vcmp.gt.f32.partialorder %v2575_v46, 0.0  ;;  %vm2608_vm7 = vcmp.gt.f32.partialorder %v2576_v13, 0.0  ;;  %v2639_v9 = vmul.f32 0.01, %v2575_v46  ;;  %v2640_v59 = vmul.f32 0.01, %v2576_v13 }
 0x4bb   : > { %v2577_v41 = vadd.f32 %v4874_v21, %v2534_v60  ;;  %v2578_v14 = vadd.f32 %v4877_v28, %v2535_v54  ;;  %v2493_v44 = vmul.f32 %v3492_v37, %v4752_v29  ;;  %v2494_v10 = vmul.f32 %v3492_v37, %v4755_v11 }
 0x4bc   : > { %v2671_v18 = vsel %vm2607_vm6, %v2575_v46, %v2639_v9  ;;  %v2672_v33 = vsel %vm2608_vm7, %v2576_v13, %v2640_v59  ;;  %3499 = vrsqrt.f32 %v2460_v2  ;;  %v2461_v19 = vadd.f32 1e-05, %v2445_v47 }
 0x4bd   : > { %2703 = vst [vmem:[%s4891_s25 + $0x30] sm:$0xff] %v2671_v18  ;;  %2704 = vst [vmem:[%s4891_s25 + $0x38] sm:$0xff] %v2672_v33  ;;  %vm2609_vm8 = vcmp.gt.f32.partialorder %v2577_v41, 0.0  ;;  %vm2610_vm9 = vcmp.gt.f32.partialorder %v2578_v14, 0.0  ;;  %v2641_v52 = vmul.f32 0.01, %v2577_v41  ;;  %v2428_v56 = vpop.xlane.xlu1 %2427  ;;  %v2536_v22 = vmul.f32 %v4868_v62, %v2493_v44  ;;  %v2431_v30 = vpop.xlane.xlu0 %2430 }
 0x4be   : > { %v2642_v58 = vmul.f32 0.01, %v2578_v14  ;;  %v2537_v49 = vmul.f32 %v4871_v57, %v2494_v10  ;;  %3501 = vrsqrt.f32 %v2461_v19  ;;  %v2446_v29 = vmul.f32 0.00390625, %v2422_v32 }
 0x4bf   : > { %v3494_v11 = vpop.eup %3493  ;;  %v2673_v3 = vsel %vm2609_vm8, %v2577_v41, %v2641_v52  ;;  %v2447_v16 = vmul.f32 0.00390625, %v2425_v15  ;;  %v2448_v5 = vmul.f32 0.00390625, %v2428_v56  ;;  %v2579_v0 = vadd.f32 %v4874_v21, %v2536_v22 }
 0x4c0   : > { %v2674_v34 = vsel %vm2610_vm9, %v2578_v14, %v2642_v58  ;;  %2705 = vst [vmem:[%s4891_s25 + $0x40] sm:$0xff] %v2673_v3  ;;  %v2580_v39 = vadd.f32 %v4877_v28, %v2537_v49  ;;  %v2495_v61 = vmul.f32 %v3494_v11, %v4762_v36  ;;  %v2496_v38 = vmul.f32 %v3494_v11, %v4765_v48 }
 0x4c1   : > { %2706 = vst [vmem:[%s4891_s25 + $0x48] sm:$0xff] %v2674_v34  ;;  %v2462_v7 = vadd.f32 1e-05, %v2446_v29  ;;  %v2463_v40 = vadd.f32 1e-05, %v2447_v16  ;;  %vm2611_vm10 = vcmp.gt.f32.partialorder %v2579_v0, 0.0 }
 0x4c2   : > { %v2464_v4 = vadd.f32 1e-05, %v2448_v5  ;;  %vm2612_vm11 = vcmp.gt.f32.partialorder %v2580_v39, 0.0  ;;  %v2643_v24 = vmul.f32 0.01, %v2579_v0  ;;  %v2538_v46 = vmul.f32 %v4868_v62, %v2495_v61 }
 0x4c3   : > { %v2644_v42 = vmul.f32 0.01, %v2580_v39  ;;  %v3496_v8 = vpop.eup %3495  ;;  %v2539_v13 = vmul.f32 %v4871_v57, %v2496_v38  ;;  %3503 = vrsqrt.f32 %v2462_v7  ;;  %v2449_v2 = vmul.f32 0.00390625, %v2431_v30 }
 0x4c4   : > { %v2675_v36 = vsel %vm2611_vm10, %v2579_v0, %v2643_v24  ;;  %v2497_v48 = vmul.f32 %v3496_v8, %v4772_v50  ;;  %v2498_v54 = vmul.f32 %v3496_v8, %v4775_v31  ;;  %v2581_v32 = vadd.f32 %v4874_v21, %v2538_v46  ;;  %v2434_v31 = vpop.xlane.xlu1 %2433 }
 0x4c5   : > { %v2676_v60 = vsel %vm2612_vm11, %v2580_v39, %v2644_v42  ;;  %v3498_v47 = vpop.eup %3497  ;;  %2707 = vst [vmem:[%s4891_s25 + $0x50] sm:$0xff] %v2675_v36  ;;  %v2582_v37 = vadd.f32 %v4877_v28, %v2539_v13  ;;  %3505 = vrsqrt.f32 %v2463_v40  ;;  %v2465_v9 = vadd.f32 1e-05, %v2449_v2 }
 0x4c6   : > { %2708 = vst [vmem:[%s4891_s25 + $0x58] sm:$0xff] %v2676_v60  ;;  %v2540_v59 = vmul.f32 %v4868_v62, %v2497_v48  ;;  %v2541_v15 = vmul.f32 %v4871_v57, %v2498_v54  ;;  %v2499_v41 = vmul.f32 %v3498_v47, %v4778_v55  ;;  %v2500_v50 = vmul.f32 %v3498_v47, %v4781_v53 }
 0x4c7   : > { %vm2613_vm12 = vcmp.gt.f32.partialorder %v2581_v32, 0.0  ;;  %vm2614_vm13 = vcmp.gt.f32.partialorder %v2582_v37, 0.0  ;;  %v2645_v14 = vmul.f32 0.01, %v2581_v32  ;;  %v2646_v44 = vmul.f32 0.01, %v2582_v37 }
 0x4c8   : > { %v2583_v10 = vadd.f32 %v4874_v21, %v2540_v59  ;;  %v2584_v18 = vadd.f32 %v4877_v28, %v2541_v15  ;;  %v2542_v33 = vmul.f32 %v4868_v62, %v2499_v41  ;;  %v2543_v19 = vmul.f32 %v4871_v57, %v2500_v50 }
 0x4c9   : > { %v3500_v52 = vpop.eup %3499  ;;  %v2677_v58 = vsel %vm2613_vm12, %v2581_v32, %v2645_v14  ;;  %v2678_v55 = vsel %vm2614_vm13, %v2582_v37, %v2646_v44  ;;  %3507 = vrsqrt.f32 %v2464_v4  ;;  %v2450_v56 = vmul.f32 0.00390625, %v2434_v31 }
 0x4ca   : > { %2709 = vst [vmem:[%s4891_s25 + $0x60] sm:$0xff] %v2677_v58  ;;  %2710 = vst [vmem:[%s4891_s25 + $0x68] sm:$0xff] %v2678_v55  ;;  %vm2615_vm14 = vcmp.gt.f32.partialorder %v2583_v10, 0.0  ;;  %vm2616_vm15 = vcmp.gt.f32.partialorder %v2584_v18, 0.0  ;;  %v2647_v53 = vmul.f32 0.01, %v2583_v10  ;;  %v2585_v29 = vadd.f32 %v4874_v21, %v2542_v33 }
 0x4cb   : > { %v2648_v22 = vmul.f32 0.01, %v2584_v18  ;;  %v3502_v49 = vpop.eup %3501  ;;  %v2586_v11 = vadd.f32 %v4877_v28, %v2543_v19  ;;  %v2501_v3 = vmul.f32 %v3500_v52, %v4792_v35  ;;  %v2502_v34 = vmul.f32 %v3500_v52, %v4795_v43 }
 0x4cc   : > { %v2679_v16 = vsel %vm2615_vm14, %v2583_v10, %v2647_v53  ;;  %v2503_v0 = vmul.f32 %v3502_v49, %v4798_v26  ;;  %v2504_v39 = vmul.f32 %v3502_v49, %v4801_v1  ;;  %vm2617_vm0 = vcmp.gt.f32.partialorder %v2585_v29, 0.0 }
 0x4cd   : > { %v2680_v5 = vsel %vm2616_vm15, %v2584_v18, %v2648_v22  ;;  %2711 = vst [vmem:[%s4891_s25 + $0x70] sm:$0xff] %v2679_v16  ;;  %vm2618_vm1 = vcmp.gt.f32.partialorder %v2586_v11, 0.0  ;;  %v2649_v61 = vmul.f32 0.01, %v2585_v29  ;;  %v2650_v38 = vmul.f32 0.01, %v2586_v11 }
 0x4ce   : > { %2712 = vst [vmem:[%s4891_s25 + $0x78] sm:$0xff] %v2680_v5  ;;  %v2544_v30 = vmul.f32 %v4868_v62, %v2501_v3  ;;  %v2545_v35 = vmul.f32 %v4871_v57, %v2502_v34  ;;  %v2546_v43 = vmul.f32 %v4868_v62, %v2503_v0  ;;  %v2547_v7 = vmul.f32 %v4871_v57, %v2504_v39 }
 0x4cf   : > { %v2681_v40 = vsel %vm2617_vm0, %v2585_v29, %v2649_v61  ;;  %v2682_v26 = vsel %vm2618_vm1, %v2586_v11, %v2650_v38  ;;  %3509 = vrsqrt.f32 %v2465_v9  ;;  %v2466_v1 = vadd.f32 1e-05, %v2450_v56 }
 0x4d0   : > { %v3504_v4 = vpop.eup %3503  ;;  %2713 = vst [vmem:[%s4891_s25 + $0x80] sm:$0xff] %v2681_v40  ;;  %2714 = vst [vmem:[%s4891_s25 + $0x88] sm:$0xff] %v2682_v26  ;;  %v2587_v24 = vadd.f32 %v4874_v21, %v2544_v30  ;;  %v2588_v42 = vadd.f32 %v4877_v28, %v2545_v35  ;;  %v2589_v8 = vadd.f32 %v4874_v21, %v2546_v43 }
 0x4d1   : > { %v2590_v46 = vadd.f32 %v4877_v28, %v2547_v7  ;;  %v2505_v13 = vmul.f32 %v3504_v4, %v4812_v45  ;;  %v2506_v2 = vmul.f32 %v3504_v4, %v4815_v63  ;;  %3511 = vrsqrt.f32 %v2466_v1 }
 0x4d2   : > { %v3506_v36 = vpop.eup %3505  ;;  %vm2619_vm2 = vcmp.gt.f32.partialorder %v2587_v24, 0.0  ;;  %vm2620_vm3 = vcmp.gt.f32.partialorder %v2588_v42, 0.0  ;;  %v2651_v60 = vmul.f32 0.01, %v2587_v24  ;;  %v2652_v48 = vmul.f32 0.01, %v2588_v42 }
 0x4d3   : > { %vm2621_vm4 = vcmp.gt.f32.partialorder %v2589_v8, 0.0  ;;  %vm2622_vm5 = vcmp.gt.f32.partialorder %v2590_v46, 0.0  ;;  %v2653_v54 = vmul.f32 0.01, %v2589_v8  ;;  %v2654_v47 = vmul.f32 0.01, %v2590_v46 }
 0x4d4   : > { %v2683_v32 = vsel %vm2619_vm2, %v2587_v24, %v2651_v60  ;;  %v2684_v37 = vsel %vm2620_vm3, %v2588_v42, %v2652_v48  ;;  %v2548_v45 = vmul.f32 %v4868_v62, %v2505_v13  ;;  %v2549_v9 = vmul.f32 %v4871_v57, %v2506_v2 }
 0x4d5   : > { %2715 = vst [vmem:[%s4891_s25 + $0x90] sm:$0xff] %v2683_v32  ;;  %2716 = vst [vmem:[%s4891_s25 + $0x98] sm:$0xff] %v2684_v37  ;;  %v2685_v63 = vsel %vm2621_vm4, %v2589_v8, %v2653_v54  ;;  %v2686_v59 = vsel %vm2622_vm5, %v2590_v46, %v2654_v47  ;;  %v2507_v15 = vmul.f32 %v3506_v36, %v4818_v20 }
 0x4d6   : > { %v2508_v41 = vmul.f32 %v3506_v36, %v4821_v23  ;;  %v3508_v50 = vpop.eup %3507  ;;  %2717 = vst [vmem:[%s4891_s25 + $0xa0] sm:$0xff] %v2685_v63  ;;  %2718 = vst [vmem:[%s4891_s25 + $0xa8] sm:$0xff] %v2686_v59  ;;  %v2591_v31 = vadd.f32 %v4874_v21, %v2548_v45  ;;  %v2592_v14 = vadd.f32 %v4877_v28, %v2549_v9 }
 0x4d7   : > { %v2550_v44 = vmul.f32 %v4868_v62, %v2507_v15  ;;  %v2509_v18 = vmul.f32 %v3508_v50, %v4832_v6  ;;  %v2510_v33 = vmul.f32 %v3508_v50, %v4835_v12 }
 0x4d8   : > { %v2551_v10 = vmul.f32 %v4871_v57, %v2508_v41  ;;  %vm2623_vm6 = vcmp.gt.f32.partialorder %v2591_v31, 0.0  ;;  %vm2624_vm7 = vcmp.gt.f32.partialorder %v2592_v14, 0.0  ;;  %v2655_v20 = vmul.f32 0.01, %v2591_v31 }
 0x4d9   : > { %v2656_v23 = vmul.f32 0.01, %v2592_v14  ;;  %v2593_v19 = vadd.f32 %v4874_v21, %v2550_v44  ;;  %v2552_v58 = vmul.f32 %v4868_v62, %v2509_v18  ;;  %v2553_v55 = vmul.f32 %v4871_v57, %v2510_v33 }
 0x4da   : > { %v2594_v52 = vadd.f32 %v4877_v28, %v2551_v10  ;;  %v2687_v56 = vsel %vm2623_vm6, %v2591_v31, %v2655_v20 }
 0x4db   : > { %v2688_v53 = vsel %vm2624_vm7, %v2592_v14, %v2656_v23  ;;  %2719 = vst [vmem:[%s4891_s25 + $0xb0] sm:$0xff] %v2687_v56  ;;  %vm2625_vm8 = vcmp.gt.f32.partialorder %v2593_v19, 0.0  ;;  %v2657_v6 = vmul.f32 0.01, %v2593_v19  ;;  %v2595_v49 = vadd.f32 %v4874_v21, %v2552_v58 }
 0x4dc   : > { %2720 = vst [vmem:[%s4891_s25 + $0xb8] sm:$0xff] %v2688_v53  ;;  %vm2626_vm9 = vcmp.gt.f32.partialorder %v2594_v52, 0.0  ;;  %v2658_v12 = vmul.f32 0.01, %v2594_v52  ;;  %v3510_v22 = vpop.eup %3509  ;;  %v2596_v29 = vadd.f32 %v4877_v28, %v2553_v55 }
 0x4dd   : > { %v2689_v11 = vsel %vm2625_vm8, %v2593_v19, %v2657_v6  ;;  %v2511_v34 = vmul.f32 %v3510_v22, %v4838_v51  ;;  %v2512_v16 = vmul.f32 %v3510_v22, %v4841_v25  ;;  %vm2627_vm10 = vcmp.gt.f32.partialorder %v2595_v49, 0.0 }
 0x4de   : > { %v2690_v3 = vsel %vm2626_vm9, %v2594_v52, %v2658_v12  ;;  %v3512_v5 = vpop.eup %3511  ;;  %2721 = vst [vmem:[%s4891_s25 + $0xc0] sm:$0xff] %v2689_v11  ;;  %vm2628_vm11 = vcmp.gt.f32.partialorder %v2596_v29, 0.0  ;;  %v2659_v0 = vmul.f32 0.01, %v2595_v49  ;;  %v2660_v39 = vmul.f32 0.01, %v2596_v29 }
 0x4df   : > { %2722 = vst [vmem:[%s4891_s25 + $0xc8] sm:$0xff] %v2690_v3  ;;  %v2554_v61 = vmul.f32 %v4868_v62, %v2511_v34  ;;  %v2555_v38 = vmul.f32 %v4871_v57, %v2512_v16  ;;  %v2513_v30 = vmul.f32 %v3512_v5, %v4852_v27  ;;  %v2514_v51 = vmul.f32 %v3512_v5, %v4855_v17 }
 0x4e0   : > { %v2691_v35 = vsel %vm2627_vm10, %v2595_v49, %v2659_v0  ;;  %v2692_v43 = vsel %vm2628_vm11, %v2596_v29, %v2660_v39 }
 0x4e1   : > { %2723 = vst [vmem:[%s4891_s25 + $0xd0] sm:$0xff] %v2691_v35  ;;  %2724 = vst [vmem:[%s4891_s25 + $0xd8] sm:$0xff] %v2692_v43  ;;  %v2597_v25 = vadd.f32 %v4874_v21, %v2554_v61  ;;  %v2598_v7 = vadd.f32 %v4877_v28, %v2555_v38  ;;  %v2556_v40 = vmul.f32 %v4868_v62, %v2513_v30 }
 0x4e2   : > { %v2557_v26 = vmul.f32 %v4871_v57, %v2514_v51 }
 0x4e3   : > { %vm2629_vm12 = vcmp.gt.f32.partialorder %v2597_v25, 0.0  ;;  %vm2630_vm13 = vcmp.gt.f32.partialorder %v2598_v7, 0.0  ;;  %v2661_v27 = vmul.f32 0.01, %v2597_v25  ;;  %v2662_v17 = vmul.f32 0.01, %v2598_v7 }
 0x4e4   : > { %v2599_v1 = vadd.f32 %v4874_v21, %v2556_v40  ;;  %v2600_v4 = vadd.f32 %v4877_v28, %v2557_v26 }
 0x4e5   : > { %v2693_v24 = vsel %vm2629_vm12, %v2597_v25, %v2661_v27  ;;  %v2694_v42 = vsel %vm2630_vm13, %v2598_v7, %v2662_v17 }
 0x4e6   : > { %2725 = vst [vmem:[%s4891_s25 + $0xe0] sm:$0xff] %v2693_v24  ;;  %2726 = vst [vmem:[%s4891_s25 + $0xe8] sm:$0xff] %v2694_v42  ;;  %vm2631_vm14 = vcmp.gt.f32.partialorder %v2599_v1, 0.0  ;;  %vm2632_vm15 = vcmp.gt.f32.partialorder %v2600_v4, 0.0  ;;  %v2663_v62 = vmul.f32 0.01, %v2599_v1 }
 0x4e7   : > { %v2664_v57 = vmul.f32 0.01, %v2600_v4 }
 0x4e8   : > { %v2695_v21 = vsel %vm2631_vm14, %v2599_v1, %v2663_v62 }
 0x4e9   : > { %v2696_v28 = vsel %vm2632_vm15, %v2600_v4, %v2664_v57  ;;  %2727 = vst [vmem:[%s4891_s25 + $0xf0] sm:$0xff] %v2695_v21 }
 0x4ea   : > { %2728 = vst [vmem:[%s4891_s25 + $0xf8] sm:$0xff] %v2696_v28 }
 0x4eb   : > { %3632 = shalt.err (!%p3629_p9)
}
 0x4ec   : > { %s3633_s3 = scalar_lea.hbm %s5014_s12, 4096  ;;  %s3637_s23 = scalar_lea.hbm %s5072_s11, 8192 }
 0x4ed   : > { %p3634_p7 = scmp.ne.s32.totalorder %s5014_s12, %s3633_s3  ;;  %p3638_p6 = scmp.lt.s32.totalorder %s5014_s12, %s5072_s11 }
 0x4ee   : > { %p3639_p11 = scmp.lt.s32.totalorder %s3637_s23, %s3633_s3 }
 0x4ef   : > { %p3635_p4 = pnand %p3634_p7, %p5170_p0 }
 0x4f0   : > { %p3640_p13 = por %p3639_p11, %p3638_p6 }
 0x4f1   : > { %p3636_p8 = pneg %p3635_p4 }
 0x4f3   : > { %p3641_p12 = pnand %p3640_p13, %p3636_p8 }
 0x4f5   : > { %3644 = shalt.err (!%p3641_p12)
}
 0x4f6   : > { %s3705_s21 = smov 256   ;;  %s3706_s13 = smov 16  }
 0x4f7   : > { %3177 = dma.vmem_to_hbm [thread:$0]  (%p5170_p0), %s5016_s26, 4096, %s5014_s12, %s2730_s15, %s3705_s21, %s3705_s21, %s3706_s13  }
 0x4f8 PF: > { %s2759_s29 = sand.u32 1, %s3679_s17   ;;  %p5171_p5 = scmp.ne.s32.totalorder %s5100_s24, 0 }
 0x4f9   : > { %p5172_p10 = scmp.ge.s32.totalorder %s3691_s20, 2  ;;  %s2760_s16 = scalar_lea.sflag [#allocation4], %s2759_s29 }
 0x4fb   : > { %p3194_p1 = pnand %p5172_p10, %p5171_p5 }
 0x4fd   : > { %p3195_p2 = pneg %p3194_p1 }
 0x4ff   : > { %3674 = dma.done.wait (%p3195_p2), %s2760_s16, 4096  }
 0x500   : > { %3676 = vsyncadd (%p3195_p2), %s2760_s16, 4294963200  ;;  %s5173_s1 = sld [smem:[#allocation15_spill]]  ;;  %p26_p3 = scmp.ge.s32.totalorder %s3839_s14, 4  }
 0x501   : > { %s5174_s19 = sld [smem:[#allocation16_spill]]  ;;  %s5175_s17 = smov %s3683_s18 }
 0x502   : > { %s5177_s20 = smov %s3839_s14  ;;  %28 = sbr.rel (!%p26_p3) target bundleno = 11 (0xb), region = 121 }
 0x506   : > { %s5176_s18 = smov %s5173_s1 }
 0x507   :  { %2765 = vsyncpa [#allocation3], 1 }
 0x508   :  { %2767 = vsyncpa [#allocation3 + $0x1], 1 }
 0x509   :  { %2768 = vsyncpa [#allocation6], 1 }
 0x50a   :  { %2769 = vsyncpa [#allocation9], 1 }
 0x50b   :  { %2770 = vsyncpa [#allocation4], 1 }
 0x50c   :  { %2772 = vsyncpa [#allocation4 + $0x1], 1 }

// kernel: tpu_custom_call.1
= control target key start
LH: loop header
LB: loop body
LE: loop exit
PB: predicated region body
PF: predicated region fallthrough
CT: control target
= control target key end

     0   :  { %s5061_s0 = inlined_call_operand.hbm [shape: bf16[256,512], index: 0, kind: input, shape index: {}]   ;;  %s5062_s1 = inlined_call_operand.hbm [shape: bf16[512,128], index: 1, kind: input, shape index: {}]   ;;  %s5063_s2 = inlined_call_operand.vmem [shape: f32[1,128], index: 2, kind: input, shape index: {}]   ;;  %s5064_s3 = inlined_call_operand.hbm [shape: bf16[128,256], index: 3, kind: input, shape index: {}]   ;;  %s5065_s4 = inlined_call_operand.vmem [shape: f32[1,256], index: 4, kind: input, shape index: {}]   ;;  %s5066_s5 = inlined_call_operand.hbm [shape: bf16[512,256], index: 5, kind: input, shape index: {}]   ;;  %s5067_s6 = inlined_call_operand.vmem [shape: f32[1,256], index: 6, kind: input, shape index: {}]   ;;  %s5068_s7 = inlined_call_operand.vmem [shape: f32[1,128], index: 7, kind: input, shape index: {}]   ;;  %s5069_s8 = inlined_call_operand.vmem [shape: f32[1,128], index: 8, kind: input, shape index: {}]   ;;  %s5070_s9 = inlined_call_operand.vmem [shape: f32[1,256], index: 9, kind: input, shape index: {}]   ;;  %s5071_s10 = inlined_call_operand.vmem [shape: f32[1,256], index: 10, kind: input, shape index: {}]   ;;  %s5072_s11 = inlined_call_operand.hbm [shape: f32[256,256], index: 11, kind: output, shape index: {}]  }
   0x1   :  { %5095 = sst [smem:[#allocation34_spill]] %s5062_s1 }
   0x2   :  { %5096 = sst [smem:[#allocation35_spill]] %s5064_s3 }
   0x3   :  { %5097 = sst [smem:[#allocation36_spill]] %s5066_s5 }
   0x4   :  { %16 = vsyncpa [#allocation3], 0 }
   0x5   :  { %18 = vsyncpa [#allocation3 + $0x1], 0 }
   0x6   :  { %19 = vsyncpa [#allocation6], 0 }
   0x7   :  { %20 = vsyncpa [#allocation9], 0 }
   0x8   :  { %21 = vsyncpa [#allocation4], 0 }
   0x9   :  { %23 = vsyncpa [#allocation4 + $0x1], 0  ;;  %s3767_s17 = smov 0   ;;  %s3769_s18 = smov 0  }
   0xa   :  { %s3771_s19 = smov 0   ;;  %s3773_s20 = smov 0  }
   0xb LB: > { %5098 = sst [smem:[#allocation15_spill]] %s3687_s19  ;;  %s3788_s21 = sadd.s32 4294967295, %s3691_s20   ;;  %s3691_s20 = sphi %s3773_s20, %s5177_s20   ;;  %s3687_s19 = sphi %s3771_s19, %s5174_s19   ;;  %s3683_s18 = sphi %s3769_s18, %s5176_s18   ;;  %s3679_s17 = sphi %s3767_s17, %s5175_s17  }
   0xc   : > { %s2846_s22 = sadd.s32 4294967294, %s3691_s20   ;;  %p49_p0 = scmp.ne.s32.totalorder %s3683_s18, %s3679_s17 }
   0xd   : > { %p5073_p1 = scmp.eq.s32.totalorder %s3788_s21, 0  ;;  %p289_p3 = scmp.eq.s32.totalorder %s2846_s22, 1 }
   0xe   : > { %p2847_p5 = scmp.ge.s32.totalorder %s3691_s20, 1  ;;  %p296_p7 = scmp.lt.s32.totalorder %s3691_s20, 3 }
   0xf   : > { %p3797_p4 = por %p5073_p1, %p49_p0  ;;  %p3802_p6 = por %p289_p3, %p49_p0 }
  0x10   : > { %p3807_p8 = pnand %p2847_p5, %p296_p7  ;;  %s3693_s26 = smov [#allocation5]  }
  0x11   : > { %s5099_s23 = scalar_select %p3797_p4, 1, 0 }
  0x12   : > { %s5100_s24 = scalar_select %p3802_p6, 1, 0 }
  0x13   : > { %s5101_s25 = scalar_select %p3807_p8, 1, 0 }
  0x14   : > { %s308_s27 = sshll.u32 %s3693_s26, 4  ;;  %p3179_p9 = pneg %p3807_p8  ;;  %s309_s27 = int_to_ptr.vmem [resolvable:$true] %s308_s27 }
  0x15   : > { %s3694_s29 = smov [#allocation7]   ;;  %s3524_s12 = scalar_lea.vmem %s309_s27, 4096 }
  0x16   : > { %p3816_p11 = pnand %p3179_p9, %p5073_p1  ;;  %s324_s30 = sshll.u32 %s3694_s29, 4  ;;  %s325_s30 = int_to_ptr.vmem [resolvable:$true] %s324_s30 }
  0x17   : > { %p3525_p13 = scmp.ne.s32.totalorder %s309_s27, %s3524_s12  ;;  %p3532_p5 = scmp.lt.s32.totalorder %s309_s27, %s309_s27 }
  0x18   : > { %p3515_p12 = pneg %p3816_p11  ;;  %p3533_p7 = scmp.lt.s32.totalorder %s3524_s12, %s3524_s12 }
  0x1a   : > { %p3527_p0 = pnand %p3525_p13, %p3515_p12  ;;  %p3534_p10 = por %p3533_p7, %p3532_p5 }
  0x1c   : > { %p3528_p3 = pneg %p3527_p0 }
  0x1e   : > { %p3535_p9 = pnand %p3534_p10, %p3528_p3 }
  0x20   : > { %3538 = shalt.err (!%p3535_p9)
}
  0x21   : > { %s3695_s13 = smov 64   ;;  %s3696_s14 = smov 4  }
  0x22   : > { %s5103_s1 = sld [smem:[#allocation34_spill]]  ;;  %s3550_s22 = scalar_lea.vmem %s325_s30, 2048 }
  0x23   : > { %p3551_p1 = scmp.ne.s32.totalorder %s325_s30, %s3550_s22  ;;  %p3558_p2 = scmp.lt.s32.totalorder %s325_s30, %s325_s30 }
  0x24   : > { %p3559_p6 = scmp.lt.s32.totalorder %s3550_s22, %s3550_s22 }
  0x25   : > { %p3553_p13 = pnand %p3551_p1, %p3515_p12 }
  0x26   : > { %p3560_p5 = por %p3559_p6, %p3558_p2 }
  0x27   : > { %p3554_p0 = pneg %p3553_p13 }
  0x28   : > { %3182 = dma.hbm_to_vmem [thread:$0]  (!%p3816_p11), %s5103_s1, 4096, %s309_s27, [#allocation6], %s3695_s13, %s3695_s13, %s3696_s14  }
  0x29   : > { %p3561_p10 = pnand %p3560_p5, %p3554_p0 }
  0x2b   : > { %3564 = shalt.err (!%p3561_p10)
}
  0x2c   : > { %s3697_s26 = smov 128   ;;  %s3698_s29 = smov 8  }
  0x2d   : > { %s5104_s3 = sld [smem:[#allocation35_spill]]  ;;  %s3699_s27 = smov [#allocation8]  }
  0x2e   : > { %s340_s13 = sshll.u32 %s3699_s27, 4  ;;  %s3839_s14 = sadd.s32 1, %s3691_s20   ;;  %s341_s13 = int_to_ptr.vmem [resolvable:$true] %s340_s13 }
  0x2f   : > { %s3576_s16 = scalar_lea.vmem %s341_s13, 8192  ;;  %p3584_p3 = scmp.lt.s32.totalorder %s341_s13, %s341_s13 }
  0x30   : > { %p3577_p1 = scmp.ne.s32.totalorder %s341_s13, %s3576_s16  ;;  %p3585_p7 = scmp.lt.s32.totalorder %s3576_s16, %s3576_s16 }
  0x32   : > { %p3579_p2 = pnand %p3577_p1, %p3515_p12  ;;  %p3586_p9 = por %p3585_p7, %p3584_p3 }
  0x33   : > { %3185 = dma.hbm_to_vmem [thread:$0]  (!%p3816_p11), %s5104_s3, 2048, %s325_s30, [#allocation6], %s3697_s26, %s3697_s26, %s3698_s29  }
  0x34   : > { %p3580_p6 = pneg %p3579_p2 }
  0x36   : > { %p3587_p13 = pnand %p3586_p9, %p3580_p6 }
  0x38   : > { %3590 = shalt.err (!%p3587_p13)
}
  0x39   : > { %s5105_s5 = sld [smem:[#allocation36_spill]]  ;;  %s33_s12 = ssub.s32 %s3691_s20, %s3839_s14 }
  0x3a   : > { %s36_s15 = sadd.s32 1, %s3687_s19  ;;  %p34_p12 = scmp.eq.s32.totalorder %s33_s12, 0 }
  0x3b   : > { %p43_p0 = scmp.ne.s32.totalorder %s3687_s19, %s3683_s18  ;;  %p44_p5 = scmp.eq.s32.totalorder %s3691_s20, 0 }
  0x3c   : > { %p3200_p10 = scmp.lt.s32.totalorder %s3691_s20, 2  ;;  %p5107_p2 = scmp.eq.s32.totalorder %s3788_s21, 1 }
  0x3d   : > { %s3857_s28 = scalar_select %p34_p12, %s3687_s19, %s36_s15  }
  0x3e   : > { %p45_p1 = por %p44_p5, %p43_p0  ;;  %p3861_p6 = por %p5107_p2, %p43_p0 }
  0x3f   : > { %3188 = dma.hbm_to_vmem [thread:$0]  (!%p3816_p11), %s5105_s5, 8192, %s341_s13, [#allocation9], %s3697_s26, %s3697_s26, %s3698_s29  }
  0x40   : > { %5106 = sst [smem:[#allocation16_spill]] %s3857_s28  ;;  %s369_s16 = sand.u32 1, %s3687_s19  }
  0x41   : > { %s5108_s27 = scalar_select %p3861_p6, 1, 0 }
  0x42   : > { %s3016_s22 = sshll.u32 %s3691_s20, 12  ;;  %s2852_s30 = sshll.u32 %s369_s16, 8 }
  0x43   : > { %s3870_s26 = scalar_lea.hbm %s5061_s0, %s3016_s22  ;;  %s373_s29 = scalar_lea.vmem [#allocation2], %s2852_s30 }
  0x44   : > { %s381_s13 = sshll.u32 %s373_s29, 4  ;;  %p3872_p11 = pnand %p3200_p10, %p45_p1  ;;  %s3876_s13 = int_to_ptr.vmem [resolvable:$true] %s381_s13 }
  0x45   : > { %s3878_s15 = scalar_lea.sflag [#allocation3], %s369_s16  ;;  %s3591_s5 = scalar_lea.hbm %s3870_s26, 4096 }
  0x46   : > { %p3592_p3 = scmp.ne.s32.totalorder %s3870_s26, %s3591_s5  ;;  %p3593_p7 = pneg %p3872_p11 }
  0x47   : > { %s3596_s22 = scalar_lea.hbm %s5061_s0, 8192  ;;  %p3597_p12 = scmp.lt.s32.totalorder %s3870_s26, %s5061_s0 }
  0x48   : > { %p3594_p9 = pnand %p3593_p7, %p3592_p3  ;;  %p3598_p0 = scmp.lt.s32.totalorder %s3596_s22, %s3591_s5 }
  0x4a   : > { %p3595_p13 = pneg %p3594_p9  ;;  %p3599_p5 = por %p3598_p0, %p3597_p12 }
  0x4c   : > { %p3600_p10 = pnand %p3599_p5, %p3595_p13 }
  0x4e   : > { %3603 = shalt.err (!%p3600_p10)
}
  0x4f   : > { %s3604_s16 = scalar_lea.vmem %s3876_s13, 4096  ;;  %s3700_s28 = smov [#allocation2]  }
  0x50   : > { %p3605_p1 = scmp.ne.s32.totalorder %s3876_s13, %s3604_s16  ;;  %s3609_s19 = sshll.u32 %s3700_s28, 4  ;;  %s3610_s19 = int_to_ptr.vmem [resolvable:$false] %s3609_s19 }
  0x51   : > { %s3611_s1 = scalar_lea.vmem %s3610_s19, 8192  ;;  %p3612_p9 = scmp.lt.s32.totalorder %s3876_s13, %s3610_s19 }
  0x52   : > { %p3607_p2 = pnand %p3605_p1, %p3593_p7  ;;  %p3613_p6 = scmp.lt.s32.totalorder %s3611_s1, %s3604_s16 }
  0x54   : > { %p3608_p3 = pneg %p3607_p2  ;;  %p3614_p4 = por %p3613_p6, %p3612_p9 }
  0x56   : > { %p3615_p8 = pnand %p3614_p4, %p3608_p3 }
  0x58   : > { %3618 = shalt.err (!%p3615_p8)
}
  0x59   : > { %s3701_s5 = smov 256   ;;  %s3702_s3 = smov 16  }
  0x5a   : > { %3192 = dma.hbm_to_vmem [thread:$0]  (!%p3872_p11), %s3870_s26, 4096, %s3876_s13, %s3878_s15, %s3701_s5, %s3701_s5, %s3702_s3  }
  0x5b   : > { %p5110_p7 = scmp.ne.s32.totalorder %s5101_s25, 0 }
  0x5d   : > { %393 = sbr.rel (%p5110_p7) target bundleno = 1272 (0x4f8), region = 64 }
  0x62   : > { %s3902_s28 = sand.u32 1, %s3683_s18   ;;  %p5111_p4 = scmp.ne.s32.totalorder %s5099_s23, 0 }
  0x63   : > { %s2857_s19 = sshll.u32 %s3902_s28, 8  ;;  %s396_s22 = scalar_lea.sflag [#allocation3], %s3902_s28 }
  0x64   : > { %s3908_s30 = scalar_lea.vmem [#allocation2], %s2857_s19 }
  0x65   : > { %3662 = dma.done.wait (%p5111_p4), %s396_s22, 4096  }
  0x66   : > { %3664 = vsyncadd (%p5111_p4), %s396_s22, 4294963200  ;;  %p5112_p8 = scmp.eq.s32.totalorder %s3788_s21, 0 }
  0x68   : > { %3666 = dma.done.wait (%p5112_p8), [#allocation6], 6144   ;;  %p5113_p6 = pmov %p5112_p8 }
  0x6a   : > { %3668 = vsyncadd (%p5113_p6), [#allocation6], 4294961152  ;;  %p5114_p11 = pmov %p5113_p6 }
  0x6b   : > { %p5115_p13 = pmov %p5113_p6 }
  0x6c   : > { %3670 = dma.done.wait (%p5114_p11), [#allocation9], 8192  }
  0x6d   : > { %3672 = vsyncadd (%p5115_p13), [#allocation9], 4294959104  ;;  %v3249_v0 = vld [vmem:[#allocation5 + $0x78] sm:$0xff]   ;;  %v3253_v4 = vld [vmem:[#allocation5 + $0x70] sm:$0xff]   ;;  %s4891_s25 = scalar_lea.vmem [#allocation10], %s2857_s19  ;;  %s3018_s19 = sshll.u32 %s3788_s21, 12 }
  0x6e   : > { %v3250_v1 = vld [vmem:[#allocation5 + $0xf8] sm:$0xff]   ;;  %3019 = vmatprep.subr.bf16.mxu0 %v3249_v0  ;;  %v3254_v5 = vld [vmem:[#allocation5 + $0xf0] sm:$0xff]   ;;  %v3257_v8 = vld [vmem:[#allocation5 + $0x68] sm:$0xff]   ;;  %s2744_s26 = sshll.u32 %s4891_s25, 4  ;;  %s5014_s12 = scalar_lea.hbm %s5072_s11, %s3018_s19  ;;  %s5016_s26 = int_to_ptr.vmem [resolvable:$true] %s2744_s26 }
  0x6f   : > { %v3251_v2 = vld [vmem:[#allocation5 + $0x38] sm:$0xff]   ;;  %3083 = vmatprep.subr.bf16.mxu1 %v3250_v1  ;;  %v3255_v6 = vld [vmem:[#allocation5 + $0x30] sm:$0xff]   ;;  %v3258_v9 = vld [vmem:[#allocation5 + $0xe8] sm:$0xff]   ;;  %s2730_s15 = scalar_lea.sflag [#allocation4], %s3902_s28  ;;  %s3619_s29 = scalar_lea.vmem %s5016_s26, 4096 }
  0x70   : > { %v3252_v3 = vld [vmem:[#allocation5 + $0xb8] sm:$0xff]   ;;  %3020 = vmatpush3.bf16.msra.mxu0 %v3251_v2  ;;  %v3256_v7 = vld [vmem:[#allocation5 + $0xb0] sm:$0xff]   ;;  %v3259_v10 = vld [vmem:[#allocation5 + $0x28] sm:$0xff]   ;;  %p3620_p12 = scmp.ne.s32.totalorder %s5016_s26, %s3619_s29  ;;  %p5170_p0 = scmp.ne.s32.totalorder %s5108_s27, 0 }
  0x71   : > { %3084 = vmatpush3.bf16.msra.mxu1 %v3252_v3  ;;  %3021 = vmatprep.subr.bf16.mxu0 %v3253_v4  ;;  %v3260_v11 = vld [vmem:[#allocation5 + $0xa8] sm:$0xff]   ;;  %v3261_v12 = vld [vmem:[#allocation5 + $0x60] sm:$0xff]   ;;  %v3265_v16 = vld [vmem:[#allocation5 + $0x58] sm:$0xff]   ;;  %s3704_s16 = smov [#allocation10]  }
  0x72   : > { %3085 = vmatprep.subr.bf16.mxu1 %v3254_v5  ;;  %v3262_v13 = vld [vmem:[#allocation5 + $0xe0] sm:$0xff]   ;;  %v3266_v17 = vld [vmem:[#allocation5 + $0xd8] sm:$0xff]   ;;  %v3269_v20 = vld [vmem:[#allocation5 + $0x50] sm:$0xff]   ;;  %p3621_p5 = pnand %p3620_p12, %p5170_p0  ;;  %s3623_s1 = sshll.u32 %s3704_s16, 4  ;;  %s3624_s1 = int_to_ptr.vmem [resolvable:$false] %s3623_s1 }
  0x73   : > { %v3263_v14 = vld [vmem:[#allocation5 + $0x20] sm:$0xff]   ;;  %v3267_v18 = vld [vmem:[#allocation5 + $0x18] sm:$0xff]   ;;  %v3270_v21 = vld [vmem:[#allocation5 + $0xd0] sm:$0xff]   ;;  %s3625_s5 = scalar_lea.vmem %s3624_s1, 8192  ;;  %p3626_p1 = scmp.lt.s32.totalorder %s5016_s26, %s3624_s1 }
  0x74   : > { %3022 = vmatpush3.bf16.msra.mxu0 %v3255_v6  ;;  %v3264_v15 = vld [vmem:[#allocation5 + $0xa0] sm:$0xff]   ;;  %v3268_v19 = vld [vmem:[#allocation5 + $0x98] sm:$0xff]   ;;  %v3271_v22 = vld [vmem:[#allocation5 + $0x10] sm:$0xff]   ;;  %p3622_p10 = pneg %p3621_p5  ;;  %p3627_p2 = scmp.lt.s32.totalorder %s3625_s5, %s3619_s29 }
  0x75   : > { %3086 = vmatpush3.bf16.msra.mxu1 %v3256_v7  ;;  %3023 = vmatprep.subr.bf16.mxu0 %v3257_v8  ;;  %v3272_v23 = vld [vmem:[#allocation5 + $0x90] sm:$0xff]   ;;  %v3273_v24 = vld [vmem:[#allocation5 + $0x48] sm:$0xff]   ;;  %v3277_v28 = vld [vmem:[#allocation5 + $0x40] sm:$0xff]  }
  0x76   : > { %3087 = vmatprep.subr.bf16.mxu1 %v3258_v9  ;;  %v3274_v25 = vld [vmem:[#allocation5 + $0xc8] sm:$0xff]   ;;  %v3278_v29 = vld [vmem:[#allocation5 + $0xc0] sm:$0xff]   ;;  %p3628_p3 = por %p3627_p2, %p3626_p1 }
  0x77   : > { %v3275_v26 = vld [vmem:[#allocation5 + $0x8] sm:$0xff]   ;;  %v3279_v30 = vld [vmem:[#allocation5] sm:$0xff]  }
  0x78   : > { %3024 = vmatpush3.bf16.msra.mxu0 %v3259_v10  ;;  %v3276_v27 = vld [vmem:[#allocation5 + $0x88] sm:$0xff]   ;;  %v3280_v31 = vld [vmem:[#allocation5 + $0x80] sm:$0xff]   ;;  %p3629_p9 = pnand %p3628_p3, %p3622_p10 }
  0x79   : > { %3088 = vmatpush3.bf16.msra.mxu1 %v3260_v11  ;;  %3025 = vmatprep.subr.bf16.mxu0 %v3261_v12  ;;  %v3923_v32 = vld [vmem:[%s3908_s30] ss:$16 sps:$4 sm:$0xff]   ;;  %v3283_v33 = vld [vmem:[%s3908_s30 + $0x4] ss:$16 sps:$4 sm:$0xff]   ;;  %v3927_v34 = vld [vmem:[%s3908_s30 + $0x8] ss:$16 sps:$4 sm:$0xff]  }
  0x7a   : > { %3089 = vmatprep.subr.bf16.mxu1 %v3262_v13  ;;  %v3286_v35 = vld [vmem:[%s3908_s30 + $0xc] ss:$16 sps:$4 sm:$0xff]   ;;  %940 = vmatprep.mubr.bf16.mxu0 %v3283_v33  ;;  %v3931_v36 = vld [vmem:[%s3908_s30 + $0x24] ss:$16 sps:$4 sm:$0xff]   ;;  %v3941_v38 = vld [vmem:[%s3908_s30 + $0x20] ss:$16 sps:$4 sm:$0xff]  }
  0x7b   : > { %1037 = vmatprep.mubr.bf16.mxu1 %v3286_v35  ;;  %v3935_v37 = vld [vmem:[%s3908_s30 + $0x2c] ss:$16 sps:$4 sm:$0xff]   ;;  %v3944_v39 = vld [vmem:[%s3908_s30 + $0x28] ss:$16 sps:$4 sm:$0xff]   ;;  %v3947_v40 = vld [vmem:[%s3908_s30 + $0x44] ss:$16 sps:$4 sm:$0xff]  }
  0x7c   : > { %3026 = vmatpush3.bf16.msra.mxu0 %v3263_v14  ;;  %v3950_v41 = vld [vmem:[%s3908_s30 + $0x4c] ss:$16 sps:$4 sm:$0xff]   ;;  %v3957_v42 = vld [vmem:[%s3908_s30 + $0x40] ss:$16 sps:$4 sm:$0xff]   ;;  %v3960_v43 = vld [vmem:[%s3908_s30 + $0x48] ss:$16 sps:$4 sm:$0xff]  }
  0x7d   : > { %3090 = vmatpush3.bf16.msra.mxu1 %v3264_v15  ;;  %3027 = vmatprep.subr.bf16.mxu0 %v3265_v16  ;;  %v3963_v44 = vld [vmem:[%s3908_s30 + $0x64] ss:$16 sps:$4 sm:$0xff]   ;;  %v3966_v45 = vld [vmem:[%s3908_s30 + $0x6c] ss:$16 sps:$4 sm:$0xff]   ;;  %v3973_v46 = vld [vmem:[%s3908_s30 + $0x60] ss:$16 sps:$4 sm:$0xff]  }
  0x7e   : > { %3091 = vmatprep.subr.bf16.mxu1 %v3266_v17  ;;  %v3976_v47 = vld [vmem:[%s3908_s30 + $0x68] ss:$16 sps:$4 sm:$0xff]   ;;  %v3979_v48 = vld [vmem:[%s3908_s30 + $0x84] ss:$16 sps:$4 sm:$0xff]   ;;  %v3982_v49 = vld [vmem:[%s3908_s30 + $0x8c] ss:$16 sps:$4 sm:$0xff]  }
  0x7f   : > { %v3989_v50 = vld [vmem:[%s3908_s30 + $0x80] ss:$16 sps:$4 sm:$0xff]   ;;  %v3992_v51 = vld [vmem:[%s3908_s30 + $0x88] ss:$16 sps:$4 sm:$0xff]   ;;  %v3995_v52 = vld [vmem:[%s3908_s30 + $0xa4] ss:$16 sps:$4 sm:$0xff]  }
  0x80   : > { %3028 = vmatpush3.bf16.msra.mxu0 %v3267_v18  ;;  %5116 = vst [vmem:[#allocation17_spill] sm:$0xff] %v3992_v51  ;;  %v3998_v53 = vld [vmem:[%s3908_s30 + $0xac] ss:$16 sps:$4 sm:$0xff]   ;;  %v4005_v54 = vld [vmem:[%s3908_s30 + $0xa0] ss:$16 sps:$4 sm:$0xff]  }
  0x81   : > { %3092 = vmatpush3.bf16.msra.mxu1 %v3268_v19  ;;  %3029 = vmatprep.subr.bf16.mxu0 %v3269_v20  ;;  %5117 = vst [vmem:[#allocation18_spill] sm:$0xff] %v3998_v53  ;;  %v4008_v55 = vld [vmem:[%s3908_s30 + $0xa8] ss:$16 sps:$4 sm:$0xff]   ;;  %v4011_v56 = vld [vmem:[%s3908_s30 + $0xc4] ss:$16 sps:$4 sm:$0xff]  }
  0x82   : > { %3093 = vmatprep.subr.bf16.mxu1 %v3270_v21  ;;  %5118 = vst [vmem:[#allocation19_spill] sm:$0xff] %v4008_v55  ;;  %v4014_v57 = vld [vmem:[%s3908_s30 + $0xcc] ss:$16 sps:$4 sm:$0xff]   ;;  %v4021_v58 = vld [vmem:[%s3908_s30 + $0xc0] ss:$16 sps:$4 sm:$0xff]  }
  0x83   : > { %5119 = vst [vmem:[#allocation20_spill] sm:$0xff] %v4014_v57  ;;  %v4024_v59 = vld [vmem:[%s3908_s30 + $0xc8] ss:$16 sps:$4 sm:$0xff]   ;;  %v4027_v60 = vld [vmem:[%s3908_s30 + $0xe4] ss:$16 sps:$4 sm:$0xff]  }
  0x84   : > { %3030 = vmatpush3.bf16.msra.mxu0 %v3271_v22  ;;  %5120 = vst [vmem:[#allocation21_spill] sm:$0xff] %v4024_v59  ;;  %5121 = vst [vmem:[#allocation22_spill] sm:$0xff] %v4027_v60  ;;  %v4030_v61 = vld [vmem:[%s3908_s30 + $0xec] ss:$16 sps:$4 sm:$0xff]   ;;  %v4037_v62 = vld [vmem:[%s3908_s30 + $0xe0] ss:$16 sps:$4 sm:$0xff]  }
  0x85   : > { %3094 = vmatpush3.bf16.msra.mxu1 %v3272_v23  ;;  %3031 = vmatprep.subr.bf16.mxu0 %v3273_v24  ;;  %5122 = vst [vmem:[#allocation23_spill] sm:$0xff] %v4030_v61  ;;  %5123 = vst [vmem:[#allocation24_spill] sm:$0xff] %v4037_v62  ;;  %v4040_v63 = vld [vmem:[%s3908_s30 + $0xe8] ss:$16 sps:$4 sm:$0xff]   ;;  %v4047_v2 = vld [vmem:[%s5063_s2] ss:$0 sm:$0xff] }
  0x86   : > { %3095 = vmatprep.subr.bf16.mxu1 %v3274_v25  ;;  %5124 = vst [vmem:[#allocation25_spill] sm:$0xff] %v4040_v63 }
  0x88   : > { %3032 = vmatpush3.bf16.msra.mxu0 %v3275_v26 }
  0x89   : > { %3096 = vmatpush3.bf16.msra.mxu1 %v3276_v27  ;;  %3033 = vmatprep.subr.bf16.mxu0 %v3277_v28 }
  0x8a   : > { %3097 = vmatprep.subr.bf16.mxu1 %v3278_v29 }
  0x8c   : > { %3034 = vmatpush3.bf16.msra.mxu0 %v3279_v30 }
  0x8d   : > { %3098 = vmatpush3.bf16.msra.mxu1 %v3280_v31 }
  0x8f   : > { %941 = vmatmul.mubr.bf16.vlgmr.msra.gmra.mxu0 %v3923_v32 }
  0x90   : > { %1038 = vmatmul.mubr.bf16.vlgmr.msra.gmra.mxu1 %v3927_v34  ;;  %948 = vmatprep.mubr.bf16.mxu0 %v3931_v36 }
  0x91   : > { %1045 = vmatprep.mubr.bf16.mxu1 %v3935_v37 }
  0x97   : > { %949 = vmatmul.mubr.bf16.gmra.mxu0 %v3941_v38 }
  0x98   : > { %1046 = vmatmul.mubr.bf16.gmra.mxu1 %v3944_v39  ;;  %956 = vmatprep.mubr.bf16.mxu0 %v3947_v40 }
  0x99   : > { %1053 = vmatprep.mubr.bf16.mxu1 %v3950_v41 }
  0x9f   : > { %957 = vmatmul.mubr.bf16.gmra.mxu0 %v3957_v42 }
  0xa0   : > { %1054 = vmatmul.mubr.bf16.gmra.mxu1 %v3960_v43  ;;  %964 = vmatprep.mubr.bf16.mxu0 %v3963_v44 }
  0xa1   : > { %1061 = vmatprep.mubr.bf16.mxu1 %v3966_v45 }
  0xa7   : > { %965 = vmatmul.mubr.bf16.gmra.mxu0 %v3973_v46 }
  0xa8   : > { %1062 = vmatmul.mubr.bf16.gmra.mxu1 %v3976_v47  ;;  %972 = vmatprep.mubr.bf16.mxu0 %v3979_v48 }
  0xa9   : > { %1069 = vmatprep.mubr.bf16.mxu1 %v3982_v49 }
  0xaf   : > { %973 = vmatmul.mubr.bf16.gmra.mxu0 %v3989_v50 }
  0xb0   : > { %1070 = vmatmul.mubr.bf16.gmra.mxu1 %v3992_v51  ;;  %980 = vmatprep.mubr.bf16.mxu0 %v3995_v52 }
  0xb1   : > { %1077 = vmatprep.mubr.bf16.mxu1 %v3998_v53 }
  0xb7   : > { %981 = vmatmul.mubr.bf16.gmra.mxu0 %v4005_v54 }
  0xb8   : > { %1078 = vmatmul.mubr.bf16.gmra.mxu1 %v4008_v55  ;;  %988 = vmatprep.mubr.bf16.mxu0 %v4011_v56 }
  0xb9   : > { %1085 = vmatprep.mubr.bf16.mxu1 %v4014_v57 }
  0xbf   : > { %989 = vmatmul.mubr.bf16.gmra.mxu0 %v4021_v58 }
  0xc0   : > { %1086 = vmatmul.mubr.bf16.gmra.mxu1 %v4024_v59  ;;  %996 = vmatprep.mubr.bf16.mxu0 %v4027_v60 }
  0xc1   : > { %1093 = vmatprep.mubr.bf16.mxu1 %v4030_v61 }
  0xc7   : > { %997 = vmatmul.mubr.bf16.gmra.mxu0 %v4037_v62 }
  0xc8   : > { %1094 = vmatmul.mubr.bf16.gmra.mxu1 %v4040_v63  ;;  %1801 = vmatprep.mubr.bf16.mxu0 %v3283_v33 }
  0xc9   : > { %1914 = vmatprep.mubr.bf16.mxu1 %v3286_v35 }
 0x14f   : > { %v3035_v0 = vpop.f32.mrf.mxu0 }
 0x150   : > { %v3099_v1 = vpop.f32.mrf.mxu1 }
 0x151   : > { %v3036_v3 = vpop.f32.mrf.mxu0 }
 0x152   : > { %v3037_v4 = vadd.f32 %v3036_v3, %v3035_v0  ;;  %v3100_v5 = vpop.f32.mrf.mxu1 }
 0x153   : > { %v3038_v6 = vpop.f32.mrf.mxu0  ;;  %v3101_v8 = vadd.f32 %v3100_v5, %v3099_v1 }
 0x154   : > { %v943_v7 = vadd.f32 %v3037_v4, %v4047_v2  ;;  %v3102_v9 = vpop.f32.mrf.mxu1 }
 0x155   : > { %v3039_v10 = vpop.f32.mrf.mxu0 }
 0x156   : > { %v3040_v11 = vadd.f32 %v3039_v10, %v3038_v6  ;;  %v3103_v12 = vpop.f32.mrf.mxu1  ;;  %v4050_v13 = vadd.f32 %v3101_v8, %v943_v7 }
 0x157   : > { %v3041_v14 = vpop.f32.mrf.mxu0  ;;  %v3104_v16 = vadd.f32 %v3103_v12, %v3102_v9 }
 0x158   : > { %v946_v15 = vadd.f32 %v3040_v11, %v4047_v2  ;;  %v3105_v17 = vpop.f32.mrf.mxu1  ;;  %1104 = vadd.xlane.f32.xlu0 %v4050_v13 }
 0x159   : > { %v3042_v18 = vpop.f32.mrf.mxu0 }
 0x15a   : > { %v3043_v19 = vadd.f32 %v3042_v18, %v3041_v14  ;;  %v3106_v20 = vpop.f32.mrf.mxu1  ;;  %v4054_v21 = vadd.f32 %v3104_v16, %v946_v15 }
 0x15b   : > { %v3044_v22 = vpop.f32.mrf.mxu0  ;;  %v3107_v24 = vadd.f32 %v3106_v20, %v3105_v17 }
 0x15c   : > { %v951_v23 = vadd.f32 %v3043_v19, %v4047_v2  ;;  %v3108_v25 = vpop.f32.mrf.mxu1  ;;  %1106 = vadd.xlane.f32.xlu0 %v4054_v21 }
 0x15d   : > { %v3045_v26 = vpop.f32.mrf.mxu0 }
 0x15e   : > { %v3109_v27 = vpop.f32.mrf.mxu1  ;;  %v4058_v28 = vadd.f32 %v3107_v24, %v951_v23  ;;  %v3046_v63 = vadd.f32 %v3045_v26, %v3044_v22 }
 0x15f   : > { %v3047_v29 = vpop.f32.mrf.mxu0  ;;  %v3110_v26 = vadd.f32 %v3109_v27, %v3108_v25 }
 0x160   : > { %5125 = vst [vmem:[#allocation26_spill] sm:$0xff] %v4058_v28  ;;  %v3111_v30 = vpop.f32.mrf.mxu1  ;;  %1108 = vadd.xlane.f32.xlu0 %v4058_v28 }
 0x161   : > { %v3048_v31 = vpop.f32.mrf.mxu0 }
 0x162   : > { %v3112_v33 = vpop.f32.mrf.mxu1  ;;  %v3049_v28 = vadd.f32 %v3048_v31, %v3047_v29 }
 0x163   : > { %v3050_v35 = vpop.f32.mrf.mxu0 }
 0x164   : > { %v4061_v0 = vpop.f32.mrf.mxu1 }
 0x165   : > { %v3051_v1 = vpop.f32.mrf.mxu0 }
 0x166   : > { %v3115_v3 = vpop.f32.mrf.mxu1 }
 0x167   : > { %v3053_v4 = vpop.f32.mrf.mxu0 }
 0x168   : > { %v4063_v5 = vpop.f32.mrf.mxu1 }
 0x169   : > { %v3054_v6 = vpop.f32.mrf.mxu0 }
 0x16a   : > { %v4065_v7 = vpop.f32.mrf.mxu1 }
 0x16b   : > { %v4067_v8 = vpop.f32.mrf.mxu0 }
 0x16c   : > { %v4069_v9 = vpop.f32.mrf.mxu1 }
 0x16d   : > { %v4071_v10 = vpop.f32.mrf.mxu0 }
 0x16e   : > { %v4073_v11 = vpop.f32.mrf.mxu1 }
 0x16f   : > { %v3059_v12 = vpop.f32.mrf.mxu0 }
 0x170   : > { %v3123_v14 = vpop.f32.mrf.mxu1 }
 0x171   : > { %v3060_v15 = vpop.f32.mrf.mxu0 }
 0x172   : > { %v3061_v16 = vadd.f32 %v3060_v15, %v3059_v12  ;;  %v3124_v17 = vpop.f32.mrf.mxu1  ;;  %v954_v15 = vadd.f32 %v3046_v63, %v4047_v2 }
 0x173   : > { %v3062_v18 = vpop.f32.mrf.mxu0  ;;  %v3125_v20 = vadd.f32 %v3124_v17, %v3123_v14 }
 0x174   : > { %v975_v19 = vadd.f32 %v3061_v16, %v4047_v2  ;;  %v3126_v23 = vpop.f32.mrf.mxu1  ;;  %v4086_v63 = vadd.f32 %v3110_v26, %v954_v15 }
 0x175   : > { %v3063_v24 = vpop.f32.mrf.mxu0 }
 0x176   : > { %v3064_v61 = vadd.f32 %v3063_v24, %v3062_v18  ;;  %v3127_v59 = vpop.f32.mrf.mxu1  ;;  %v4076_v57 = vadd.f32 %v3125_v20, %v975_v19 }
 0x177   : > { %v3065_v55 = vpop.f32.mrf.mxu0  ;;  %v3128_v53 = vadd.f32 %v3127_v59, %v3126_v23  ;;  %v3052_v59 = vadd.f32 %v3051_v1, %v3050_v35  ;;  %v959_v23 = vadd.f32 %v3049_v28, %v4047_v2  ;;  %v3055_v28 = vadd.f32 %v3054_v6, %v3053_v4 }
 0x178   : > { %v978_v62 = vadd.f32 %v3064_v61, %v4047_v2  ;;  %v3129_v51 = vpop.f32.mrf.mxu1  ;;  %1120 = vadd.xlane.f32.xlu1 %v4076_v57  ;;  %v3058_v6 = vadd.f32 %v4071_v10, %v4067_v8 }
 0x179   : > { %v3066_v12 = vpop.f32.mrf.mxu0  ;;  %v967_v4 = vadd.f32 %v3055_v28, %v4047_v2 }
 0x17a   : > { %v3067_v16 = vadd.f32 %v3066_v12, %v3065_v55  ;;  %v3130_v14 = vpop.f32.mrf.mxu1  ;;  %v4081_v17 = vadd.f32 %v3128_v53, %v978_v62  ;;  %v3113_v62 = vadd.f32 %v3112_v33, %v3111_v30  ;;  %v3116_v30 = vadd.f32 %v3115_v3, %v4061_v0 }
 0x17b   : > { %v3068_v22 = vpop.f32.mrf.mxu0  ;;  %v3131_v19 = vadd.f32 %v3130_v14, %v3129_v51  ;;  %v962_v51 = vadd.f32 %v3052_v59, %v4047_v2 }
 0x17c   : > { %v983_v18 = vadd.f32 %v3067_v16, %v4047_v2  ;;  %v3132_v20 = vpop.f32.mrf.mxu1  ;;  %1122 = vadd.xlane.f32.xlu1 %v4081_v17  ;;  %v4096_v15 = vadd.f32 %v3113_v62, %v959_v23 }
 0x17d   : > { %v3069_v61 = vpop.f32.mrf.mxu0  ;;  %v4102_v26 = vadd.f32 %v3116_v30, %v962_v51 }
 0x17e   : > { %v3070_v24 = vadd.f32 %v3069_v61, %v3068_v22  ;;  %v3133_v60 = vpop.f32.mrf.mxu1  ;;  %v4088_v55 = vadd.f32 %v3131_v19, %v983_v18 }
 0x17f   : > { %v3071_v53 = vpop.f32.mrf.mxu0  ;;  %v3134_v27 = vadd.f32 %v3133_v60, %v3132_v20  ;;  %v3119_v20 = vadd.f32 %v4065_v7, %v4063_v5  ;;  %v3122_v5 = vadd.f32 %v4073_v11, %v4069_v9  ;;  %v3331_v11 = vld [vmem:[#allocation8 + $0x74] ss:$8 sps:$4 sm:$0xff]  }
 0x180   : > { %v986_v25 = vadd.f32 %v3070_v24, %v4047_v2  ;;  %v3135_v29 = vpop.f32.mrf.mxu1  ;;  %1110 = vadd.xlane.f32.xlu1 %v4086_v63  ;;  %1124 = vadd.xlane.f32.xlu0 %v4088_v55 }
 0x181   : > { %v3072_v31 = vpop.f32.mrf.mxu0  ;;  %1769 = vmatprep.subr.bf16.mxu0 %v3331_v11  ;;  %v3374_v11 = vld [vmem:[#allocation8 + $0x130] ss:$8 sps:$4 sm:$0xff]  }
 0x182   : > { %v3073_v35 = vadd.f32 %v3072_v31, %v3071_v53  ;;  %v3136_v1 = vpop.f32.mrf.mxu1  ;;  %v4094_v12 = vadd.f32 %v3134_v27, %v986_v25  ;;  %v970_v53 = vadd.f32 %v3058_v6, %v4047_v2  ;;  %v4117_v25 = vadd.f32 %v3119_v20, %v967_v4  ;;  %v3337_v4 = vld [vmem:[#allocation8 + $0x54] ss:$8 sps:$4 sm:$0xff]   ;;  %v3335_v6 = vld [vmem:[#allocation8 + $0x50] ss:$8 sps:$4 sm:$0xff]   ;;  %v3346_v20 = vld [vmem:[#allocation8 + $0x24] ss:$8 sps:$4 sm:$0xff]  }
 0x183   : > { %v3074_v33 = vpop.f32.mrf.mxu0  ;;  %v3137_v16 = vadd.f32 %v3136_v1, %v3135_v29 }
 0x184   : > { %v991_v60 = vadd.f32 %v3073_v35, %v4047_v2  ;;  %v3138_v14 = vpop.f32.mrf.mxu1  ;;  %1126 = vadd.xlane.f32.xlu1 %v4094_v12  ;;  %1112 = vadd.xlane.f32.xlu0 %v4096_v15  ;;  %v4124_v1 = vadd.f32 %v3122_v5, %v970_v53  ;;  %v3358_v53 = vld [vmem:[#allocation8 + $0x164] ss:$8 sps:$4 sm:$0xff]   ;;  %v3362_v5 = vld [vmem:[#allocation8 + $0x150] ss:$8 sps:$4 sm:$0xff]  }
 0x185   : > { %v3075_v22 = vpop.f32.mrf.mxu0 }
 0x186   : > { %v3076_v18 = vadd.f32 %v3075_v22, %v3074_v33  ;;  %v3139_v19 = vpop.f32.mrf.mxu1  ;;  %v4107_v0 = vadd.f32 %v3137_v16, %v991_v60  ;;  %v3329_v16 = vld [vmem:[#allocation8 + $0x70] ss:$8 sps:$4 sm:$0xff]   ;;  %v3332_v22 = vld [vmem:[#allocation8 + $0x60] ss:$8 sps:$4 sm:$0xff]  }
 0x187   : > { %v3077_v3 = vpop.f32.mrf.mxu0  ;;  %v3140_v61 = vadd.f32 %v3139_v19, %v3138_v14  ;;  %1770 = vmatpush1.bf16.msra.mxu0 %v3329_v16  ;;  %v3334_v14 = vld [vmem:[#allocation8 + $0x64] ss:$8 sps:$4 sm:$0xff]   ;;  %v3343_v19 = vld [vmem:[#allocation8 + $0x34] ss:$8 sps:$4 sm:$0xff]   ;;  %v3365_v16 = vld [vmem:[#allocation8 + $0xe0] ss:$8 sps:$4 sm:$0xff]  }
 0x188   : > { %v994_v59 = vadd.f32 %v3076_v18, %v4047_v2  ;;  %1114 = vadd.xlane.f32.xlu1 %v4102_v26  ;;  %1128 = vadd.xlane.f32.xlu0 %v4107_v0  ;;  %v3141_v23 = vpop.f32.mrf.mxu1  ;;  %v3338_v18 = vld [vmem:[#allocation8 + $0x40] ss:$8 sps:$4 sm:$0xff]  }
 0x189   : > { %v3078_v24 = vpop.f32.mrf.mxu0  ;;  %1771 = vmatprep.subr.bf16.mxu0 %v3334_v14  ;;  %v3382_v14 = vld [vmem:[#allocation8 + $0x124] ss:$8 sps:$4 sm:$0xff]  }
 0x18a   : > { %v3079_v8 = vadd.f32 %v3078_v24, %v3077_v3  ;;  %v3142_v10 = vpop.f32.mrf.mxu1  ;;  %v4115_v62 = vadd.f32 %v3140_v61, %v994_v59  ;;  %v3341_v3 = vld [vmem:[#allocation8 + $0x30] ss:$8 sps:$4 sm:$0xff]   ;;  %v3344_v59 = vld [vmem:[#allocation8 + $0x20] ss:$8 sps:$4 sm:$0xff]   ;;  %v3349_v24 = vld [vmem:[#allocation8 + $0x14] ss:$8 sps:$4 sm:$0xff]  }
 0x18b   : > { %v3080_v27 = vpop.f32.mrf.mxu0  ;;  %v3143_v29 = vadd.f32 %v3142_v10, %v3141_v23  ;;  %1772 = vmatpush1.bf16.msra.mxu0 %v3332_v22  ;;  %v3350_v61 = vld [vmem:[#allocation8 + $0x170] ss:$8 sps:$4 sm:$0xff]   ;;  %v3352_v23 = vld [vmem:[#allocation8 + $0x174] ss:$8 sps:$4 sm:$0xff]  }
 0x18c   : > { %v999_v7 = vadd.f32 %v3079_v8, %v4047_v2  ;;  %1130 = vadd.xlane.f32.xlu1 %v4115_v62  ;;  %1116 = vadd.xlane.f32.xlu0 %v4117_v25  ;;  %v3144_v51 = vpop.f32.mrf.mxu1  ;;  %v3356_v8 = vld [vmem:[#allocation8 + $0x160] ss:$8 sps:$4 sm:$0xff]   ;;  %v3347_v10 = vld [vmem:[#allocation8 + $0x10] ss:$8 sps:$4 sm:$0xff]   ;;  %v3373_v22 = vld [vmem:[#allocation8 + $0xd4] ss:$8 sps:$4 sm:$0xff]  }
 0x18d   : > { %v3081_v31 = vpop.f32.mrf.mxu0  ;;  %1773 = vmatprep.subr.bf16.mxu0 %v3337_v4  ;;  %1882 = vmatprep.subr.bf16.mxu1 %v3352_v23  ;;  %v3380_v4 = vld [vmem:[#allocation8 + $0x120] ss:$8 sps:$4 sm:$0xff]   ;;  %v3383_v23 = vld [vmem:[#allocation8 + $0xb0] ss:$8 sps:$4 sm:$0xff]  }
 0x18e   : > { %v3082_v28 = vadd.f32 %v3081_v31, %v3080_v27  ;;  %v3145_v35 = vpop.f32.mrf.mxu1  ;;  %v4126_v30 = vadd.f32 %v3143_v29, %v999_v7  ;;  %1883 = vmatpush1.bf16.msra.mxu1 %v3350_v61  ;;  %v3364_v27 = vld [vmem:[#allocation8 + $0x154] ss:$8 sps:$4 sm:$0xff]   ;;  %v3355_v29 = vld [vmem:[#allocation8 + $0x4] ss:$8 sps:$4 sm:$0xff]   ;;  %v3353_v7 = vld [vmem:[#allocation8] ss:$8 sps:$4 sm:$0xff]  }
 0x18f   : > { %v3146_v33 = vadd.f32 %v3145_v35, %v3144_v51  ;;  %1774 = vmatpush1.bf16.msra.mxu0 %v3335_v6  ;;  %1884 = vmatprep.subr.bf16.mxu1 %v3358_v53  ;;  %v3370_v51 = vld [vmem:[#allocation8 + $0x144] ss:$8 sps:$4 sm:$0xff]   ;;  %v3361_v31 = vld [vmem:[#allocation8 + $0xf4] ss:$8 sps:$4 sm:$0xff]   ;;  %v3359_v35 = vld [vmem:[#allocation8 + $0xf0] ss:$8 sps:$4 sm:$0xff]  }
 0x190   : > { %v1002_v60 = vadd.f32 %v3082_v28, %v4047_v2  ;;  %1118 = vadd.xlane.f32.xlu1 %v4124_v1  ;;  %1132 = vadd.xlane.f32.xlu0 %v4126_v30  ;;  %v3340_v2 = vld [vmem:[#allocation8 + $0x44] ss:$8 sps:$4 sm:$0xff]   ;;  %v3368_v28 = vld [vmem:[#allocation8 + $0x140] ss:$8 sps:$4 sm:$0xff]   ;;  %v3371_v6 = vld [vmem:[#allocation8 + $0xd0] ss:$8 sps:$4 sm:$0xff]  }
 0x191   : > { %1775 = vmatprep.subr.bf16.mxu0 %v3340_v2  ;;  %v3388_v2 = vld [vmem:[#allocation8 + $0x114] ss:$8 sps:$4 sm:$0xff]   ;;  %v3392_v61 = vld [vmem:[#allocation8 + $0x100] ss:$8 sps:$4 sm:$0xff]   ;;  %v3391_v53 = vld [vmem:[#allocation8 + $0xa4] ss:$8 sps:$4 sm:$0xff]  }
 0x192   : > { %v4131_v9 = vadd.f32 %v3146_v33, %v1002_v60  ;;  %1885 = vmatpush1.bf16.msra.mxu1 %v3356_v8  ;;  %v3376_v33 = vld [vmem:[#allocation8 + $0x134] ss:$8 sps:$4 sm:$0xff]   ;;  %v3367_v60 = vld [vmem:[#allocation8 + $0xe4] ss:$8 sps:$4 sm:$0xff]   ;;  %v3398_v8 = vld [vmem:[#allocation8 + $0x1f0] ss:$8 sps:$4 sm:$0xff]  }
 0x193   : > { %1776 = vmatpush1.bf16.msra.mxu0 %v3338_v18  ;;  %1886 = vmatprep.subr.bf16.mxu1 %v3364_v27  ;;  %v3379_v18 = vld [vmem:[#allocation8 + $0xc4] ss:$8 sps:$4 sm:$0xff]  }
 0x194   : > { %1134 = vadd.xlane.f32.xlu1 %v4131_v9  ;;  %1777 = vmatprep.subr.bf16.mxu0 %v3343_v19  ;;  %v3386_v19 = vld [vmem:[#allocation8 + $0x110] ss:$8 sps:$4 sm:$0xff]   ;;  %v3406_v27 = vld [vmem:[#allocation8 + $0x1e4] ss:$8 sps:$4 sm:$0xff]  }
 0x196   : > { %1887 = vmatpush1.bf16.msra.mxu1 %v3362_v5  ;;  %v3404_v5 = vld [vmem:[#allocation8 + $0x1e0] ss:$8 sps:$4 sm:$0xff]  }
 0x197   : > { %1778 = vmatpush1.bf16.msra.mxu0 %v3341_v3  ;;  %1888 = vmatprep.subr.bf16.mxu1 %v3370_v51  ;;  %v3377_v3 = vld [vmem:[#allocation8 + $0xc0] ss:$8 sps:$4 sm:$0xff]   ;;  %v3409_v51 = vld [vmem:[#allocation8 + $0x1d4] ss:$8 sps:$4 sm:$0xff]  }
 0x198   : > { %1779 = vmatprep.subr.bf16.mxu0 %v3346_v20  ;;  %v3394_v20 = vld [vmem:[#allocation8 + $0x104] ss:$8 sps:$4 sm:$0xff]  }
 0x19a   : > { %1889 = vmatpush1.bf16.msra.mxu1 %v3368_v28  ;;  %v3407_v28 = vld [vmem:[#allocation8 + $0x1d0] ss:$8 sps:$4 sm:$0xff]  }
 0x19b   : > { %1780 = vmatpush1.bf16.msra.mxu0 %v3344_v59  ;;  %1890 = vmatprep.subr.bf16.mxu1 %v3376_v33  ;;  %v3385_v59 = vld [vmem:[#allocation8 + $0xb4] ss:$8 sps:$4 sm:$0xff]   ;;  %v3412_v33 = vld [vmem:[#allocation8 + $0x1c4] ss:$8 sps:$4 sm:$0xff]  }
 0x19c   : > { %1781 = vmatprep.subr.bf16.mxu0 %v3349_v24  ;;  %v3400_v24 = vld [vmem:[#allocation8 + $0x1f4] ss:$8 sps:$4 sm:$0xff]  }
 0x19e   : > { %1891 = vmatpush1.bf16.msra.mxu1 %v3374_v11  ;;  %v3410_v11 = vld [vmem:[#allocation8 + $0x1c0] ss:$8 sps:$4 sm:$0xff]  }
 0x19f   : > { %1782 = vmatpush1.bf16.msra.mxu0 %v3347_v10  ;;  %1892 = vmatprep.subr.bf16.mxu1 %v3382_v14  ;;  %v3389_v10 = vld [vmem:[#allocation8 + $0xa0] ss:$8 sps:$4 sm:$0xff]   ;;  %v3425_v14 = vld [vmem:[#allocation7 + $0x70] ss:$8 sps:$4 sm:$0xff]  }
 0x1a0   : > { %1783 = vmatprep.subr.bf16.mxu0 %v3355_v29  ;;  %v3397_v29 = vld [vmem:[#allocation8 + $0x94] ss:$8 sps:$4 sm:$0xff]  }
 0x1a2   : > { %1893 = vmatpush1.bf16.msra.mxu1 %v3380_v4  ;;  %v3418_v4 = vld [vmem:[#allocation8 + $0x1a4] ss:$8 sps:$4 sm:$0xff]  }
 0x1a3   : > { %1784 = vmatpush1.bf16.msra.mxu0 %v3353_v7  ;;  %1894 = vmatprep.subr.bf16.mxu1 %v3388_v2  ;;  %v3395_v7 = vld [vmem:[#allocation8 + $0x90] ss:$8 sps:$4 sm:$0xff]   ;;  %v3421_v2 = vld [vmem:[#allocation8 + $0x194] ss:$8 sps:$4 sm:$0xff]  }
 0x1a4   : > { %1785 = vmatprep.subr.bf16.mxu0 %v3361_v31  ;;  %v3403_v31 = vld [vmem:[#allocation8 + $0x84] ss:$8 sps:$4 sm:$0xff]  }
 0x1a6   : > { %1895 = vmatpush1.bf16.msra.mxu1 %v3386_v19  ;;  %v3424_v19 = vld [vmem:[#allocation8 + $0x184] ss:$8 sps:$4 sm:$0xff]  }
 0x1a7   : > { %1786 = vmatpush2.bf16.msra.mxu0 %v3359_v35  ;;  %1896 = vmatprep.subr.bf16.mxu1 %v3394_v20  ;;  %v3401_v35 = vld [vmem:[#allocation8 + $0x80] ss:$8 sps:$4 sm:$0xff]  }
 0x1a8   : > { %1787 = vmatprep.subr.bf16.mxu0 %v3367_v60  ;;  %v3427_v60 = vld [vmem:[#allocation7 + $0x74] ss:$8 sps:$4 sm:$0xff]  }
 0x1aa   : > { %1897 = vmatpush1.bf16.msra.mxu1 %v3392_v61 }
 0x1ab   : > { %1788 = vmatpush2.bf16.msra.mxu0 %v3365_v16  ;;  %1898 = vmatprep.subr.bf16.mxu1 %v3400_v24  ;;  %v3415_v16 = vld [vmem:[#allocation8 + $0x1b4] ss:$8 sps:$4 sm:$0xff]  }
 0x1ac   : > { %1789 = vmatprep.subr.bf16.mxu0 %v3373_v22  ;;  %v3413_v22 = vld [vmem:[#allocation8 + $0x1b0] ss:$8 sps:$4 sm:$0xff]  }
 0x1ae   : > { %1899 = vmatpush2.bf16.msra.mxu1 %v3398_v8  ;;  %v3440_v8 = vld [vmem:[#allocation7 + $0x20] ss:$8 sps:$4 sm:$0xff]  }
 0x1af   : > { %1790 = vmatpush2.bf16.msra.mxu0 %v3371_v6  ;;  %1900 = vmatprep.subr.bf16.mxu1 %v3406_v27  ;;  %v3416_v6 = vld [vmem:[#allocation8 + $0x1a0] ss:$8 sps:$4 sm:$0xff]  }
 0x1b0   : > { %1791 = vmatprep.subr.bf16.mxu0 %v3379_v18  ;;  %v3419_v18 = vld [vmem:[#allocation8 + $0x190] ss:$8 sps:$4 sm:$0xff]  }
 0x1b2   : > { %1901 = vmatpush2.bf16.msra.mxu1 %v3404_v5 }
 0x1b3   : > { %1792 = vmatpush2.bf16.msra.mxu0 %v3377_v3  ;;  %1902 = vmatprep.subr.bf16.mxu1 %v3409_v51 }
 0x1b4   : > { %1793 = vmatprep.subr.bf16.mxu0 %v3385_v59 }
 0x1b6   : > { %1903 = vmatpush2.bf16.msra.mxu1 %v3407_v28  ;;  %v3443_v28 = vld [vmem:[#allocation7 + $0x10] ss:$8 sps:$4 sm:$0xff]  }
 0x1b7   : > { %1794 = vmatpush2.bf16.msra.mxu0 %v3383_v23  ;;  %1904 = vmatprep.subr.bf16.mxu1 %v3412_v33 }
 0x1b8   : > { %1795 = vmatprep.subr.bf16.mxu0 %v3391_v53  ;;  %v3442_v53 = vld [vmem:[#allocation7 + $0x24] ss:$8 sps:$4 sm:$0xff]  }
 0x1ba   : > { %1905 = vmatpush2.bf16.msra.mxu1 %v3410_v11 }
 0x1bb   : > { %1796 = vmatpush2.bf16.msra.mxu0 %v3389_v10  ;;  %1906 = vmatprep.subr.bf16.mxu1 %v3415_v16  ;;  %v5128_v10 = vld [vmem:[#allocation17_spill] sm:$0xff] }
 0x1bc   : > { %1797 = vmatprep.subr.bf16.mxu0 %v3397_v29  ;;  %v5129_v29 = vld [vmem:[#allocation18_spill] sm:$0xff] }
 0x1be   : > { %1907 = vmatpush2.bf16.msra.mxu1 %v3413_v22 }
 0x1bf   : > { %1798 = vmatpush2.bf16.msra.mxu0 %v3395_v7  ;;  %1908 = vmatprep.subr.bf16.mxu1 %v3418_v4 }
 0x1c0   : > { %1799 = vmatprep.subr.bf16.mxu0 %v3403_v31 }
 0x1c2   : > { %1909 = vmatpush2.bf16.msra.mxu1 %v3416_v6 }
 0x1c3   : > { %1800 = vmatpush2.bf16.msra.mxu0 %v3401_v35  ;;  %1910 = vmatprep.subr.bf16.mxu1 %v3421_v2  ;;  %v3445_v35 = vld [vmem:[#allocation7 + $0x14] ss:$8 sps:$4 sm:$0xff]  }
 0x1c4   : > { %2111 = vmatprep.subr.bf16.mxu0 %v3427_v60 }
 0x1c6   : > { %1802 = vmatmul.mubr.bf16.vlgmr.msra.gmra.mxu0 %v3923_v32  ;;  %1911 = vmatpush2.bf16.msra.mxu1 %v3419_v18  ;;  %v3422_v32 = vld [vmem:[#allocation8 + $0x180] ss:$8 sps:$4 sm:$0xff]  }
 0x1c7   : > { %1811 = vmatprep.mubr.bf16.mxu0 %v3931_v36  ;;  %2112 = vmatpush1.bf16.msra.mxu0 %v3425_v14 }
 0x1c8   : > { %1912 = vmatprep.subr.bf16.mxu1 %v3424_v19 }
 0x1ca   : > { %1913 = vmatpush2.bf16.msra.mxu1 %v3422_v32 }
 0x1cb   : > { %3147 = vmatprep.subr.bf16.mxu1 %v3427_v60 }
 0x1cd   : > { %1915 = vmatmul.mubr.bf16.vlgmr.msra.gmra.mxu1 %v3927_v34  ;;  %v3430_v34 = vld [vmem:[#allocation7 + $0x64] ss:$8 sps:$4 sm:$0xff]  }
 0x1ce   : > { %1812 = vmatmul.mubr.bf16.gmra.mxu0 %v3941_v38  ;;  %1924 = vmatprep.mubr.bf16.mxu1 %v3935_v37  ;;  %v3433_v37 = vld [vmem:[#allocation7 + $0x54] ss:$8 sps:$4 sm:$0xff]  }
 0x1cf   : > { %1821 = vmatprep.mubr.bf16.mxu0 %v3947_v40  ;;  %3155 = vmatpush1.bf16.msra.mxu1 %v3425_v14  ;;  %v5130_v14 = vld [vmem:[#allocation24_spill] sm:$0xff] }
 0x1d0   : > { %2113 = vmatprep.subr.bf16.mxu0 %v3430_v34  ;;  %3148 = vmatprep.subr.bf16.mxu1 %v3430_v34 }
 0x1d5   : > { %1925 = vmatmul.mubr.bf16.gmra.mxu1 %v3944_v39  ;;  %v3436_v39 = vld [vmem:[#allocation7 + $0x44] ss:$8 sps:$4 sm:$0xff]  }
 0x1d6   : > { %1822 = vmatmul.mubr.bf16.gmra.mxu0 %v3957_v42  ;;  %1934 = vmatprep.mubr.bf16.mxu1 %v3950_v41 }
 0x1d7   : > { %1831 = vmatprep.mubr.bf16.mxu0 %v3963_v44  ;;  %v3428_v44 = vld [vmem:[#allocation7 + $0x60] ss:$8 sps:$4 sm:$0xff]  }
 0x1d8   : > { %2114 = vmatpush1.bf16.msra.mxu0 %v3428_v44  ;;  %3156 = vmatpush1.bf16.msra.mxu1 %v3428_v44 }
 0x1d9   : > { %2115 = vmatprep.subr.bf16.mxu0 %v3433_v37  ;;  %3149 = vmatprep.subr.bf16.mxu1 %v3433_v37  ;;  %v3703_v37 = vmov 0  }
 0x1dd   : > { %1935 = vmatmul.mubr.bf16.gmra.mxu1 %v3960_v43 }
 0x1de   : > { %1832 = vmatmul.mubr.bf16.gmra.mxu0 %v3973_v46  ;;  %1944 = vmatprep.mubr.bf16.mxu1 %v3966_v45  ;;  %v3431_v46 = vld [vmem:[#allocation7 + $0x50] ss:$8 sps:$4 sm:$0xff]  }
 0x1df   : > { %1841 = vmatprep.mubr.bf16.mxu0 %v3979_v48  ;;  %2116 = vmatpush1.bf16.msra.mxu0 %v3431_v46  ;;  %v3434_v48 = vld [vmem:[#allocation7 + $0x40] ss:$8 sps:$4 sm:$0xff]  }
 0x1e0   : > { %2117 = vmatprep.subr.bf16.mxu0 %v3436_v39  ;;  %3157 = vmatpush1.bf16.msra.mxu1 %v3431_v46 }
 0x1e1   : > { %v1105_v3 = vpop.xlane.xlu0 %1104  ;;  %3150 = vmatprep.subr.bf16.mxu1 %v3436_v39 }
 0x1e2   : > { %v1137_v36 = vmul.f32 0.0078125, %v1105_v3 }
 0x1e3   : > { %2118 = vmatpush1.bf16.msra.mxu0 %v3434_v48 }
 0x1e4   : > { %v4139_v20 = vsub.f32 %v4050_v13, %v1137_v36  ;;  %3158 = vmatpush1.bf16.msra.mxu1 %v3434_v48  ;;  %v5132_v36 = vld [vmem:[#allocation20_spill] sm:$0xff] }
 0x1e5   : > { %v1107_v59 = vpop.xlane.xlu0 %1106  ;;  %1945 = vmatmul.mubr.bf16.gmra.mxu1 %v3976_v47  ;;  %v5126_v47 = vld [vmem:[#allocation22_spill] sm:$0xff] }
 0x1e6   : > { %v1138_v38 = vmul.f32 0.0078125, %v1107_v59  ;;  %v1169_v40 = vmul.f32 %v4139_v20, %v4139_v20  ;;  %1842 = vmatmul.mubr.bf16.gmra.mxu0 %v3989_v50  ;;  %1954 = vmatprep.mubr.bf16.mxu1 %v3982_v49 }
 0x1e7   : > { %1851 = vmatprep.mubr.bf16.mxu0 %v3995_v52  ;;  %v3439_v52 = vld [vmem:[#allocation7 + $0x34] ss:$8 sps:$4 sm:$0xff]  }
 0x1e8   : > { %v4147_v61 = vsub.f32 %v4054_v21, %v1138_v38  ;;  %1185 = vadd.xlane.f32.xlu0 %v1169_v40  ;;  %2119 = vmatprep.subr.bf16.mxu0 %v3439_v52  ;;  %v5127_v21 = vld [vmem:[#allocation26_spill] sm:$0xff] }
 0x1e9   : > { %v1109_v41 = vpop.xlane.xlu0 %1108  ;;  %3151 = vmatprep.subr.bf16.mxu1 %v3439_v52  ;;  %v5134_v52 = vld [vmem:[#allocation23_spill] sm:$0xff] }
 0x1ea   : > { %v1170_v42 = vmul.f32 %v4147_v61, %v4147_v61  ;;  %v1139_v45 = vmul.f32 0.0078125, %v1109_v41 }
 0x1ec   : > { %1187 = vadd.xlane.f32.xlu1 %v1170_v42  ;;  %v4170_v49 = vsub.f32 %v5127_v21, %v1139_v45 }
 0x1ed   : > { %1955 = vmatmul.mubr.bf16.gmra.mxu1 %v5128_v10  ;;  %v5135_v10 = vld [vmem:[#allocation25_spill] sm:$0xff] }
 0x1ee   : > { %1852 = vmatmul.mubr.bf16.gmra.mxu0 %v4005_v54  ;;  %v3437_v54 = vld [vmem:[#allocation7 + $0x30] ss:$8 sps:$4 sm:$0xff]   ;;  %1964 = vmatprep.mubr.bf16.mxu1 %v5129_v29  ;;  %v1171_v31 = vmul.f32 %v4170_v49, %v4170_v49 }
 0x1ef   : > { %1861 = vmatprep.mubr.bf16.mxu0 %v4011_v56  ;;  %2120 = vmatpush1.bf16.msra.mxu0 %v3437_v54 }
 0x1f0   : > { %2121 = vmatprep.subr.bf16.mxu0 %v3442_v53  ;;  %3159 = vmatpush1.bf16.msra.mxu1 %v3437_v54 }
 0x1f1   : > { %3152 = vmatprep.subr.bf16.mxu1 %v3442_v53 }
 0x1f3   : > { %2122 = vmatpush1.bf16.msra.mxu0 %v3440_v8 }
 0x1f4   : > { %2123 = vmatprep.subr.bf16.mxu0 %v3445_v35  ;;  %3160 = vmatpush1.bf16.msra.mxu1 %v3440_v8 }
 0x1f5   : > { %3153 = vmatprep.subr.bf16.mxu1 %v3445_v35  ;;  %v4255_v35 = vld [vmem:[%s5069_s8] ss:$0 sm:$0xff] }
 0x1f6   : > { %1862 = vmatmul.mubr.bf16.gmra.mxu0 %v4021_v58 }
 0x1f7   : > { %1871 = vmatprep.mubr.bf16.mxu0 %v5126_v47  ;;  %2124 = vmatpush1.bf16.msra.mxu0 %v3443_v28 }
 0x1f8   : > { %3161 = vmatpush1.bf16.msra.mxu1 %v3443_v28 }
 0x1fe   : > { %1872 = vmatmul.mubr.bf16.gmra.mxu0 %v5130_v14 }
 0x1ff   : > { %2143 = vmatprep.mubr.bf16.mxu0 %v3703_v37 }
 0x201   : > { %v1121_v43 = vpop.xlane.xlu1 %1120 }
 0x202   : > { %v1145_v50 = vmul.f32 0.0078125, %v1121_v43 }
 0x204   : > { %v4165_v13 = vsub.f32 %v4076_v57, %v1145_v50 }
 0x205   : > { %v1123_v56 = vpop.xlane.xlu1 %1122 }
 0x206   : > { %v1146_v23 = vmul.f32 0.0078125, %v1123_v56  ;;  %v1177_v24 = vmul.f32 %v4165_v13, %v4165_v13 }
 0x208   : > { %v4176_v57 = vsub.f32 %v4081_v17, %v1146_v23  ;;  %1201 = vadd.xlane.f32.xlu0 %v1177_v24  ;;  %v3448_v17 = vld [vmem:[#allocation7 + $0x4] ss:$8 sps:$4 sm:$0xff]  }
 0x209   : > { %v1111_v58 = vpop.xlane.xlu1 %1110  ;;  %v1125_v27 = vpop.xlane.xlu0 %1124  ;;  %2125 = vmatprep.subr.bf16.mxu0 %v3448_v17  ;;  %3154 = vmatprep.subr.bf16.mxu1 %v3448_v17 }
 0x20a   : > { %v1140_v5 = vmul.f32 0.0078125, %v1111_v58  ;;  %v1147_v7 = vmul.f32 0.0078125, %v1125_v27  ;;  %v1178_v51 = vmul.f32 %v4176_v57, %v4176_v57 }
 0x20c   : > { %v4184_v33 = vsub.f32 %v4086_v63, %v1140_v5  ;;  %v4187_v60 = vsub.f32 %v4088_v55, %v1147_v7  ;;  %1203 = vadd.xlane.f32.xlu1 %v1178_v51  ;;  %1189 = vadd.xlane.f32.xlu0 %v1171_v31  ;;  %v3446_v63 = vld [vmem:[#allocation7] ss:$8 sps:$4 sm:$0xff]   ;;  %v5131_v55 = vld [vmem:[#allocation19_spill] sm:$0xff] }
 0x20d   : > { %v1127_v11 = vpop.xlane.xlu1 %1126  ;;  %v1113_v16 = vpop.xlane.xlu0 %1112  ;;  %1965 = vmatmul.mubr.bf16.gmra.mxu1 %v5131_v55  ;;  %2126 = vmatpush1.bf16.msra.mxu0 %v3446_v63 }
 0x20e   : > { %v1148_v22 = vmul.f32 0.0078125, %v1127_v11  ;;  %v1141_v4 = vmul.f32 0.0078125, %v1113_v16  ;;  %v1172_v6 = vmul.f32 %v4184_v33, %v4184_v33  ;;  %v1179_v2 = vmul.f32 %v4187_v60, %v4187_v60  ;;  %1974 = vmatprep.mubr.bf16.mxu1 %v5132_v36  ;;  %3162 = vmatpush1.bf16.msra.mxu1 %v3446_v63 }
 0x210   : > { %v4196_v18 = vsub.f32 %v4094_v12, %v1148_v22  ;;  %v4199_v19 = vsub.f32 %v4096_v15, %v1141_v4  ;;  %1191 = vadd.xlane.f32.xlu1 %v1172_v6  ;;  %1205 = vadd.xlane.f32.xlu0 %v1179_v2 }
 0x211   : > { %v1115_v32 = vpop.xlane.xlu1 %1114  ;;  %v1129_v3 = vpop.xlane.xlu0 %1128 }
 0x212   : > { %v1142_v59 = vmul.f32 0.0078125, %v1115_v32  ;;  %v1149_v38 = vmul.f32 0.0078125, %v1129_v3  ;;  %v1180_v40 = vmul.f32 %v4196_v18, %v4196_v18  ;;  %v1173_v42 = vmul.f32 %v4199_v19, %v4199_v19 }
 0x214   : > { %v4207_v12 = vsub.f32 %v4102_v26, %v1142_v59  ;;  %v4210_v15 = vsub.f32 %v4107_v0, %v1149_v38  ;;  %1207 = vadd.xlane.f32.xlu1 %v1180_v40  ;;  %1193 = vadd.xlane.f32.xlu0 %v1173_v42  ;;  %v5133_v26 = vld [vmem:[#allocation21_spill] sm:$0xff] }
 0x215   : > { %v1131_v34 = vpop.xlane.xlu1 %1130  ;;  %v1117_v44 = vpop.xlane.xlu0 %1116  ;;  %1975 = vmatmul.mubr.bf16.gmra.mxu1 %v5133_v26 }
 0x216   : > { %v1150_v46 = vmul.f32 0.0078125, %v1131_v34  ;;  %v1143_v39 = vmul.f32 0.0078125, %v1117_v44  ;;  %v1174_v41 = vmul.f32 %v4207_v12, %v4207_v12  ;;  %v1181_v48 = vmul.f32 %v4210_v15, %v4210_v15  ;;  %1984 = vmatprep.mubr.bf16.mxu1 %v5134_v52 }
 0x218   : > { %v4219_v0 = vsub.f32 %v4115_v62, %v1150_v46  ;;  %v4222_v43 = vsub.f32 %v4117_v25, %v1143_v39  ;;  %1195 = vadd.xlane.f32.xlu1 %v1174_v41  ;;  %1209 = vadd.xlane.f32.xlu0 %v1181_v48 }
 0x219   : > { %v1119_v45 = vpop.xlane.xlu1 %1118  ;;  %v1133_v50 = vpop.xlane.xlu0 %1132 }
 0x21a   : > { %v1144_v54 = vmul.f32 0.0078125, %v1119_v45  ;;  %v1151_v56 = vmul.f32 0.0078125, %v1133_v50  ;;  %v1182_v47 = vmul.f32 %v4219_v0, %v4219_v0  ;;  %v1175_v21 = vmul.f32 %v4222_v43, %v4222_v43 }
 0x21c   : > { %v4230_v62 = vsub.f32 %v4124_v1, %v1144_v54  ;;  %v4233_v25 = vsub.f32 %v4126_v30, %v1151_v56  ;;  %1211 = vadd.xlane.f32.xlu1 %v1182_v47  ;;  %1197 = vadd.xlane.f32.xlu0 %v1175_v21 }
 0x21d   : > { %v1135_v23 = vpop.xlane.xlu1 %1134  ;;  %1985 = vmatmul.mubr.bf16.gmra.mxu1 %v5135_v10 }
 0x21e   : > { %v1152_v24 = vmul.f32 0.0078125, %v1135_v23  ;;  %v1176_v53 = vmul.f32 %v4230_v62, %v4230_v62  ;;  %v1183_v8 = vmul.f32 %v4233_v25, %v4233_v25  ;;  %2183 = vmatprep.mubr.bf16.mxu1 %v3703_v37 }
 0x220   : > { %v4241_v58 = vsub.f32 %v4131_v9, %v1152_v24  ;;  %1199 = vadd.xlane.f32.xlu1 %v1176_v53  ;;  %1213 = vadd.xlane.f32.xlu0 %v1183_v8  ;;  %v4249_v9 = vld [vmem:[%s5068_s7] ss:$0 sm:$0xff] }
 0x222   : > { %v1184_v1 = vmul.f32 %v4241_v58, %v4241_v58 }
 0x224   : > { %1215 = vadd.xlane.f32.xlu1 %v1184_v1 }
 0x271   : > { %v1186_v30 = vpop.xlane.xlu0 %1185 }
 0x272   : > { %v1217_v27 = vmul.f32 0.0078125, %v1186_v30 }
 0x274   : > { %v1233_v29 = vadd.f32 1e-05, %v1217_v27 }
 0x275   : > { %v1188_v5 = vpop.xlane.xlu1 %1187 }
 0x276   : > { %3449 = vrsqrt.f32 %v1233_v29  ;;  %v1218_v7 = vmul.f32 0.0078125, %v1188_v5 }
 0x278   : > { %v1234_v51 = vadd.f32 1e-05, %v1218_v7 }
 0x27a   : > { %3451 = vrsqrt.f32 %v1234_v51 }
 0x283   : > { %v3450_v31 = vpop.eup %3449 }
 0x284   : > { %v1265_v28 = vmul.f32 %v3450_v31, %v4139_v20 }
 0x286   : > { %v1287_v17 = vmul.f32 %v4249_v9, %v1265_v28 }
 0x287   : > { %v3452_v11 = vpop.eup %3451 }
 0x288   : > { %v1266_v16 = vmul.f32 %v3452_v11, %v4147_v61  ;;  %v1309_v14 = vadd.f32 %v4255_v35, %v1287_v17  ;;  %v4263_v61 = vpop.f32.mrf.mxu0 }
 0x28a   : > { %v1288_v22 = vmul.f32 %v4249_v9, %v1266_v16  ;;  %v1341_v6 = vmul.f32 0.01, %v1309_v14  ;;  %vm1325_vm0 = vcmp.gt.f32.partialorder %v1309_v14, 0.0  ;;  %v4265_v34 = vpop.f32.mrf.mxu0 }
 0x28c   : > { %v1310_v4 = vadd.f32 %v4255_v35, %v1288_v22  ;;  %v1357_v2 = vsel %vm1325_vm0, %v1309_v14, %v1341_v6  ;;  %v4267_v39 = vpop.f32.mrf.mxu0 }
 0x28e   : > { %vm1326_vm1 = vcmp.gt.f32.partialorder %v1310_v4, 0.0  ;;  %v1342_v20 = vmul.f32 0.01, %v1310_v4  ;;  %v4269_v50 = vpop.f32.mrf.mxu0 }
 0x290   : > { %v1358_v63 = vsel %vm1326_vm1, %v1310_v4, %v1342_v20  ;;  %v4271_v56 = vpop.f32.mrf.mxu0 }
 0x291   : > { %v1202_v55 = vpop.xlane.xlu0 %1201  ;;  %v1995_v32 = vpack.c.bf16 %v1358_v63, %v1357_v2 }
 0x292   : > { %v1225_v3 = vmul.f32 0.0078125, %v1202_v55  ;;  %v4273_v53 = vpop.f32.mrf.mxu0 }
 0x293   : > { %2144 = vmatmul.mubr.bf16.vlgmr.msra.gmra.mxu0 %v1995_v32 }
 0x294   : > { %v1241_v36 = vadd.f32 1e-05, %v1225_v3  ;;  %2153 = vmatprep.mubr.bf16.mxu0 %v3703_v37  ;;  %v4275_v1 = vpop.f32.mrf.mxu0 }
 0x295   : > { %v1204_v59 = vpop.xlane.xlu1 %1203  ;;  %v1190_v38 = vpop.xlane.xlu0 %1189 }
 0x296   : > { %3453 = vrsqrt.f32 %v1241_v36  ;;  %v1226_v40 = vmul.f32 0.0078125, %v1204_v59  ;;  %v1219_v42 = vmul.f32 0.0078125, %v1190_v38  ;;  %v4277_v7 = vpop.f32.mrf.mxu0 }
 0x298   : > { %v1242_v44 = vadd.f32 1e-05, %v1226_v40  ;;  %v1235_v46 = vadd.f32 1e-05, %v1219_v42  ;;  %v4280_v11 = vpop.f32.mrf.mxu0 }
 0x299   : > { %v1192_v41 = vpop.xlane.xlu1 %1191  ;;  %v1206_v48 = vpop.xlane.xlu0 %1205 }
 0x29a   : > { %3455 = vrsqrt.f32 %v1242_v44  ;;  %v1220_v26 = vmul.f32 0.0078125, %v1192_v41  ;;  %v1227_v45 = vmul.f32 0.0078125, %v1206_v48  ;;  %v4283_v20 = vpop.f32.mrf.mxu0 }
 0x29b   : > { %3457 = vrsqrt.f32 %v1235_v46 }
 0x29c   : > { %v1236_v52 = vadd.f32 1e-05, %v1220_v26  ;;  %v1243_v54 = vadd.f32 1e-05, %v1227_v45  ;;  %v4287_v36 = vpop.f32.mrf.mxu0 }
 0x29d   : > { %v1208_v47 = vpop.xlane.xlu1 %1207  ;;  %v1194_v21 = vpop.xlane.xlu0 %1193 }
 0x29e   : > { %3459 = vrsqrt.f32 %v1236_v52  ;;  %v1228_v23 = vmul.f32 0.0078125, %v1208_v47  ;;  %v1221_v24 = vmul.f32 0.0078125, %v1194_v21  ;;  %v4291_v41 = vpop.f32.mrf.mxu0 }
 0x29f   : > { %3461 = vrsqrt.f32 %v1243_v54 }
 0x2a0   : > { %v1244_v8 = vadd.f32 1e-05, %v1228_v23  ;;  %v1237_v10 = vadd.f32 1e-05, %v1221_v24  ;;  %v4296_v21 = vpop.f32.mrf.mxu0 }
 0x2a1   : > { %v1196_v30 = vpop.xlane.xlu1 %1195  ;;  %v1210_v27 = vpop.xlane.xlu0 %1209 }
 0x2a2   : > { %3463 = vrsqrt.f32 %v1244_v8  ;;  %v1222_v29 = vmul.f32 0.0078125, %v1196_v30  ;;  %v1229_v5 = vmul.f32 0.0078125, %v1210_v27  ;;  %v4300_v27 = vpop.f32.mrf.mxu0 }
 0x2a3   : > { %v3454_v51 = vpop.eup %3453  ;;  %3465 = vrsqrt.f32 %v1237_v10 }
 0x2a4   : > { %v1273_v31 = vmul.f32 %v3454_v51, %v4165_v13  ;;  %v1238_v28 = vadd.f32 1e-05, %v1222_v29  ;;  %v1245_v17 = vadd.f32 1e-05, %v1229_v5 }
 0x2a5   : > { %v1212_v16 = vpop.xlane.xlu1 %1211  ;;  %v1198_v14 = vpop.xlane.xlu0 %1197 }
 0x2a6   : > { %v1295_v22 = vmul.f32 %v4249_v9, %v1273_v31  ;;  %3467 = vrsqrt.f32 %v1238_v28  ;;  %v1230_v4 = vmul.f32 0.0078125, %v1212_v16  ;;  %v1223_v6 = vmul.f32 0.0078125, %v1198_v14  ;;  %v4306_v14 = vpop.f32.mrf.mxu0 }
 0x2a7   : > { %v3456_v2 = vpop.eup %3455  ;;  %3469 = vrsqrt.f32 %v1245_v17 }
 0x2a8   : > { %v3458_v63 = vpop.eup %3457  ;;  %v1274_v55 = vmul.f32 %v3456_v2, %v4176_v57  ;;  %v1246_v32 = vadd.f32 1e-05, %v1230_v4  ;;  %v1239_v13 = vadd.f32 1e-05, %v1223_v6  ;;  %v1317_v3 = vadd.f32 %v4255_v35, %v1295_v22 }
 0x2a9   : > { %v1200_v59 = vpop.xlane.xlu1 %1199  ;;  %v1214_v38 = vpop.xlane.xlu0 %1213  ;;  %v1267_v40 = vmul.f32 %v3458_v63, %v4170_v49 }
 0x2aa   : > { %v1296_v42 = vmul.f32 %v4249_v9, %v1274_v55  ;;  %3471 = vrsqrt.f32 %v1246_v32  ;;  %v1224_v44 = vmul.f32 0.0078125, %v1200_v59  ;;  %v1231_v46 = vmul.f32 0.0078125, %v1214_v38  ;;  %v4312_v55 = vpop.f32.mrf.mxu0 }
 0x2ab   : > { %v3460_v48 = vpop.eup %3459  ;;  %3473 = vrsqrt.f32 %v1239_v13  ;;  %vm1333_vm2 = vcmp.gt.f32.partialorder %v1317_v3, 0.0  ;;  %v1349_v57 = vmul.f32 0.01, %v1317_v3  ;;  %v1289_v26 = vmul.f32 %v4249_v9, %v1267_v40 }
 0x2ac   : > { %v3462_v45 = vpop.eup %3461  ;;  %v1240_v52 = vadd.f32 1e-05, %v1224_v44  ;;  %v1247_v54 = vadd.f32 1e-05, %v1231_v46  ;;  %v1318_v47 = vadd.f32 %v4255_v35, %v1296_v42  ;;  %v1268_v49 = vmul.f32 %v3460_v48, %v4184_v33  ;;  %v4318_v42 = vpop.f32.mrf.mxu0 }
 0x2ad   : > { %v1216_v23 = vpop.xlane.xlu1 %1215  ;;  %v1311_v24 = vadd.f32 %v4255_v35, %v1289_v26  ;;  %v1275_v8 = vmul.f32 %v3462_v45, %v4187_v60  ;;  %v1365_v5 = vsel %vm1333_vm2, %v1317_v3, %v1349_v57 }
 0x2ae   : > { %3475 = vrsqrt.f32 %v1240_v52  ;;  %v1232_v10 = vmul.f32 0.0078125, %v1216_v23  ;;  %vm1334_vm3 = vcmp.gt.f32.partialorder %v1318_v47, 0.0  ;;  %v1350_v30 = vmul.f32 0.01, %v1318_v47  ;;  %v4322_v45 = vpop.f32.mrf.mxu0 }
 0x2af   : > { %v3464_v29 = vpop.eup %3463  ;;  %3477 = vrsqrt.f32 %v1247_v54  ;;  %v1290_v51 = vmul.f32 %v4249_v9, %v1268_v49  ;;  %v1343_v33 = vmul.f32 0.01, %v1311_v24  ;;  %v1297_v60 = vmul.f32 %v4249_v9, %v1275_v8 }
 0x2b0   : > { %v3466_v31 = vpop.eup %3465  ;;  %v1248_v28 = vadd.f32 1e-05, %v1232_v10  ;;  %v1366_v17 = vsel %vm1334_vm3, %v1318_v47, %v1350_v30  ;;  %v1276_v16 = vmul.f32 %v3464_v29, %v4196_v18  ;;  %vm1327_vm4 = vcmp.gt.f32.partialorder %v1311_v24, 0.0  ;;  %v4327_v10 = vpop.f32.mrf.mxu0 }
 0x2b1   : > { %v1999_v22 = vpack.c.bf16 %v1366_v17, %v1365_v5  ;;  %v1312_v4 = vadd.f32 %v4255_v35, %v1290_v51  ;;  %v1269_v6 = vmul.f32 %v3466_v31, %v4199_v19  ;;  %v1319_v63 = vadd.f32 %v4255_v35, %v1297_v60 }
 0x2b2   : > { %3479 = vrsqrt.f32 %v1248_v28  ;;  %v1298_v2 = vmul.f32 %v4249_v9, %v1276_v16  ;;  %v1359_v59 = vsel %vm1327_vm4, %v1311_v24, %v1343_v33  ;;  %v1439_v49 = vlaneseq  ;;  %v4334_v31 = vpop.f32.mrf.mxu0 }
 0x2b3   : > { %v3468_v32 = vpop.eup %3467  ;;  %2184 = vmatmul.mubr.bf16.vlgmr.msra.gmra.mxu1 %v1999_v22  ;;  %vm1328_vm5 = vcmp.gt.f32.partialorder %v1312_v4, 0.0  ;;  %v1344_v18 = vmul.f32 0.01, %v1312_v4  ;;  %v1291_v13 = vmul.f32 %v4249_v9, %v1269_v6  ;;  %v1351_v19 = vmul.f32 0.01, %v1319_v63 }
 0x2b4   : > { %v3470_v3 = vpop.eup %3469  ;;  %2193 = vmatprep.mubr.bf16.mxu1 %v3703_v37  ;;  %v1320_v38 = vadd.f32 %v4255_v35, %v1298_v2  ;;  %v1270_v40 = vmul.f32 %v3468_v32, %v4207_v12  ;;  %vm1335_vm6 = vcmp.gt.f32.partialorder %v1319_v63, 0.0  ;;  %v1440_v17 = vshrl.u32 %v1439_v49, 7  ;;  %v4340_v2 = vpop.f32.mrf.mxu0 }
 0x2b5   : > { %v1360_v44 = vsel %vm1328_vm5, %v1312_v4, %v1344_v18  ;;  %v1313_v46 = vadd.f32 %v4255_v35, %v1291_v13  ;;  %v1277_v48 = vmul.f32 %v3470_v3, %v4210_v15  ;;  %v1367_v23 = vsel %vm1335_vm6, %v1319_v63, %v1351_v19 }
 0x2b6   : > { %v1996_v57 = vpack.c.bf16 %v1360_v44, %v1359_v59  ;;  %vm1336_vm7 = vcmp.gt.f32.partialorder %v1320_v38, 0.0  ;;  %v1352_v26 = vmul.f32 0.01, %v1320_v38  ;;  %v1292_v54 = vmul.f32 %v4249_v9, %v1270_v40  ;;  %v4345_v59 = vpop.f32.mrf.mxu0 }
 0x2b7   : > { %v3472_v52 = vpop.eup %3471  ;;  %v1299_v47 = vmul.f32 %v4249_v9, %v1277_v48  ;;  %v1345_v29 = vmul.f32 0.01, %v1313_v46  ;;  %vm1329_vm8 = vcmp.gt.f32.partialorder %v1313_v46, 0.0  ;;  %v4349_v40 = vsub.s32 0, %v1440_v17 }
 0x2b8   : > { %v3474_v12 = vpop.eup %3473  ;;  %2154 = vmatmul.mubr.bf16.gmra.mxu0 %v1996_v57  ;;  %v1368_v24 = vsel %vm1336_vm7, %v1320_v38, %v1352_v26  ;;  %v1278_v8 = vmul.f32 %v3472_v52, %v4219_v0  ;;  %v1314_v30 = vadd.f32 %v4255_v35, %v1292_v54  ;;  %v4351_v44 = vsub.s32 1, %v1440_v17  ;;  %v1437_v26 = vld [vmem:[%s5067_s6] sm:$0x3]  ;;  %v1857_v52 = vpop.f32.mrf.mxu0 }
 0x2b9   : > { %v2000_v15 = vpack.c.bf16 %v1368_v24, %v1367_v23  ;;  %2163 = vmatprep.mubr.bf16.mxu0 %v3703_v37  ;;  %v1321_v5 = vadd.f32 %v4255_v35, %v1299_v47  ;;  %v1271_v33 = vmul.f32 %v3474_v12, %v4222_v43  ;;  %v1361_v43 = vsel %vm1329_vm8, %v1313_v46, %v1345_v29 }
 0x2ba   : > { %v1300_v51 = vmul.f32 %v4249_v9, %v1278_v8  ;;  %vm1330_vm9 = vcmp.gt.f32.partialorder %v1314_v30, 0.0  ;;  %v1346_v0 = vmul.f32 0.01, %v1314_v30  ;;  %5136 = vst [vmem:[#allocation22_spill] sm:$0xff] %v4349_v40  ;;  %5137 = vst [vmem:[#allocation26_spill] sm:$0xff] %v4351_v44  ;;  %v1859_v24 = vpop.f32.mrf.mxu0 }
 0x2bb   : > { %v3476_v28 = vpop.eup %3475  ;;  %2194 = vmatmul.mubr.bf16.gmra.mxu1 %v2000_v15  ;;  %v1353_v22 = vmul.f32 0.01, %v1321_v5  ;;  %v1293_v6 = vmul.f32 %v4249_v9, %v1271_v33  ;;  %vm1337_vm10 = vcmp.gt.f32.partialorder %v1321_v5, 0.0  ;;  %v4367_v33 = vrot.slane %v1437_v26, %v4351_v44 }
 0x2bc   : > { %v3478_v16 = vpop.eup %3477  ;;  %2203 = vmatprep.mubr.bf16.mxu1 %v3703_v37  ;;  %v1322_v60 = vadd.f32 %v4255_v35, %v1300_v51  ;;  %v1272_v4 = vmul.f32 %v3476_v28, %v4230_v62  ;;  %v1362_v63 = vsel %vm1330_vm9, %v1314_v30, %v1346_v0 }
 0x2bd   : > { %v1279_v32 = vmul.f32 %v3478_v16, %v4233_v25  ;;  %v1997_v18 = vpack.c.bf16 %v1362_v63, %v1361_v43  ;;  %v1315_v62 = vadd.f32 %v4255_v35, %v1293_v6  ;;  %v1369_v46 = vsel %vm1337_vm10, %v1321_v5, %v1353_v22  ;;  %v1863_v5 = vpop.f32.mrf.mxu0 }
 0x2be   : > { %vm1338_vm11 = vcmp.gt.f32.partialorder %v1322_v60, 0.0  ;;  %v1354_v13 = vmul.f32 0.01, %v1322_v60  ;;  %v1294_v3 = vmul.f32 %v4249_v9, %v1272_v4  ;;  %v4373_v17 = vadd.f32 %v1859_v24, %v4367_v33 }
 0x2bf   : > { %v3480_v38 = vpop.eup %3479  ;;  %v1301_v19 = vmul.f32 %v4249_v9, %v1279_v32  ;;  %vm1331_vm12 = vcmp.gt.f32.partialorder %v1315_v62, 0.0  ;;  %v1347_v47 = vmul.f32 0.01, %v1315_v62  ;;  %v1865_v0 = vpop.f32.mrf.mxu0 }
 0x2c0   : > { %2164 = vmatmul.mubr.bf16.gmra.mxu0 %v1997_v18  ;;  %v1370_v48 = vsel %vm1338_vm11, %v1322_v60, %v1354_v13  ;;  %v1316_v25 = vadd.f32 %v4255_v35, %v1294_v3  ;;  %v1280_v57 = vmul.f32 %v3480_v38, %v4241_v58  ;;  %v4362_v58 = vrot.slane %v1437_v26, %v4349_v40 }
 0x2c1   : > { %v2001_v54 = vpack.c.bf16 %v1370_v48, %v1369_v46  ;;  %2173 = vmatprep.mubr.bf16.mxu0 %v3703_v37  ;;  %v1323_v49 = vadd.f32 %v4255_v35, %v1301_v19  ;;  %v1363_v8 = vsel %vm1331_vm12, %v1315_v62, %v1347_v47  ;;  %v4379_v60 = vadd.f32 %v1865_v0, %v4367_v33  ;;  %v1867_v22 = vpop.f32.mrf.mxu0  ;;  %v1916_v19 = vpop.f32.mrf.mxu1 }
 0x2c2   : > { %vm1332_vm13 = vcmp.gt.f32.partialorder %v1316_v25, 0.0  ;;  %v1348_v12 = vmul.f32 0.01, %v1316_v25  ;;  %v1302_v23 = vmul.f32 %v4249_v9, %v1280_v57  ;;  %v4370_v28 = vadd.f32 %v1857_v52, %v4362_v58 }
 0x2c3   : > { %2204 = vmatmul.mubr.bf16.gmra.mxu1 %v2001_v54  ;;  %v1355_v29 = vmul.f32 0.01, %v1323_v49  ;;  %vm1339_vm14 = vcmp.gt.f32.partialorder %v1323_v49, 0.0  ;;  %v4382_v6 = vadd.f32 %v1867_v22, %v4362_v58  ;;  %v1869_v43 = vpop.f32.mrf.mxu0  ;;  %v1918_v46 = vpop.f32.mrf.mxu1 }
 0x2c4   : > { %v1364_v15 = vsel %vm1332_vm13, %v1316_v25, %v1348_v12  ;;  %2213 = vmatprep.mubr.bf16.mxu1 %v3703_v37  ;;  %v1324_v30 = vadd.f32 %v4255_v35, %v1302_v23  ;;  %v4376_v37 = vadd.f32 %v1863_v5, %v4362_v58  ;;  %v4385_v63 = vadd.f32 %v1869_v43, %v4367_v33 }
 0x2c5   : > { %v1998_v51 = vpack.c.bf16 %v1364_v15, %v1363_v8  ;;  %v1371_v35 = vsel %vm1339_vm14, %v1323_v49, %v1355_v29  ;;  %5138 = vst [vmem:[#allocation17_spill] sm:$0xff] %v4382_v6  ;;  %v1873_v32 = vpop.f32.mrf.mxu0  ;;  %v1920_v48 = vpop.f32.mrf.mxu1 }
 0x2c6   : > { %vm1340_vm15 = vcmp.gt.f32.partialorder %v1324_v30, 0.0  ;;  %v1356_v9 = vmul.f32 0.01, %v1324_v30  ;;  %5139 = vst [vmem:[#allocation18_spill] sm:$0xff] %v4385_v63  ;;  %v4388_v18 = vadd.f32 %v1873_v32, %v4362_v58 }
 0x2c7   : > { %v1875_v13 = vpop.f32.mrf.mxu0  ;;  %v1922_v25 = vpop.f32.mrf.mxu1 }
 0x2c8   : > { %2174 = vmatmul.mubr.bf16.gmra.mxu0 %v1998_v51  ;;  %v1372_v16 = vsel %vm1340_vm15, %v1324_v30, %v1356_v9  ;;  %5140 = vst [vmem:[#allocation24_spill] sm:$0xff] %v4388_v18  ;;  %v4391_v3 = vadd.f32 %v1875_v13, %v4367_v33  ;;  %v1804_v13 = vadd.f32 %v4263_v61, %v4362_v58 }
 0x2c9   : > { %v2002_v4 = vpack.c.bf16 %v1372_v16, %v1371_v35  ;;  %v1877_v38 = vpop.f32.mrf.mxu0  ;;  %v4396_v57 = vpop.f32.mrf.mxu1  ;;  %v2019_v16 = vld [vmem:[%s5065_s4] sm:$0x3] }
 0x2ca   : > { %5141 = vst [vmem:[#allocation19_spill] sm:$0xff] %v4391_v3  ;;  %v4394_v62 = vadd.f32 %v1877_v38, %v4362_v58  ;;  %v4440_v43 = vrot.slane %v2019_v16, %v4349_v40  ;;  %v1806_v38 = vadd.f32 %v4265_v34, %v4367_v33 }
 0x2cb   : > { %2214 = vmatmul.mubr.bf16.gmra.mxu1 %v2002_v4  ;;  %v4398_v26 = vpop.f32.mrf.mxu1  ;;  %v4437_v4 = vpop.f32.mrf.mxu0 }
 0x2cc   : > { %5142 = vst [vmem:[#allocation20_spill] sm:$0xff] %v4394_v62  ;;  %5149 = vst [vmem:[#allocation30_spill] sm:$0xff] %v4437_v4  ;;  %v1917_v4 = vadd.f32 %v1916_v19, %v1804_v13  ;;  %v1919_v61 = vadd.f32 %v1918_v46, %v1806_v38 }
 0x2cd   : > { %v4400_v52 = vpop.f32.mrf.mxu1 }
 0x2cf   : > { %v4402_v54 = vpop.f32.mrf.mxu1 }
 0x2d1   : > { %v4404_v47 = vpop.f32.mrf.mxu1 }
 0x2d3   : > { %v4406_v49 = vpop.f32.mrf.mxu1 }
 0x2d5   : > { %v4408_v12 = vpop.f32.mrf.mxu1 }
 0x2d7   : > { %v4410_v23 = vpop.f32.mrf.mxu1 }
 0x2d9   : > { %v4412_v24 = vpop.f32.mrf.mxu1 }
 0x2db   : > { %v4414_v8 = vpop.f32.mrf.mxu1 }
 0x2dd   : > { %v4416_v15 = vpop.f32.mrf.mxu1 }
 0x2df   : > { %v4418_v30 = vpop.f32.mrf.mxu1 }
 0x2e1   : > { %v4420_v29 = vpop.f32.mrf.mxu1 }
 0x2e2   : > { %5143 = vst [vmem:[#allocation21_spill] sm:$0xff] %v4420_v29 }
 0x2e3   : > { %v4422_v5 = vpop.f32.mrf.mxu1 }
 0x2e4   : > { %5144 = vst [vmem:[#allocation23_spill] sm:$0xff] %v4422_v5 }
 0x2e5   : > { %v4424_v51 = vpop.f32.mrf.mxu1 }
 0x2e6   : > { %5145 = vst [vmem:[#allocation25_spill] sm:$0xff] %v4424_v51 }
 0x2e7   : > { %v4426_v9 = vpop.f32.mrf.mxu1 }
 0x2e8   : > { %5146 = vst [vmem:[#allocation27_spill] sm:$0xff] %v4426_v9  ;;  %v1810_v9 = vadd.f32 %v4269_v50, %v4367_v33 }
 0x2e9   : > { %v4428_v0 = vpop.f32.mrf.mxu1 }
 0x2ea   : > { %5147 = vst [vmem:[#allocation28_spill] sm:$0xff] %v4428_v0  ;;  %v4449_v0 = vrot.slane %v2019_v16, %v4351_v44  ;;  %v1923_v5 = vadd.f32 %v1922_v25, %v1810_v9 }
 0x2eb   : > { %v4430_v35 = vpop.f32.mrf.mxu1 }
 0x2ec   : > { %5148 = vst [vmem:[#allocation29_spill] sm:$0xff] %v4430_v35  ;;  %v1808_v35 = vadd.f32 %v4267_v39, %v4362_v58 }
 0x2ed   : > { %v4435_v22 = vpop.f32.mrf.mxu1 }
 0x2ee   : > { %v1921_v39 = vadd.f32 %v1920_v48, %v1808_v35 }
 0x2ef   : > { %v4442_v32 = vpop.f32.mrf.mxu1 }
 0x2f1   : > { %v4454_v40 = vpop.f32.mrf.mxu1 }
 0x2f3   : > { %v4464_v6 = vpop.f32.mrf.mxu1 }
 0x353   : > { %v2145_v62 = vpop.f32.mrf.mxu0 }
 0x354   : > { %v2146_v3 = vadd.f32 %v2145_v62, %v4440_v43 }
 0x355   : > { %v2147_v18 = vpop.f32.mrf.mxu0 }
 0x356   : > { %v2148_v63 = vadd.f32 %v2147_v18, %v4449_v0  ;;  %v4459_v51 = vadd.f32 %v2146_v3, %v1917_v4  ;;  %v4473_v3 = vpop.f32.mrf.mxu1  ;;  %v1816_v4 = vadd.f32 %v4273_v53, %v4367_v33 }
 0x357   : > { %v2149_v34 = vpop.f32.mrf.mxu0 }
 0x358   : > { %v4461_v16 = vadd.f32 %v2148_v63, %v1919_v61  ;;  %v2150_v62 = vadd.f32 %v2149_v34, %v4440_v43  ;;  %v4477_v46 = vpop.f32.mrf.mxu1 }
 0x359   : > { %v2151_v44 = vpop.f32.mrf.mxu0 }
 0x35a   : > { %5150 = vst [vmem:[#allocation31_spill] sm:$0xff] %v4461_v16  ;;  %v2152_v29 = vadd.f32 %v2151_v44, %v4449_v0  ;;  %v2258_v50 = vadd.f32 %v4461_v16, %v4459_v51  ;;  %v4469_v19 = vadd.f32 %v2150_v62, %v1921_v39  ;;  %v4479_v48 = vpop.f32.mrf.mxu1  ;;  %v1818_v62 = vadd.f32 %v4275_v1, %v4362_v58 }
 0x35b   : > { %v1820_v39 = vadd.f32 %v4277_v7, %v4367_v33  ;;  %v1830_v7 = vadd.f32 %v4291_v41, %v4367_v33 }
 0x35c   : > { %5151 = vst [vmem:[#allocation32_spill] sm:$0xff] %v4469_v19  ;;  %v4471_v18 = vadd.f32 %v2152_v29, %v1923_v5  ;;  %2259 = vadd.xlane.f32.xlu0 %v2258_v50  ;;  %v4481_v25 = vpop.f32.mrf.mxu1  ;;  %v1814_v5 = vadd.f32 %v4271_v56, %v4362_v58  ;;  %v1824_v50 = vadd.f32 %v4280_v11, %v4362_v58 }
 0x35d   : > { %v1826_v56 = vadd.f32 %v4283_v20, %v4367_v33  ;;  %v1834_v11 = vadd.f32 %v4296_v21, %v4362_v58  ;;  %v1836_v20 = vadd.f32 %v4300_v27, %v4367_v33  ;;  %v1844_v21 = vadd.f32 %v4318_v42, %v4362_v58 }
 0x35e   : > { %5152 = vst [vmem:[#allocation33_spill] sm:$0xff] %v4471_v18  ;;  %v2261_v63 = vadd.f32 %v4471_v18, %v4469_v19  ;;  %v4483_v44 = vpop.f32.mrf.mxu1  ;;  %v1929_v18 = vadd.f32 %v4398_v26, %v1816_v4  ;;  %v1846_v27 = vadd.f32 %v4322_v45, %v4367_v33  ;;  %v4549_v45 = vadd.f32 %v4340_v2, %v4362_v58 }
 0x360   : > { %2262 = vadd.xlane.f32.xlu1 %v2261_v63  ;;  %v4485_v9 = vpop.f32.mrf.mxu1  ;;  %v1828_v63 = vadd.f32 %v4287_v36, %v4362_v58  ;;  %v1838_v36 = vadd.f32 %v4306_v14, %v4362_v58  ;;  %v1848_v14 = vadd.f32 %v4327_v10, %v4362_v58  ;;  %v1937_v10 = vadd.f32 %v4404_v47, %v1824_v50 }
 0x361   : > { %v1939_v58 = vadd.f32 %v4406_v49, %v1826_v56  ;;  %v1947_v49 = vadd.f32 %v4412_v24, %v1834_v11 }
 0x362   : > { %v1951_v24 = vadd.f32 %v4416_v15, %v1838_v36  ;;  %v5155_v36 = vld [vmem:[#allocation17_spill] sm:$0xff] }
 0x373   : > { %v4487_v35 = vpop.f32.mrf.mxu1 }
 0x375   : > { %v4489_v29 = vpop.f32.mrf.mxu1 }
 0x377   : > { %v4495_v13 = vpop.f32.mrf.mxu1 }
 0x378   : > { %v2155_v38 = vpop.f32.mrf.mxu0 }
 0x379   : > { %v2156_v61 = vadd.f32 %v2155_v38, %v4440_v43  ;;  %v4498_v34 = vpop.f32.mrf.mxu1  ;;  %v1927_v38 = vadd.f32 %v4396_v57, %v1814_v5  ;;  %v1840_v57 = vadd.f32 %v4312_v55, %v4367_v33 }
 0x37a   : > { %v2157_v53 = vpop.f32.mrf.mxu0 }
 0x37b   : > { %v2158_v19 = vadd.f32 %v2157_v53, %v4449_v0  ;;  %v4513_v1 = vpop.f32.mrf.mxu1  ;;  %v4525_v26 = vadd.f32 %v2156_v61, %v1927_v38  ;;  %v1931_v53 = vadd.f32 %v4400_v52, %v1818_v62  ;;  %v1971_v52 = vadd.f32 %v4435_v22, %v4370_v28 }
 0x37c   : > { %v2159_v16 = vpop.f32.mrf.mxu0  ;;  %v1973_v28 = vadd.f32 %v4442_v32, %v4373_v17  ;;  %v1977_v17 = vadd.f32 %v4454_v40, %v4376_v37  ;;  %v1979_v40 = vadd.f32 %v4464_v6, %v4379_v60  ;;  %v1981_v60 = vadd.f32 %v4473_v3, %v5155_v36 }
 0x37d   : > { %v4527_v5 = vadd.f32 %v2158_v19, %v1929_v18  ;;  %v2160_v4 = vadd.f32 %v2159_v16, %v4440_v43  ;;  %v4530_v41 = vpop.f32.mrf.mxu1  ;;  %v4541_v19 = vadd.f32 %v4334_v31, %v4367_v33  ;;  %v1933_v16 = vadd.f32 %v4402_v54, %v1820_v39 }
 0x37e   : > { %v2161_v55 = vpop.f32.mrf.mxu0  ;;  %v4557_v54 = vadd.f32 %v4345_v59, %v4367_v33  ;;  %v1941_v59 = vadd.f32 %v4408_v12, %v1828_v63  ;;  %v1949_v12 = vadd.f32 %v4414_v8, %v1836_v20  ;;  %v1953_v8 = vadd.f32 %v4418_v30, %v1840_v57  ;;  %v5153_v20 = vld [vmem:[#allocation21_spill] sm:$0xff] }
 0x37f   : > { %v2162_v18 = vadd.f32 %v2161_v55, %v4449_v0  ;;  %v2199_v61 = vpop.f32.mrf.mxu1  ;;  %v2264_v42 = vadd.f32 %v4527_v5, %v4525_v26  ;;  %v4559_v39 = vadd.f32 %v2160_v4, %v1931_v53  ;;  %v1943_v4 = vadd.f32 %v4410_v23, %v1830_v7 }
 0x380   : > { %v2165_v62 = vpop.f32.mrf.mxu0  ;;  %v2200_v31 = vadd.f32 %v2199_v61, %v4440_v43  ;;  %v2188_v3 = vadd.f32 %v4489_v29, %v4449_v0 }
 0x381   : > { %v4561_v38 = vadd.f32 %v2162_v18, %v1933_v16  ;;  %v2166_v55 = vadd.f32 %v2165_v62, %v4440_v43  ;;  %2265 = vadd.xlane.f32.xlu0 %v2264_v42  ;;  %v2201_v2 = vpop.f32.mrf.mxu1 }
 0x382   : > { %v4567_v47 = vadd.f32 %v2200_v31, %v1971_v52  ;;  %v2167_v22 = vpop.f32.mrf.mxu0  ;;  %v2202_v50 = vadd.f32 %v2201_v2, %v4449_v0  ;;  %v5154_v2 = vld [vmem:[#allocation23_spill] sm:$0xff] }
 0x383   : > { %v2168_v53 = vadd.f32 %v2167_v22, %v4449_v0  ;;  %v2205_v16 = vpop.f32.mrf.mxu1  ;;  %v2267_v18 = vadd.f32 %v4561_v38, %v4559_v39  ;;  %v4582_v63 = vadd.f32 %v2166_v55, %v1937_v10  ;;  %v1957_v10 = vadd.f32 %v5153_v20, %v1844_v21  ;;  %v5156_v22 = vld [vmem:[#allocation25_spill] sm:$0xff] }
 0x384   : > { %v4578_v32 = vadd.f32 %v2202_v50, %v1973_v28  ;;  %v2169_v56 = vpop.f32.mrf.mxu0  ;;  %v2206_v61 = vadd.f32 %v2205_v16, %v4440_v43  ;;  %v1959_v15 = vadd.f32 %v5154_v2, %v1846_v27  ;;  %v1961_v30 = vadd.f32 %v5156_v22, %v1848_v14  ;;  %v5157_v16 = vld [vmem:[#allocation18_spill] sm:$0xff] }
 0x385   : > { %v4584_v23 = vadd.f32 %v2168_v53, %v1939_v58  ;;  %v2170_v7 = vadd.f32 %v2169_v56, %v4440_v43  ;;  %2268 = vadd.xlane.f32.xlu1 %v2267_v18  ;;  %v2207_v42 = vpop.f32.mrf.mxu1  ;;  %v1983_v27 = vadd.f32 %v4477_v46, %v5157_v16  ;;  %v5158_v14 = vld [vmem:[#allocation30_spill] sm:$0xff] }
 0x386   : > { %v4590_v37 = vadd.f32 %v2206_v61, %v1977_v17  ;;  %v2171_v11 = vpop.f32.mrf.mxu0  ;;  %v2208_v52 = vadd.f32 %v2207_v42, %v4449_v0 }
 0x387   : > { %v2172_v62 = vadd.f32 %v2171_v11, %v4449_v0  ;;  %v2209_v31 = vpop.f32.mrf.mxu1  ;;  %v2270_v55 = vadd.f32 %v4584_v23, %v4582_v63  ;;  %v4605_v57 = vadd.f32 %v2170_v7, %v1941_v59  ;;  %v1880_v59 = vadd.f32 %v5158_v14, %v4367_v33 }
 0x388   : > { %v4601_v6 = vadd.f32 %v2208_v52, %v1979_v40  ;;  %v2175_v58 = vpop.f32.mrf.mxu0  ;;  %v2210_v28 = vadd.f32 %v2209_v31, %v4440_v43  ;;  %v5160_v40 = vld [vmem:[#allocation24_spill] sm:$0xff]  ;;  %v2186_v11 = vadd.f32 %v4487_v35, %v4440_v43  ;;  %v4640_v35 = vadd.f32 %v2188_v3, %v1959_v15 }
 0x389   : > { %v4607_v21 = vadd.f32 %v2172_v62, %v1943_v4  ;;  %v2176_v50 = vadd.f32 %v2175_v58, %v4440_v43  ;;  %2271 = vadd.xlane.f32.xlu0 %v2270_v55  ;;  %v2211_v53 = vpop.f32.mrf.mxu1  ;;  %v5159_v4 = vld [vmem:[#allocation27_spill] sm:$0xff]  ;;  %v1987_v29 = vadd.f32 %v4479_v48, %v5160_v40  ;;  %v5161_v62 = vld [vmem:[#allocation29_spill] sm:$0xff] }
 0x38a   : > { %v4614_v18 = vadd.f32 %v2210_v28, %v1981_v60  ;;  %v2177_v17 = vpop.f32.mrf.mxu0  ;;  %v2212_v56 = vadd.f32 %v2211_v53, %v4449_v0  ;;  %v1963_v61 = vadd.f32 %v5159_v4, %v4541_v19  ;;  %v1969_v19 = vadd.f32 %v5161_v62, %v4557_v54  ;;  %v5162_v48 = vld [vmem:[#allocation19_spill] sm:$0xff] }
 0x38b   : > { %v2178_v7 = vadd.f32 %v2177_v17, %v4449_v0  ;;  %v2215_v42 = vpop.f32.mrf.mxu1  ;;  %v2273_v46 = vadd.f32 %v4607_v21, %v4605_v57  ;;  %v4633_v31 = vadd.f32 %v2176_v50, %v1947_v49  ;;  %v1989_v60 = vadd.f32 %v4481_v25, %v5162_v48  ;;  %v5163_v25 = vld [vmem:[#allocation20_spill] sm:$0xff]  ;;  %v5165_v62 = vld [vmem:[#allocation31_spill] sm:$0xff] }
 0x38c   : > { %v4628_v52 = vadd.f32 %v2212_v56, %v1983_v27  ;;  %v2179_v20 = vpop.f32.mrf.mxu0  ;;  %v2216_v33 = vadd.f32 %v2215_v42, %v4440_v43  ;;  %v2192_v54 = vadd.f32 %v4498_v34, %v4449_v0  ;;  %v2198_v49 = vadd.f32 %v4530_v41, %v4449_v0 }
 0x38d   : > { %v4635_v55 = vadd.f32 %v2178_v7, %v1949_v12  ;;  %v2180_v2 = vadd.f32 %v2179_v20, %v4440_v43  ;;  %2274 = vadd.xlane.f32.xlu1 %v2273_v46  ;;  %v2217_v36 = vpop.f32.mrf.mxu1  ;;  %v1991_v15 = vadd.f32 %v4483_v44, %v5163_v25  ;;  %v4654_v16 = vadd.f32 %v2186_v11, %v1957_v10  ;;  %v5164_v44 = vld [vmem:[#allocation28_spill] sm:$0xff] }
 0x38e   : > { %v4642_v58 = vadd.f32 %v2216_v33, %v1987_v29  ;;  %v2181_v28 = vpop.f32.mrf.mxu0  ;;  %v2218_v22 = vadd.f32 %v2217_v36, %v4449_v0  ;;  %v2190_v34 = vadd.f32 %v4495_v13, %v4440_v43  ;;  %v2196_v41 = vadd.f32 %v4513_v1, %v4440_v43 }
 0x38f   : > { %v2182_v12 = vadd.f32 %v2181_v28, %v4449_v0  ;;  %v2219_v50 = vpop.f32.mrf.mxu1  ;;  %v2276_v53 = vadd.f32 %v4635_v55, %v4633_v31  ;;  %v4663_v17 = vadd.f32 %v2180_v2, %v1951_v24  ;;  %v1967_v10 = vadd.f32 %v5164_v44, %v4549_v45  ;;  %v5166_v28 = vld [vmem:[#allocation32_spill] sm:$0xff] }
 0x390   : > { %v4656_v27 = vadd.f32 %v2218_v22, %v1989_v60  ;;  %v2220_v3 = vadd.f32 %v2219_v50, %v4440_v43  ;;  %v1993_v4 = vadd.f32 %v4485_v9, %v1880_v59  ;;  %v4673_v46 = vadd.f32 %v2192_v54, %v1963_v61  ;;  %v5167_v54 = vld [vmem:[#allocation33_spill] sm:$0xff] }
 0x391   : > { %v4665_v56 = vadd.f32 %v2182_v12, %v1953_v8  ;;  %2277 = vadd.xlane.f32.xlu0 %v2276_v53  ;;  %v2221_v14 = vpop.f32.mrf.mxu1  ;;  %v4675_v13 = vadd.f32 %v2198_v49, %v1969_v19  ;;  %v2282_v1 = vadd.f32 %v4640_v35, %v4654_v16  ;;  %v4683_v8 = vadd.f32 %v2190_v34, %v1961_v30 }
 0x392   : > { %v4670_v7 = vadd.f32 %v2220_v3, %v1991_v15  ;;  %v2222_v42 = vadd.f32 %v2221_v14, %v4449_v0  ;;  %v4685_v45 = vadd.f32 %v2196_v41, %v1967_v10  ;;  %v2291_v59 = vadd.f32 %v4578_v32, %v4567_v47 }
 0x393   : > { %v2279_v43 = vadd.f32 %v4665_v56, %v4663_v17  ;;  %v2285_v0 = vadd.f32 %v4673_v46, %v4683_v8  ;;  %v2294_v61 = vadd.f32 %v4601_v6, %v4590_v37  ;;  %v2297_v30 = vadd.f32 %v4628_v52, %v4614_v18 }
 0x394   : > { %v4681_v24 = vadd.f32 %v2222_v42, %v1993_v4  ;;  %v2288_v9 = vadd.f32 %v4675_v13, %v4685_v45  ;;  %v2300_v40 = vadd.f32 %v4656_v27, %v4642_v58 }
 0x395   : > { %2280 = vadd.xlane.f32.xlu1 %v2279_v43  ;;  %2283 = vadd.xlane.f32.xlu0 %v2282_v1 }
 0x396   : > { %v2303_v29 = vadd.f32 %v4681_v24, %v4670_v7 }
 0x399   : > { %2286 = vadd.xlane.f32.xlu1 %v2285_v0  ;;  %2289 = vadd.xlane.f32.xlu0 %v2288_v9 }
 0x39d   : > { %2292 = vadd.xlane.f32.xlu1 %v2291_v59  ;;  %2295 = vadd.xlane.f32.xlu0 %v2294_v61 }
 0x3a1   : > { %2298 = vadd.xlane.f32.xlu1 %v2297_v30  ;;  %2301 = vadd.xlane.f32.xlu0 %v2300_v40 }
 0x3a5   : > { %2304 = vadd.xlane.f32.xlu1 %v2303_v29 }
 0x3e5   : > { %v2260_v11 = vpop.xlane.xlu0 %2259 }
 0x3e6   : > { %v2307_v20 = vmul.f32 0.00390625, %v2260_v11 }
 0x3e8   : > { %v4702_v33 = vsub.f32 %v4459_v51, %v2307_v20  ;;  %v4705_v19 = vsub.f32 %v5165_v62, %v2307_v20 }
 0x3e9   : > { %v2263_v2 = vpop.xlane.xlu1 %2262 }
 0x3ea   : > { %v2308_v36 = vmul.f32 0.00390625, %v2263_v2  ;;  %v2355_v48 = vmul.f32 %v4702_v33, %v4702_v33  ;;  %v2356_v60 = vmul.f32 %v4705_v19, %v4705_v19 }
 0x3ec   : > { %v4712_v22 = vsub.f32 %v5166_v28, %v2308_v36  ;;  %v4715_v49 = vsub.f32 %v5167_v54, %v2308_v36  ;;  %v2387_v12 = vadd.f32 %v2356_v60, %v2355_v48 }
 0x3ee   : > { %2388 = vadd.xlane.f32.xlu0 %v2387_v12  ;;  %v2357_v51 = vmul.f32 %v4712_v22, %v4712_v22  ;;  %v2358_v50 = vmul.f32 %v4715_v49, %v4715_v49 }
 0x3f0   : > { %v2390_v53 = vadd.f32 %v2358_v50, %v2357_v51 }
 0x3f2   : > { %2391 = vadd.xlane.f32.xlu1 %v2390_v53 }
 0x40a   : > { %v2266_v25 = vpop.xlane.xlu0 %2265 }
 0x40b   : > { %v2309_v15 = vmul.f32 0.00390625, %v2266_v25 }
 0x40d   : > { %v4722_v3 = vsub.f32 %v4525_v26, %v2309_v15  ;;  %v4725_v34 = vsub.f32 %v4527_v5, %v2309_v15 }
 0x40e   : > { %v2269_v41 = vpop.xlane.xlu1 %2268 }
 0x40f   : > { %v2310_v14 = vmul.f32 0.00390625, %v2269_v41  ;;  %v2359_v44 = vmul.f32 %v4722_v3, %v4722_v3  ;;  %v2360_v10 = vmul.f32 %v4725_v34, %v4725_v34 }
 0x411   : > { %v4732_v4 = vsub.f32 %v4559_v39, %v2310_v14  ;;  %v4735_v42 = vsub.f32 %v4561_v38, %v2310_v14  ;;  %v2393_v43 = vadd.f32 %v2360_v10, %v2359_v44 }
 0x412   : > { %v2272_v26 = vpop.xlane.xlu0 %2271 }
 0x413   : > { %v2311_v1 = vmul.f32 0.00390625, %v2272_v26  ;;  %2394 = vadd.xlane.f32.xlu0 %v2393_v43  ;;  %v2361_v5 = vmul.f32 %v4732_v4, %v4732_v4  ;;  %v2362_v0 = vmul.f32 %v4735_v42, %v4735_v42 }
 0x415   : > { %v4742_v9 = vsub.f32 %v4582_v63, %v2311_v1  ;;  %v4745_v59 = vsub.f32 %v4584_v23, %v2311_v1  ;;  %v2396_v39 = vadd.f32 %v2362_v0, %v2361_v5 }
 0x416   : > { %v2275_v61 = vpop.xlane.xlu1 %2274 }
 0x417   : > { %v2312_v38 = vmul.f32 0.00390625, %v2275_v61  ;;  %2397 = vadd.xlane.f32.xlu1 %v2396_v39  ;;  %v2363_v30 = vmul.f32 %v4742_v9, %v4742_v9  ;;  %v2364_v40 = vmul.f32 %v4745_v59, %v4745_v59 }
 0x419   : > { %v4752_v29 = vsub.f32 %v4605_v57, %v2312_v38  ;;  %v4755_v11 = vsub.f32 %v4607_v21, %v2312_v38  ;;  %v2399_v63 = vadd.f32 %v2364_v40, %v2363_v30 }
 0x41a   : > { %v2278_v20 = vpop.xlane.xlu0 %2277 }
 0x41b   : > { %v2313_v23 = vmul.f32 0.00390625, %v2278_v20  ;;  %2400 = vadd.xlane.f32.xlu0 %v2399_v63  ;;  %v2365_v62 = vmul.f32 %v4752_v29, %v4752_v29  ;;  %v2366_v2 = vmul.f32 %v4755_v11, %v4755_v11 }
 0x41d   : > { %v4762_v36 = vsub.f32 %v4633_v31, %v2313_v23  ;;  %v4765_v48 = vsub.f32 %v4635_v55, %v2313_v23  ;;  %v2402_v57 = vadd.f32 %v2366_v2, %v2365_v62 }
 0x41e   : > { %v2281_v60 = vpop.xlane.xlu1 %2280  ;;  %v2284_v21 = vpop.xlane.xlu0 %2283 }
 0x41f   : > { %v2314_v28 = vmul.f32 0.00390625, %v2281_v60  ;;  %v2315_v54 = vmul.f32 0.00390625, %v2284_v21  ;;  %2403 = vadd.xlane.f32.xlu1 %v2402_v57  ;;  %v2367_v12 = vmul.f32 %v4762_v36, %v4762_v36  ;;  %v2368_v51 = vmul.f32 %v4765_v48, %v4765_v48 }
 0x421   : > { %v4772_v50 = vsub.f32 %v4663_v17, %v2314_v28  ;;  %v4775_v31 = vsub.f32 %v4665_v56, %v2314_v28  ;;  %v4778_v55 = vsub.f32 %v4654_v16, %v2315_v54  ;;  %v4781_v53 = vsub.f32 %v4640_v35, %v2315_v54 }
 0x422   : > { %v2287_v25 = vpop.xlane.xlu1 %2286  ;;  %v2290_v15 = vpop.xlane.xlu0 %2289  ;;  %v2405_v41 = vadd.f32 %v2368_v51, %v2367_v12 }
 0x423   : > { %v2316_v14 = vmul.f32 0.00390625, %v2287_v25  ;;  %v2317_v44 = vmul.f32 0.00390625, %v2290_v15  ;;  %v2369_v10 = vmul.f32 %v4772_v50, %v4772_v50  ;;  %v2370_v17 = vmul.f32 %v4775_v31, %v4775_v31 }
 0x424   : > { %2406 = vadd.xlane.f32.xlu0 %v2405_v41  ;;  %v2371_v56 = vmul.f32 %v4778_v55, %v4778_v55  ;;  %v2372_v16 = vmul.f32 %v4781_v53, %v4781_v53 }
 0x425   : > { %v4792_v35 = vsub.f32 %v4683_v8, %v2316_v14  ;;  %v4795_v43 = vsub.f32 %v4673_v46, %v2316_v14  ;;  %v4798_v26 = vsub.f32 %v4685_v45, %v2317_v44  ;;  %v4801_v1 = vsub.f32 %v4675_v13, %v2317_v44 }
 0x426   : > { %v2293_v5 = vpop.xlane.xlu1 %2292  ;;  %v2296_v0 = vpop.xlane.xlu0 %2295  ;;  %v2408_v39 = vadd.f32 %v2370_v17, %v2369_v10  ;;  %v2411_v61 = vadd.f32 %v2372_v16, %v2371_v56 }
 0x427   : > { %v2318_v38 = vmul.f32 0.00390625, %v2293_v5  ;;  %v2319_v30 = vmul.f32 0.00390625, %v2296_v0  ;;  %v2373_v40 = vmul.f32 %v4792_v35, %v4792_v35  ;;  %v2374_v8 = vmul.f32 %v4795_v43, %v4795_v43 }
 0x428   : > { %2409 = vadd.xlane.f32.xlu1 %v2408_v39  ;;  %2412 = vadd.xlane.f32.xlu0 %v2411_v61  ;;  %v2375_v46 = vmul.f32 %v4798_v26, %v4798_v26  ;;  %v2376_v13 = vmul.f32 %v4801_v1, %v4801_v1 }
 0x429   : > { %v4812_v45 = vsub.f32 %v4567_v47, %v2318_v38  ;;  %v4815_v63 = vsub.f32 %v4578_v32, %v2318_v38  ;;  %v4818_v20 = vsub.f32 %v4590_v37, %v2319_v30  ;;  %v4821_v23 = vsub.f32 %v4601_v6, %v2319_v30 }
 0x42a   : > { %v2299_v62 = vpop.xlane.xlu1 %2298  ;;  %v2302_v2 = vpop.xlane.xlu0 %2301  ;;  %v2414_v57 = vadd.f32 %v2374_v8, %v2373_v40  ;;  %v2417_v60 = vadd.f32 %v2376_v13, %v2375_v46  ;;  %v2256_v8 = vld [vmem:[%s5070_s9] sm:$0x3]  ;;  %v5168_v13 = vld [vmem:[#allocation22_spill] sm:$0xff] }
 0x42b   : > { %v2320_v21 = vmul.f32 0.00390625, %v2299_v62  ;;  %v2321_v28 = vmul.f32 0.00390625, %v2302_v2  ;;  %v2377_v54 = vmul.f32 %v4812_v45, %v4812_v45  ;;  %v2378_v47 = vmul.f32 %v4815_v63, %v4815_v63  ;;  %v2257_v46 = vld [vmem:[%s5071_s10] sm:$0x3]  ;;  %v5169_v2 = vld [vmem:[#allocation26_spill] sm:$0xff] }
 0x42c   : > { %2415 = vadd.xlane.f32.xlu1 %v2414_v57  ;;  %2418 = vadd.xlane.f32.xlu0 %v2417_v60  ;;  %v2379_v32 = vmul.f32 %v4818_v20, %v4818_v20  ;;  %v2380_v37 = vmul.f32 %v4821_v23, %v4821_v23  ;;  %v4868_v62 = vrot.slane %v2256_v8, %v5168_v13 }
 0x42d   : > { %v4832_v6 = vsub.f32 %v4614_v18, %v2320_v21  ;;  %v4835_v12 = vsub.f32 %v4628_v52, %v2320_v21  ;;  %v4838_v51 = vsub.f32 %v4642_v58, %v2321_v28  ;;  %v4841_v25 = vsub.f32 %v4656_v27, %v2321_v28 }
 0x42e   : > { %v2305_v15 = vpop.xlane.xlu1 %2304  ;;  %v2420_v41 = vadd.f32 %v2378_v47, %v2377_v54  ;;  %v2423_v14 = vadd.f32 %v2380_v37, %v2379_v32  ;;  %v4871_v57 = vrot.slane %v2256_v8, %v5169_v2  ;;  %v4874_v21 = vrot.slane %v2257_v46, %v5168_v13 }
 0x42f   : > { %v2322_v44 = vmul.f32 0.00390625, %v2305_v15  ;;  %v2381_v10 = vmul.f32 %v4832_v6, %v4832_v6  ;;  %v2382_v18 = vmul.f32 %v4835_v12, %v4835_v12  ;;  %v2383_v52 = vmul.f32 %v4838_v51, %v4838_v51 }
 0x430   : > { %2421 = vadd.xlane.f32.xlu1 %v2420_v41  ;;  %2424 = vadd.xlane.f32.xlu0 %v2423_v14  ;;  %v2384_v58 = vmul.f32 %v4841_v25, %v4841_v25  ;;  %v4877_v28 = vrot.slane %v2257_v46, %v5169_v2 }
 0x431   : > { %v4852_v27 = vsub.f32 %v4670_v7, %v2322_v44  ;;  %v4855_v17 = vsub.f32 %v4681_v24, %v2322_v44  ;;  %v2426_v56 = vadd.f32 %v2382_v18, %v2381_v10 }
 0x432   : > { %v2429_v16 = vadd.f32 %v2384_v58, %v2383_v52 }
 0x433   : > { %v2385_v5 = vmul.f32 %v4852_v27, %v4852_v27  ;;  %v2386_v0 = vmul.f32 %v4855_v17, %v4855_v17 }
 0x434   : > { %2427 = vadd.xlane.f32.xlu1 %v2426_v56  ;;  %2430 = vadd.xlane.f32.xlu0 %v2429_v16 }
 0x435   : > { %v2432_v39 = vadd.f32 %v2386_v0, %v2385_v5 }
 0x438   : > { %2433 = vadd.xlane.f32.xlu1 %v2432_v39 }
 0x477   : > { %v2389_v61 = vpop.xlane.xlu0 %2388 }
 0x478   : > { %v2435_v38 = vmul.f32 0.00390625, %v2389_v61 }
 0x47a   : > { %v2451_v30 = vadd.f32 1e-05, %v2435_v38 }
 0x47b   : > { %v2392_v7 = vpop.xlane.xlu1 %2391 }
 0x47c   : > { %3481 = vrsqrt.f32 %v2451_v30  ;;  %v2436_v40 = vmul.f32 0.00390625, %v2392_v7 }
 0x47e   : > { %v2452_v24 = vadd.f32 1e-05, %v2436_v40 }
 0x480   : > { %3483 = vrsqrt.f32 %v2452_v24 }
 0x489   : > { %v3482_v60 = vpop.eup %3481 }
 0x48a   : > { %v2483_v54 = vmul.f32 %v3482_v60, %v4702_v33  ;;  %v2484_v47 = vmul.f32 %v3482_v60, %v4705_v19 }
 0x48c   : > { %v2526_v32 = vmul.f32 %v4868_v62, %v2483_v54  ;;  %v2527_v37 = vmul.f32 %v4871_v57, %v2484_v47 }
 0x48d   : > { %v3484_v15 = vpop.eup %3483 }
 0x48e   : > { %v2569_v41 = vadd.f32 %v4874_v21, %v2526_v32  ;;  %v2570_v14 = vadd.f32 %v4877_v28, %v2527_v37  ;;  %v2485_v44 = vmul.f32 %v3484_v15, %v4712_v22  ;;  %v2486_v10 = vmul.f32 %v3484_v15, %v4715_v49 }
 0x490   : > { %vm2601_vm0 = vcmp.gt.f32.partialorder %v2569_v41, 0.0  ;;  %vm2602_vm1 = vcmp.gt.f32.partialorder %v2570_v14, 0.0  ;;  %v2633_v18 = vmul.f32 0.01, %v2569_v41  ;;  %v2634_v33 = vmul.f32 0.01, %v2570_v14 }
 0x491   : > { %v2528_v19 = vmul.f32 %v4868_v62, %v2485_v44  ;;  %v2529_v52 = vmul.f32 %v4871_v57, %v2486_v10 }
 0x492   : > { %v2665_v58 = vsel %vm2601_vm0, %v2569_v41, %v2633_v18  ;;  %v2666_v56 = vsel %vm2602_vm1, %v2570_v14, %v2634_v33 }
 0x493   : > { %2697 = vst [vmem:[%s4891_s25] sm:$0xff] %v2665_v58  ;;  %2698 = vst [vmem:[%s4891_s25 + $0x8] sm:$0xff] %v2666_v56  ;;  %v2571_v22 = vadd.f32 %v4874_v21, %v2528_v19  ;;  %v2572_v49 = vadd.f32 %v4877_v28, %v2529_v52 }
 0x495   : > { %vm2603_vm2 = vcmp.gt.f32.partialorder %v2571_v22, 0.0  ;;  %vm2604_vm3 = vcmp.gt.f32.partialorder %v2572_v49, 0.0  ;;  %v2635_v16 = vmul.f32 0.01, %v2571_v22  ;;  %v2636_v5 = vmul.f32 0.01, %v2572_v49 }
 0x497   : > { %v2667_v0 = vsel %vm2603_vm2, %v2571_v22, %v2635_v16  ;;  %v2668_v39 = vsel %vm2604_vm3, %v2572_v49, %v2636_v5 }
 0x498   : > { %2699 = vst [vmem:[%s4891_s25 + $0x10] sm:$0xff] %v2667_v0  ;;  %2700 = vst [vmem:[%s4891_s25 + $0x18] sm:$0xff] %v2668_v39 }
 0x49c   : > { %v2395_v61 = vpop.xlane.xlu0 %2394 }
 0x49d   : > { %v2437_v38 = vmul.f32 0.00390625, %v2395_v61 }
 0x49f   : > { %v2453_v30 = vadd.f32 1e-05, %v2437_v38 }
 0x4a0   : > { %v2398_v7 = vpop.xlane.xlu1 %2397 }
 0x4a1   : > { %3485 = vrsqrt.f32 %v2453_v30  ;;  %v2438_v40 = vmul.f32 0.00390625, %v2398_v7 }
 0x4a3   : > { %v2454_v24 = vadd.f32 1e-05, %v2438_v40 }
 0x4a4   : > { %v2401_v8 = vpop.xlane.xlu0 %2400 }
 0x4a5   : > { %3487 = vrsqrt.f32 %v2454_v24  ;;  %v2439_v46 = vmul.f32 0.00390625, %v2401_v8 }
 0x4a7   : > { %v2455_v13 = vadd.f32 1e-05, %v2439_v46 }
 0x4a8   : > { %v2404_v2 = vpop.xlane.xlu1 %2403 }
 0x4a9   : > { %3489 = vrsqrt.f32 %v2455_v13  ;;  %v2440_v60 = vmul.f32 0.00390625, %v2404_v2 }
 0x4ab   : > { %v2456_v54 = vadd.f32 1e-05, %v2440_v60 }
 0x4ad   : > { %3491 = vrsqrt.f32 %v2456_v54  ;;  %v2407_v47 = vpop.xlane.xlu0 %2406 }
 0x4ae   : > { %v3486_v32 = vpop.eup %3485  ;;  %v2441_v37 = vmul.f32 0.00390625, %v2407_v47 }
 0x4af   : > { %v2487_v15 = vmul.f32 %v3486_v32, %v4722_v3  ;;  %v2488_v41 = vmul.f32 %v3486_v32, %v4725_v34 }
 0x4b0   : > { %v2457_v14 = vadd.f32 1e-05, %v2441_v37 }
 0x4b1   : > { %v2530_v44 = vmul.f32 %v4868_v62, %v2487_v15  ;;  %v2531_v10 = vmul.f32 %v4871_v57, %v2488_v41  ;;  %v2410_v18 = vpop.xlane.xlu1 %2409  ;;  %v2413_v33 = vpop.xlane.xlu0 %2412 }
 0x4b2   : > { %v3488_v19 = vpop.eup %3487  ;;  %3493 = vrsqrt.f32 %v2457_v14  ;;  %v2442_v52 = vmul.f32 0.00390625, %v2410_v18  ;;  %v2443_v58 = vmul.f32 0.00390625, %v2413_v33 }
 0x4b3   : > { %v2573_v56 = vadd.f32 %v4874_v21, %v2530_v44  ;;  %v2574_v22 = vadd.f32 %v4877_v28, %v2531_v10  ;;  %v2489_v49 = vmul.f32 %v3488_v19, %v4732_v4  ;;  %v2490_v3 = vmul.f32 %v3488_v19, %v4735_v42 }
 0x4b4   : > { %v2458_v34 = vadd.f32 1e-05, %v2442_v52  ;;  %v2459_v16 = vadd.f32 1e-05, %v2443_v58 }
 0x4b5   : > { %vm2605_vm4 = vcmp.gt.f32.partialorder %v2573_v56, 0.0  ;;  %vm2606_vm5 = vcmp.gt.f32.partialorder %v2574_v22, 0.0  ;;  %v2637_v5 = vmul.f32 0.01, %v2573_v56  ;;  %v2638_v0 = vmul.f32 0.01, %v2574_v22  ;;  %v2416_v39 = vpop.xlane.xlu1 %2415  ;;  %v2419_v61 = vpop.xlane.xlu0 %2418 }
 0x4b6   : > { %v3490_v38 = vpop.eup %3489  ;;  %v2532_v30 = vmul.f32 %v4868_v62, %v2489_v49  ;;  %v2533_v7 = vmul.f32 %v4871_v57, %v2490_v3  ;;  %3495 = vrsqrt.f32 %v2458_v34  ;;  %v2444_v40 = vmul.f32 0.00390625, %v2416_v39 }
 0x4b7   : > { %v2669_v4 = vsel %vm2605_vm4, %v2573_v56, %v2637_v5  ;;  %v2670_v24 = vsel %vm2606_vm5, %v2574_v22, %v2638_v0  ;;  %v2491_v42 = vmul.f32 %v3490_v38, %v4742_v9  ;;  %v2492_v8 = vmul.f32 %v3490_v38, %v4745_v59 }
 0x4b8   : > { %2701 = vst [vmem:[%s4891_s25 + $0x20] sm:$0xff] %v2669_v4  ;;  %2702 = vst [vmem:[%s4891_s25 + $0x28] sm:$0xff] %v2670_v24  ;;  %v2575_v46 = vadd.f32 %v4874_v21, %v2532_v30  ;;  %v2576_v13 = vadd.f32 %v4877_v28, %v2533_v7  ;;  %3497 = vrsqrt.f32 %v2459_v16  ;;  %v2460_v2 = vadd.f32 1e-05, %v2444_v40 }
 0x4b9   : > { %v2534_v60 = vmul.f32 %v4868_v62, %v2491_v42  ;;  %v2535_v54 = vmul.f32 %v4871_v57, %v2492_v8  ;;  %v2445_v47 = vmul.f32 0.00390625, %v2419_v61  ;;  %v2422_v32 = vpop.xlane.xlu1 %2421  ;;  %v2425_v15 = vpop.xlane.xlu0 %2424 }
 0x4ba   : > { %v3492_v37 = vpop.eup %3491  ;;  %vm2607_vm6 = vcmp.gt.f32.partialorder %v2575_v46, 0.0  ;;  %vm2608_vm7 = vcmp.gt.f32.partialorder %v2576_v13, 0.0  ;;  %v2639_v9 = vmul.f32 0.01, %v2575_v46  ;;  %v2640_v59 = vmul.f32 0.01, %v2576_v13 }
 0x4bb   : > { %v2577_v41 = vadd.f32 %v4874_v21, %v2534_v60  ;;  %v2578_v14 = vadd.f32 %v4877_v28, %v2535_v54  ;;  %v2493_v44 = vmul.f32 %v3492_v37, %v4752_v29  ;;  %v2494_v10 = vmul.f32 %v3492_v37, %v4755_v11 }
 0x4bc   : > { %v2671_v18 = vsel %vm2607_vm6, %v2575_v46, %v2639_v9  ;;  %v2672_v33 = vsel %vm2608_vm7, %v2576_v13, %v2640_v59  ;;  %3499 = vrsqrt.f32 %v2460_v2  ;;  %v2461_v19 = vadd.f32 1e-05, %v2445_v47 }
 0x4bd   : > { %2703 = vst [vmem:[%s4891_s25 + $0x30] sm:$0xff] %v2671_v18  ;;  %2704 = vst [vmem:[%s4891_s25 + $0x38] sm:$0xff] %v2672_v33  ;;  %vm2609_vm8 = vcmp.gt.f32.partialorder %v2577_v41, 0.0  ;;  %vm2610_vm9 = vcmp.gt.f32.partialorder %v2578_v14, 0.0  ;;  %v2641_v52 = vmul.f32 0.01, %v2577_v41  ;;  %v2428_v56 = vpop.xlane.xlu1 %2427  ;;  %v2536_v22 = vmul.f32 %v4868_v62, %v2493_v44  ;;  %v2431_v30 = vpop.xlane.xlu0 %2430 }
 0x4be   : > { %v2642_v58 = vmul.f32 0.01, %v2578_v14  ;;  %v2537_v49 = vmul.f32 %v4871_v57, %v2494_v10  ;;  %3501 = vrsqrt.f32 %v2461_v19  ;;  %v2446_v29 = vmul.f32 0.00390625, %v2422_v32 }
 0x4bf   : > { %v3494_v11 = vpop.eup %3493  ;;  %v2673_v3 = vsel %vm2609_vm8, %v2577_v41, %v2641_v52  ;;  %v2447_v16 = vmul.f32 0.00390625, %v2425_v15  ;;  %v2448_v5 = vmul.f32 0.00390625, %v2428_v56  ;;  %v2579_v0 = vadd.f32 %v4874_v21, %v2536_v22 }
 0x4c0   : > { %v2674_v34 = vsel %vm2610_vm9, %v2578_v14, %v2642_v58  ;;  %2705 = vst [vmem:[%s4891_s25 + $0x40] sm:$0xff] %v2673_v3  ;;  %v2580_v39 = vadd.f32 %v4877_v28, %v2537_v49  ;;  %v2495_v61 = vmul.f32 %v3494_v11, %v4762_v36  ;;  %v2496_v38 = vmul.f32 %v3494_v11, %v4765_v48 }
 0x4c1   : > { %2706 = vst [vmem:[%s4891_s25 + $0x48] sm:$0xff] %v2674_v34  ;;  %v2462_v7 = vadd.f32 1e-05, %v2446_v29  ;;  %v2463_v40 = vadd.f32 1e-05, %v2447_v16  ;;  %vm2611_vm10 = vcmp.gt.f32.partialorder %v2579_v0, 0.0 }
 0x4c2   : > { %v2464_v4 = vadd.f32 1e-05, %v2448_v5  ;;  %vm2612_vm11 = vcmp.gt.f32.partialorder %v2580_v39, 0.0  ;;  %v2643_v24 = vmul.f32 0.01, %v2579_v0  ;;  %v2538_v46 = vmul.f32 %v4868_v62, %v2495_v61 }
 0x4c3   : > { %v2644_v42 = vmul.f32 0.01, %v2580_v39  ;;  %v3496_v8 = vpop.eup %3495  ;;  %v2539_v13 = vmul.f32 %v4871_v57, %v2496_v38  ;;  %3503 = vrsqrt.f32 %v2462_v7  ;;  %v2449_v2 = vmul.f32 0.00390625, %v2431_v30 }
 0x4c4   : > { %v2675_v36 = vsel %vm2611_vm10, %v2579_v0, %v2643_v24  ;;  %v2497_v48 = vmul.f32 %v3496_v8, %v4772_v50  ;;  %v2498_v54 = vmul.f32 %v3496_v8, %v4775_v31  ;;  %v2581_v32 = vadd.f32 %v4874_v21, %v2538_v46  ;;  %v2434_v31 = vpop.xlane.xlu1 %2433 }
 0x4c5   : > { %v2676_v60 = vsel %vm2612_vm11, %v2580_v39, %v2644_v42  ;;  %v3498_v47 = vpop.eup %3497  ;;  %2707 = vst [vmem:[%s4891_s25 + $0x50] sm:$0xff] %v2675_v36  ;;  %v2582_v37 = vadd.f32 %v4877_v28, %v2539_v13  ;;  %3505 = vrsqrt.f32 %v2463_v40  ;;  %v2465_v9 = vadd.f32 1e-05, %v2449_v2 }
 0x4c6   : > { %2708 = vst [vmem:[%s4891_s25 + $0x58] sm:$0xff] %v2676_v60  ;;  %v2540_v59 = vmul.f32 %v4868_v62, %v2497_v48  ;;  %v2541_v15 = vmul.f32 %v4871_v57, %v2498_v54  ;;  %v2499_v41 = vmul.f32 %v3498_v47, %v4778_v55  ;;  %v2500_v50 = vmul.f32 %v3498_v47, %v4781_v53 }
 0x4c7   : > { %vm2613_vm12 = vcmp.gt.f32.partialorder %v2581_v32, 0.0  ;;  %vm2614_vm13 = vcmp.gt.f32.partialorder %v2582_v37, 0.0  ;;  %v2645_v14 = vmul.f32 0.01, %v2581_v32  ;;  %v2646_v44 = vmul.f32 0.01, %v2582_v37 }
 0x4c8   : > { %v2583_v10 = vadd.f32 %v4874_v21, %v2540_v59  ;;  %v2584_v18 = vadd.f32 %v4877_v28, %v2541_v15  ;;  %v2542_v33 = vmul.f32 %v4868_v62, %v2499_v41  ;;  %v2543_v19 = vmul.f32 %v4871_v57, %v2500_v50 }
 0x4c9   : > { %v3500_v52 = vpop.eup %3499  ;;  %v2677_v58 = vsel %vm2613_vm12, %v2581_v32, %v2645_v14  ;;  %v2678_v55 = vsel %vm2614_vm13, %v2582_v37, %v2646_v44  ;;  %3507 = vrsqrt.f32 %v2464_v4  ;;  %v2450_v56 = vmul.f32 0.00390625, %v2434_v31 }
 0x4ca   : > { %2709 = vst [vmem:[%s4891_s25 + $0x60] sm:$0xff] %v2677_v58  ;;  %2710 = vst [vmem:[%s4891_s25 + $0x68] sm:$0xff] %v2678_v55  ;;  %vm2615_vm14 = vcmp.gt.f32.partialorder %v2583_v10, 0.0  ;;  %vm2616_vm15 = vcmp.gt.f32.partialorder %v2584_v18, 0.0  ;;  %v2647_v53 = vmul.f32 0.01, %v2583_v10  ;;  %v2585_v29 = vadd.f32 %v4874_v21, %v2542_v33 }
 0x4cb   : > { %v2648_v22 = vmul.f32 0.01, %v2584_v18  ;;  %v3502_v49 = vpop.eup %3501  ;;  %v2586_v11 = vadd.f32 %v4877_v28, %v2543_v19  ;;  %v2501_v3 = vmul.f32 %v3500_v52, %v4792_v35  ;;  %v2502_v34 = vmul.f32 %v3500_v52, %v4795_v43 }
 0x4cc   : > { %v2679_v16 = vsel %vm2615_vm14, %v2583_v10, %v2647_v53  ;;  %v2503_v0 = vmul.f32 %v3502_v49, %v4798_v26  ;;  %v2504_v39 = vmul.f32 %v3502_v49, %v4801_v1  ;;  %vm2617_vm0 = vcmp.gt.f32.partialorder %v2585_v29, 0.0 }
 0x4cd   : > { %v2680_v5 = vsel %vm2616_vm15, %v2584_v18, %v2648_v22  ;;  %2711 = vst [vmem:[%s4891_s25 + $0x70] sm:$0xff] %v2679_v16  ;;  %vm2618_vm1 = vcmp.gt.f32.partialorder %v2586_v11, 0.0  ;;  %v2649_v61 = vmul.f32 0.01, %v2585_v29  ;;  %v2650_v38 = vmul.f32 0.01, %v2586_v11 }
 0x4ce   : > { %2712 = vst [vmem:[%s4891_s25 + $0x78] sm:$0xff] %v2680_v5  ;;  %v2544_v30 = vmul.f32 %v4868_v62, %v2501_v3  ;;  %v2545_v35 = vmul.f32 %v4871_v57, %v2502_v34  ;;  %v2546_v43 = vmul.f32 %v4868_v62, %v2503_v0  ;;  %v2547_v7 = vmul.f32 %v4871_v57, %v2504_v39 }
 0x4cf   : > { %v2681_v40 = vsel %vm2617_vm0, %v2585_v29, %v2649_v61  ;;  %v2682_v26 = vsel %vm2618_vm1, %v2586_v11, %v2650_v38  ;;  %3509 = vrsqrt.f32 %v2465_v9  ;;  %v2466_v1 = vadd.f32 1e-05, %v2450_v56 }
 0x4d0   : > { %v3504_v4 = vpop.eup %3503  ;;  %2713 = vst [vmem:[%s4891_s25 + $0x80] sm:$0xff] %v2681_v40  ;;  %2714 = vst [vmem:[%s4891_s25 + $0x88] sm:$0xff] %v2682_v26  ;;  %v2587_v24 = vadd.f32 %v4874_v21, %v2544_v30  ;;  %v2588_v42 = vadd.f32 %v4877_v28, %v2545_v35  ;;  %v2589_v8 = vadd.f32 %v4874_v21, %v2546_v43 }
 0x4d1   : > { %v2590_v46 = vadd.f32 %v4877_v28, %v2547_v7  ;;  %v2505_v13 = vmul.f32 %v3504_v4, %v4812_v45  ;;  %v2506_v2 = vmul.f32 %v3504_v4, %v4815_v63  ;;  %3511 = vrsqrt.f32 %v2466_v1 }
 0x4d2   : > { %v3506_v36 = vpop.eup %3505  ;;  %vm2619_vm2 = vcmp.gt.f32.partialorder %v2587_v24, 0.0  ;;  %vm2620_vm3 = vcmp.gt.f32.partialorder %v2588_v42, 0.0  ;;  %v2651_v60 = vmul.f32 0.01, %v2587_v24  ;;  %v2652_v48 = vmul.f32 0.01, %v2588_v42 }
 0x4d3   : > { %vm2621_vm4 = vcmp.gt.f32.partialorder %v2589_v8, 0.0  ;;  %vm2622_vm5 = vcmp.gt.f32.partialorder %v2590_v46, 0.0  ;;  %v2653_v54 = vmul.f32 0.01, %v2589_v8  ;;  %v2654_v47 = vmul.f32 0.01, %v2590_v46 }
 0x4d4   : > { %v2683_v32 = vsel %vm2619_vm2, %v2587_v24, %v2651_v60  ;;  %v2684_v37 = vsel %vm2620_vm3, %v2588_v42, %v2652_v48  ;;  %v2548_v45 = vmul.f32 %v4868_v62, %v2505_v13  ;;  %v2549_v9 = vmul.f32 %v4871_v57, %v2506_v2 }
 0x4d5   : > { %2715 = vst [vmem:[%s4891_s25 + $0x90] sm:$0xff] %v2683_v32  ;;  %2716 = vst [vmem:[%s4891_s25 + $0x98] sm:$0xff] %v2684_v37  ;;  %v2685_v63 = vsel %vm2621_vm4, %v2589_v8, %v2653_v54  ;;  %v2686_v59 = vsel %vm2622_vm5, %v2590_v46, %v2654_v47  ;;  %v2507_v15 = vmul.f32 %v3506_v36, %v4818_v20 }
 0x4d6   : > { %v2508_v41 = vmul.f32 %v3506_v36, %v4821_v23  ;;  %v3508_v50 = vpop.eup %3507  ;;  %2717 = vst [vmem:[%s4891_s25 + $0xa0] sm:$0xff] %v2685_v63  ;;  %2718 = vst [vmem:[%s4891_s25 + $0xa8] sm:$0xff] %v2686_v59  ;;  %v2591_v31 = vadd.f32 %v4874_v21, %v2548_v45  ;;  %v2592_v14 = vadd.f32 %v4877_v28, %v2549_v9 }
 0x4d7   : > { %v2550_v44 = vmul.f32 %v4868_v62, %v2507_v15  ;;  %v2509_v18 = vmul.f32 %v3508_v50, %v4832_v6  ;;  %v2510_v33 = vmul.f32 %v3508_v50, %v4835_v12 }
 0x4d8   : > { %v2551_v10 = vmul.f32 %v4871_v57, %v2508_v41  ;;  %vm2623_vm6 = vcmp.gt.f32.partialorder %v2591_v31, 0.0  ;;  %vm2624_vm7 = vcmp.gt.f32.partialorder %v2592_v14, 0.0  ;;  %v2655_v20 = vmul.f32 0.01, %v2591_v31 }
 0x4d9   : > { %v2656_v23 = vmul.f32 0.01, %v2592_v14  ;;  %v2593_v19 = vadd.f32 %v4874_v21, %v2550_v44  ;;  %v2552_v58 = vmul.f32 %v4868_v62, %v2509_v18  ;;  %v2553_v55 = vmul.f32 %v4871_v57, %v2510_v33 }
 0x4da   : > { %v2594_v52 = vadd.f32 %v4877_v28, %v2551_v10  ;;  %v2687_v56 = vsel %vm2623_vm6, %v2591_v31, %v2655_v20 }
 0x4db   : > { %v2688_v53 = vsel %vm2624_vm7, %v2592_v14, %v2656_v23  ;;  %2719 = vst [vmem:[%s4891_s25 + $0xb0] sm:$0xff] %v2687_v56  ;;  %vm2625_vm8 = vcmp.gt.f32.partialorder %v2593_v19, 0.0  ;;  %v2657_v6 = vmul.f32 0.01, %v2593_v19  ;;  %v2595_v49 = vadd.f32 %v4874_v21, %v2552_v58 }
 0x4dc   : > { %2720 = vst [vmem:[%s4891_s25 + $0xb8] sm:$0xff] %v2688_v53  ;;  %vm2626_vm9 = vcmp.gt.f32.partialorder %v2594_v52, 0.0  ;;  %v2658_v12 = vmul.f32 0.01, %v2594_v52  ;;  %v3510_v22 = vpop.eup %3509  ;;  %v2596_v29 = vadd.f32 %v4877_v28, %v2553_v55 }
 0x4dd   : > { %v2689_v11 = vsel %vm2625_vm8, %v2593_v19, %v2657_v6  ;;  %v2511_v34 = vmul.f32 %v3510_v22, %v4838_v51  ;;  %v2512_v16 = vmul.f32 %v3510_v22, %v4841_v25  ;;  %vm2627_vm10 = vcmp.gt.f32.partialorder %v2595_v49, 0.0 }
 0x4de   : > { %v2690_v3 = vsel %vm2626_vm9, %v2594_v52, %v2658_v12  ;;  %v3512_v5 = vpop.eup %3511  ;;  %2721 = vst [vmem:[%s4891_s25 + $0xc0] sm:$0xff] %v2689_v11  ;;  %vm2628_vm11 = vcmp.gt.f32.partialorder %v2596_v29, 0.0  ;;  %v2659_v0 = vmul.f32 0.01, %v2595_v49  ;;  %v2660_v39 = vmul.f32 0.01, %v2596_v29 }
 0x4df   : > { %2722 = vst [vmem:[%s4891_s25 + $0xc8] sm:$0xff] %v2690_v3  ;;  %v2554_v61 = vmul.f32 %v4868_v62, %v2511_v34  ;;  %v2555_v38 = vmul.f32 %v4871_v57, %v2512_v16  ;;  %v2513_v30 = vmul.f32 %v3512_v5, %v4852_v27  ;;  %v2514_v51 = vmul.f32 %v3512_v5, %v4855_v17 }
 0x4e0   : > { %v2691_v35 = vsel %vm2627_vm10, %v2595_v49, %v2659_v0  ;;  %v2692_v43 = vsel %vm2628_vm11, %v2596_v29, %v2660_v39 }
 0x4e1   : > { %2723 = vst [vmem:[%s4891_s25 + $0xd0] sm:$0xff] %v2691_v35  ;;  %2724 = vst [vmem:[%s4891_s25 + $0xd8] sm:$0xff] %v2692_v43  ;;  %v2597_v25 = vadd.f32 %v4874_v21, %v2554_v61  ;;  %v2598_v7 = vadd.f32 %v4877_v28, %v2555_v38  ;;  %v2556_v40 = vmul.f32 %v4868_v62, %v2513_v30 }
 0x4e2   : > { %v2557_v26 = vmul.f32 %v4871_v57, %v2514_v51 }
 0x4e3   : > { %vm2629_vm12 = vcmp.gt.f32.partialorder %v2597_v25, 0.0  ;;  %vm2630_vm13 = vcmp.gt.f32.partialorder %v2598_v7, 0.0  ;;  %v2661_v27 = vmul.f32 0.01, %v2597_v25  ;;  %v2662_v17 = vmul.f32 0.01, %v2598_v7 }
 0x4e4   : > { %v2599_v1 = vadd.f32 %v4874_v21, %v2556_v40  ;;  %v2600_v4 = vadd.f32 %v4877_v28, %v2557_v26 }
 0x4e5   : > { %v2693_v24 = vsel %vm2629_vm12, %v2597_v25, %v2661_v27  ;;  %v2694_v42 = vsel %vm2630_vm13, %v2598_v7, %v2662_v17 }
 0x4e6   : > { %2725 = vst [vmem:[%s4891_s25 + $0xe0] sm:$0xff] %v2693_v24  ;;  %2726 = vst [vmem:[%s4891_s25 + $0xe8] sm:$0xff] %v2694_v42  ;;  %vm2631_vm14 = vcmp.gt.f32.partialorder %v2599_v1, 0.0  ;;  %vm2632_vm15 = vcmp.gt.f32.partialorder %v2600_v4, 0.0  ;;  %v2663_v62 = vmul.f32 0.01, %v2599_v1 }
 0x4e7   : > { %v2664_v57 = vmul.f32 0.01, %v2600_v4 }
 0x4e8   : > { %v2695_v21 = vsel %vm2631_vm14, %v2599_v1, %v2663_v62 }
 0x4e9   : > { %v2696_v28 = vsel %vm2632_vm15, %v2600_v4, %v2664_v57  ;;  %2727 = vst [vmem:[%s4891_s25 + $0xf0] sm:$0xff] %v2695_v21 }
 0x4ea   : > { %2728 = vst [vmem:[%s4891_s25 + $0xf8] sm:$0xff] %v2696_v28 }
 0x4eb   : > { %3632 = shalt.err (!%p3629_p9)
}
 0x4ec   : > { %s3633_s3 = scalar_lea.hbm %s5014_s12, 4096  ;;  %s3637_s23 = scalar_lea.hbm %s5072_s11, 8192 }
 0x4ed   : > { %p3634_p7 = scmp.ne.s32.totalorder %s5014_s12, %s3633_s3  ;;  %p3638_p6 = scmp.lt.s32.totalorder %s5014_s12, %s5072_s11 }
 0x4ee   : > { %p3639_p11 = scmp.lt.s32.totalorder %s3637_s23, %s3633_s3 }
 0x4ef   : > { %p3635_p4 = pnand %p3634_p7, %p5170_p0 }
 0x4f0   : > { %p3640_p13 = por %p3639_p11, %p3638_p6 }
 0x4f1   : > { %p3636_p8 = pneg %p3635_p4 }
 0x4f3   : > { %p3641_p12 = pnand %p3640_p13, %p3636_p8 }
 0x4f5   : > { %3644 = shalt.err (!%p3641_p12)
}
 0x4f6   : > { %s3705_s21 = smov 256   ;;  %s3706_s13 = smov 16  }
 0x4f7   : > { %3177 = dma.vmem_to_hbm [thread:$0]  (%p5170_p0), %s5016_s26, 4096, %s5014_s12, %s2730_s15, %s3705_s21, %s3705_s21, %s3706_s13  }
 0x4f8 PF: > { %s2759_s29 = sand.u32 1, %s3679_s17   ;;  %p5171_p5 = scmp.ne.s32.totalorder %s5100_s24, 0 }
 0x4f9   : > { %p5172_p10 = scmp.ge.s32.totalorder %s3691_s20, 2  ;;  %s2760_s16 = scalar_lea.sflag [#allocation4], %s2759_s29 }
 0x4fb   : > { %p3194_p1 = pnand %p5172_p10, %p5171_p5 }
 0x4fd   : > { %p3195_p2 = pneg %p3194_p1 }
 0x4ff   : > { %3674 = dma.done.wait (%p3195_p2), %s2760_s16, 4096  }
 0x500   : > { %3676 = vsyncadd (%p3195_p2), %s2760_s16, 4294963200  ;;  %s5173_s1 = sld [smem:[#allocation15_spill]]  ;;  %p26_p3 = scmp.ge.s32.totalorder %s3839_s14, 4  }
 0x501   : > { %s5174_s19 = sld [smem:[#allocation16_spill]]  ;;  %s5175_s17 = smov %s3683_s18 }
 0x502   : > { %s5177_s20 = smov %s3839_s14  ;;  %28 = sbr.rel (!%p26_p3) target bundleno = 11 (0xb), region = 121 }
 0x506   : > { %s5176_s18 = smov %s5173_s1 }
 0x507   :  { %2765 = vsyncpa [#allocation3], 1 }
 0x508   :  { %2767 = vsyncpa [#allocation3 + $0x1], 1 }
 0x509   :  { %2768 = vsyncpa [#allocation6], 1 }
 0x50a   :  { %2769 = vsyncpa [#allocation9], 1 }
 0x50b   :  { %2770 = vsyncpa [#allocation4], 1 }
 0x50c   :  { %2772 = vsyncpa [#allocation4 + $0x1], 1 }

</bundles_post_ra>
